<compile_context>
chip_gen: v5e
topology: v5e:2x2
jax: 0.10.0
libtpu: 0.0.40
codegen_flags: <defaults>
</compile_context>

<pallas_src>
import math

import jax
import jax.numpy as jnp
from jax.experimental import pallas as pl
from jax.experimental.pallas import tpu as pltpu

# ---- model hyper-parameters (small, consistent with the module) -------------
D_MODEL = 32
N_HEADS = 4
D_K = D_MODEL // N_HEADS
D_FF = 64
N_LAYERS = 2
EPS = 1e-6
NEG_INF = -1e9


# =============================== kernel ======================================
def fused_decoder_kernel(x_ref, mem_ref, smask_ref, tmask_ref,
                         wqkv_ref, bqkv_ref, wo_ref, bo_ref,
                         lna_ref, lnb_ref, w1_ref, b1_ref, w2_ref, b2_ref,
                         fna_ref, fnb_ref, o_ref):
    B, St, D = x_ref.shape
    Ss = mem_ref.shape[1]
    L = wqkv_ref.shape[0]
    scale = 1.0 / math.sqrt(D_K)

    # Whole batch as one (B*S, D) slab. Each batch element is an (8, 32) tile,
    # so the axis-0 concat is on sublane-tile boundaries (no lane shuffles).
    x = jnp.concatenate([x_ref[b] for b in range(B)], axis=0)      # (B*St, D)
    mem = jnp.concatenate([mem_ref[b] for b in range(B)], axis=0)  # (B*Ss, D)
    tmasks = [tmask_ref[b] for b in range(B)]    # (St, St) each
    smasks = [smask_ref[b] for b in range(B)]    # (1, Ss)  each

    def layer_norm(v, gain, bias):
        # torch.std semantics: unbiased /(n-1) variance, (std + eps) denom.
        mu = jnp.mean(v, axis=-1, keepdims=True)
        var = jnp.sum((v - mu) ** 2, axis=-1, keepdims=True) / (D - 1.0)
        std = jnp.sqrt(var)
        return gain * (v - mu) / (std + EPS) + bias

    def attention(q, k, v, masks, wo_l, bo_l, Sq, Sk):
        # q: (B*Sq, D); k, v: (B*Sk, D). Static per-batch / per-head unroll.
        # No k.T (dot_general contracts last dims) and no head concatenate
        # (output projection accumulated per head).
        outs = []
        for b in range(B):
            qb = q[b * Sq:(b + 1) * Sq, :]
            kb = k[b * Sk:(b + 1) * Sk, :]
            vb = v[b * Sk:(b + 1) * Sk, :]
            mb = masks[b]
            acc = None
            for h in range(N_HEADS):
                lo, hi = h * D_K, (h + 1) * D_K
                s = jax.lax.dot_general(
                    qb[:, lo:hi], kb[:, lo:hi],
                    dimension_numbers=(((1,), (1,)), ((), ())),
                    preferred_element_type=jnp.float32) * scale
                s = jnp.where(mb == 0.0, NEG_INF, s)   # masked_fill(mask==0)
                s = s - jnp.max(s, axis=-1, keepdims=True)
                e = jnp.exp(s)
                p = e / jnp.sum(e, axis=-1, keepdims=True)
                ctx = jnp.dot(p, vb[:, lo:hi],
                              preferred_element_type=jnp.float32)   # (Sq, dk)
                part = jnp.dot(ctx, wo_l[lo:hi, :],
                               preferred_element_type=jnp.float32)  # (Sq, D)
                acc = part if acc is None else acc + part
            outs.append(acc + bo_l)
        return jnp.concatenate(outs, axis=0)           # (B*Sq, D)

    for l in range(L):                                 # static unroll (L=2)
        wqkv = wqkv_ref[l]      # (D, 3D)  fused Wq | Wk | Wv  (in, out)
        bqkv = bqkv_ref[l]      # (1, 3D)
        wo = wo_ref[l]          # (D, D)
        bo = bo_ref[l]          # (1, D)
        la = lna_ref[l]         # (3, D)  LayerNorm gains for the 3 sublayers
        lb = lnb_ref[l]         # (3, D)  LayerNorm biases

        # ---- sublayer 0: self-attention with tgt_mask (pre-norm residual) ---
        n0 = layer_norm(x, la[0:1, :], lb[0:1, :])
        qkv = jnp.dot(n0, wqkv, preferred_element_type=jnp.float32) + bqkv
        x = x + attention(qkv[:, 0:D], qkv[:, D:2 * D], qkv[:, 2 * D:3 * D],
                          tmasks, wo, bo, St, St)

        # ---- sublayer 1: "cross" attention with src_mask ---------------------
        # The reference module calls self.self_attn here too, so the same
        # fused QKV / out-proj weights are reused (src_attn never executes).
        n1 = layer_norm(x, la[1:2, :], lb[1:2, :])
        q1 = jnp.dot(n1, wqkv[:, 0:D],
                     preferred_element_type=jnp.float32) + bqkv[:, 0:D]
        kv1 = jnp.dot(mem, wqkv[:, D:3 * D],
                      preferred_element_type=jnp.float32) + bqkv[:, D:3 * D]
        x = x + attention(q1, kv1[:, 0:D], kv1[:, D:2 * D],
                          smasks, wo, bo, St, Ss)

        # ---- sublayer 2: position-wise feed-forward  w2(relu(w1(norm(x)))) --
        n2 = layer_norm(x, la[2:3, :], lb[2:3, :])
        h1 = jnp.maximum(
            jnp.dot(n2, w1_ref[l], preferred_element_type=jnp.float32)
            + b1_ref[l], 0.0)
        x = x + jnp.dot(h1, w2_ref[l], preferred_element_type=jnp.float32) \
              + b2_ref[l]

    # ---- final Decoder LayerNorm (exact division kept: approx reciprocal
    #      would eat into the 1e-4 tolerance for no measurable gain here) ----
    y = layer_norm(x, fna_ref[...], fnb_ref[...])
    for b in range(B):
        o_ref[b] = y[b * St:(b + 1) * St, :]
    # TODO(synk): dropout layers are identity here (eval / p=0 semantics).


# ============================== wrapper ======================================
def _stack_params(layer_params):
    """Stack per-layer params with a leading (N_LAYERS, ...) axis and fuse QKV."""
    wqkv = jnp.stack([jnp.concatenate(
        [p["w_attn"][0], p["w_attn"][1], p["w_attn"][2]], axis=1)
        for p in layer_params])                                   # (L, D, 3D)
    bqkv = jnp.stack([jnp.concatenate(
        [p["b_attn"][0], p["b_attn"][1], p["b_attn"][2]])[None, :]
        for p in layer_params])                                   # (L, 1, 3D)
    wo = jnp.stack([p["w_attn"][3] for p in layer_params])        # (L, D, D)
    bo = jnp.stack([p["b_attn"][3][None, :] for p in layer_params])  # (L, 1, D)
    lna = jnp.stack([p["ln_a"] for p in layer_params])            # (L, 3, D)
    lnb = jnp.stack([p["ln_b"] for p in layer_params])            # (L, 3, D)
    w1 = jnp.stack([p["w1"] for p in layer_params])               # (L, D, D_FF)
    b1 = jnp.stack([p["b1"] for p in layer_params])               # (L, 1, D_FF)
    w2 = jnp.stack([p["w2"] for p in layer_params])               # (L, D_FF, D)
    b2 = jnp.stack([p["b2"] for p in layer_params])               # (L, 1, D)
    return wqkv, bqkv, wo, bo, lna, lnb, w1, b1, w2, b2


@jax.jit
def decoder_forward(x, memory, src_mask, tgt_mask, layer_params, norm_a, norm_b):
    stacked = _stack_params(layer_params)
    n_in = 4 + len(stacked) + 2
    vmem = pl.BlockSpec(memory_space=pltpu.MemorySpace.VMEM)
    # Single launch, empty grid: x stays resident in VMEM across all layers +
    # the final norm; all weights (~70 KiB total) are DMA'd once.  Fits far
    # below the scoped-VMEM default on v5e/v6e/v7x, so no tiling needed.
    # TODO(synk): on v7x a batch grid axis marked "parallel" could split B
    # across the 2 TensorCores; at B=2, S=8 the fused single-step form wins
    # on v5e/v6e (1 TC would just serialize that axis).
    return pl.pallas_call(
        fused_decoder_kernel,
        out_shape=jax.ShapeDtypeStruct(x.shape, jnp.float32),
        in_specs=[vmem] * n_in,
        out_specs=vmem,
    )(x, memory, src_mask, tgt_mask, *stacked, norm_a, norm_b)


# ========================= pure-JAX reference ================================
def ref_decoder(x, memory, src_mask, tgt_mask, layer_params, norm_a, norm_b):
    def ln(v, a, b):
        mu = jnp.mean(v, -1, keepdims=True)
        var = jnp.sum((v - mu) ** 2, -1, keepdims=True) / (v.shape[-1] - 1.0)
        return a * (v - mu) / (jnp.sqrt(var) + EPS) + b

    def mha(q_in, kv_in, mask, W, Wb):
        q = q_in @ W[0] + Wb[0]
        k = kv_in @ W[1] + Wb[1]
        v = kv_in @ W[2] + Wb[2]
        Bn, Sq, D = q.shape
        Sk = k.shape[1]
        qh = q.reshape(Bn, Sq, N_HEADS, D_K).transpose(0, 2, 1, 3)
        kh = k.reshape(Bn, Sk, N_HEADS, D_K).transpose(0, 2, 1, 3)
        vh = v.reshape(Bn, Sk, N_HEADS, D_K).transpose(0, 2, 1, 3)
        s = jnp.einsum("bhqd,bhkd->bhqk", qh, kh) / math.sqrt(D_K)
        s = jnp.where(mask[:, None, :, :] == 0.0, -1e9, s)
        pw = jax.nn.softmax(s, axis=-1)
        o = jnp.einsum("bhqk,bhkd->bhqd", pw, vh).transpose(0, 2, 1, 3)
        o = o.reshape(Bn, Sq, D)
        return o @ W[3] + Wb[3]

    for p in layer_params:
        W, Wb, la, lb = p["w_attn"], p["b_attn"], p["ln_a"], p["ln_b"]
        n0 = ln(x, la[0], lb[0])
        x = x + mha(n0, n0, tgt_mask, W, Wb)
        n1 = ln(x, la[1], lb[1])
        x = x + mha(n1, memory, src_mask, W, Wb)
        n2 = ln(x, la[2], lb[2])
        x = x + (jnp.maximum(n2 @ p["w1"] + p["b1"], 0.0) @ p["w2"] + p["b2"])
    return ln(x, norm_a[0], norm_b[0])


# ================================ main =======================================
if __name__ == "__main__":
    B, S_T, S_S = 2, 8, 8
    key = jax.random.PRNGKey(0)

    def nrm(k, shape, scale=0.05):
        return jax.random.normal(k, shape, dtype=jnp.float32) * scale

    # deterministic per-layer parameters
    layer_params = []
    for l in range(N_LAYERS):
        kl = jax.random.fold_in(key, l)
        ks = jax.random.split(kl, 6)
        layer_params.append(dict(
            w_attn=nrm(ks[0], (4, D_MODEL, D_MODEL)),   # Wq, Wk, Wv, Wo (in,out)
            b_attn=nrm(ks[1], (4, D_MODEL)),
            ln_a=jnp.ones((3, D_MODEL), jnp.float32),
            ln_b=jnp.zeros((3, D_MODEL), jnp.float32),
            w1=nrm(ks[2], (D_MODEL, D_FF)),
            b1=nrm(ks[3], (1, D_FF)),
            w2=nrm(ks[4], (D_FF, D_MODEL)),
            b2=nrm(ks[5], (1, D_MODEL)),
        ))
    norm_a = jnp.ones((1, D_MODEL), jnp.float32)
    norm_b = jnp.zeros((1, D_MODEL), jnp.float32)

    kx, km = jax.random.split(jax.random.fold_in(key, 999))
    x = jax.random.normal(kx, (B, S_T, D_MODEL), dtype=jnp.float32)
    memory = jax.random.normal(km, (B, S_S, D_MODEL), dtype=jnp.float32)
    tgt_mask = jnp.tril(jnp.ones((S_T, S_T), jnp.float32))[None].repeat(B, axis=0)
    src_mask = jnp.ones((B, 1, S_S), jnp.float32).at[1, 0, S_S - 1].set(0.0)

    out = decoder_forward(x, memory, src_mask, tgt_mask,
                          layer_params, norm_a, norm_b)
    out = jax.block_until_ready(out)

    ref = ref_decoder(x, memory, src_mask, tgt_mask,
                      layer_params, norm_a, norm_b)
    assert out.shape == (B, S_T, D_MODEL)
    assert jnp.allclose(out, ref, rtol=1e-4, atol=1e-4), \
        float(jnp.max(jnp.abs(out - ref)))
    print("KERNEL_OK")
</pallas_src>

<mosaic_0001>
module attributes {stable_mosaic.version = 11 : i64} {
  func.func @fused_decoder_kernel(%arg0: memref<2x8x32xf32, #tpu.memory_space<vmem>>, %arg1: memref<2x8x32xf32, #tpu.memory_space<vmem>>, %arg2: memref<2x1x8xf32, #tpu.memory_space<vmem>>, %arg3: memref<2x8x8xf32, #tpu.memory_space<vmem>>, %arg4: memref<2x32x96xf32, #tpu.memory_space<vmem>>, %arg5: memref<2x1x96xf32, #tpu.memory_space<vmem>>, %arg6: memref<2x32x32xf32, #tpu.memory_space<vmem>>, %arg7: memref<2x1x32xf32, #tpu.memory_space<vmem>>, %arg8: memref<2x3x32xf32, #tpu.memory_space<vmem>>, %arg9: memref<2x3x32xf32, #tpu.memory_space<vmem>>, %arg10: memref<2x32x64xf32, #tpu.memory_space<vmem>>, %arg11: memref<2x1x64xf32, #tpu.memory_space<vmem>>, %arg12: memref<2x64x32xf32, #tpu.memory_space<vmem>>, %arg13: memref<2x1x32xf32, #tpu.memory_space<vmem>>, %arg14: memref<1x32xf32, #tpu.memory_space<vmem>>, %arg15: memref<1x32xf32, #tpu.memory_space<vmem>>, %arg16: memref<2x8x32xf32, #tpu.memory_space<vmem>>) attributes {dimension_semantics = [], scalar_prefetch = 0 : i64, scratch_operands = 0 : i64, tpu.core_type = #tpu.core_type<tc>} {
    %c0 = arith.constant 0 : index
    %c0_0 = arith.constant 0 : index
    %c0_1 = arith.constant 0 : index
    %0 = vector.load %arg0[%c0, %c0_0, %c0_1] : memref<2x8x32xf32, #tpu.memory_space<vmem>>, vector<1x8x32xf32>
    %1 = vector.shape_cast %0 : vector<1x8x32xf32> to vector<8x32xf32>
    %c1 = arith.constant 1 : index
    %c0_2 = arith.constant 0 : index
    %c0_3 = arith.constant 0 : index
    %2 = vector.load %arg0[%c1, %c0_2, %c0_3] : memref<2x8x32xf32, #tpu.memory_space<vmem>>, vector<1x8x32xf32>
    %3 = vector.shape_cast %2 : vector<1x8x32xf32> to vector<8x32xf32>
    %4 = tpu.concatenate %1, %3 in 0 : vector<8x32xf32>, vector<8x32xf32> -> vector<16x32xf32>
    %c0_4 = arith.constant 0 : index
    %c0_5 = arith.constant 0 : index
    %c0_6 = arith.constant 0 : index
    %5 = vector.load %arg1[%c0_4, %c0_5, %c0_6] : memref<2x8x32xf32, #tpu.memory_space<vmem>>, vector<1x8x32xf32>
    %6 = vector.shape_cast %5 : vector<1x8x32xf32> to vector<8x32xf32>
    %c1_7 = arith.constant 1 : index
    %c0_8 = arith.constant 0 : index
    %c0_9 = arith.constant 0 : index
    %7 = vector.load %arg1[%c1_7, %c0_8, %c0_9] : memref<2x8x32xf32, #tpu.memory_space<vmem>>, vector<1x8x32xf32>
    %8 = vector.shape_cast %7 : vector<1x8x32xf32> to vector<8x32xf32>
    %9 = tpu.concatenate %6, %8 in 0 : vector<8x32xf32>, vector<8x32xf32> -> vector<16x32xf32>
    %c0_10 = arith.constant 0 : index
    %c0_11 = arith.constant 0 : index
    %c0_12 = arith.constant 0 : index
    %10 = vector.load %arg3[%c0_10, %c0_11, %c0_12] : memref<2x8x8xf32, #tpu.memory_space<vmem>>, vector<1x8x8xf32>
    %11 = vector.shape_cast %10 : vector<1x8x8xf32> to vector<8x8xf32>
    %c1_13 = arith.constant 1 : index
    %c0_14 = arith.constant 0 : index
    %c0_15 = arith.constant 0 : index
    %12 = vector.load %arg3[%c1_13, %c0_14, %c0_15] : memref<2x8x8xf32, #tpu.memory_space<vmem>>, vector<1x8x8xf32>
    %13 = vector.shape_cast %12 : vector<1x8x8xf32> to vector<8x8xf32>
    %c0_16 = arith.constant 0 : index
    %c0_17 = arith.constant 0 : index
    %c0_18 = arith.constant 0 : index
    %14 = vector.load %arg2[%c0_16, %c0_17, %c0_18] : memref<2x1x8xf32, #tpu.memory_space<vmem>>, vector<1x1x8xf32>
    %15 = vector.shape_cast %14 : vector<1x1x8xf32> to vector<1x8xf32>
    %c1_19 = arith.constant 1 : index
    %c0_20 = arith.constant 0 : index
    %c0_21 = arith.constant 0 : index
    %16 = vector.load %arg2[%c1_19, %c0_20, %c0_21] : memref<2x1x8xf32, #tpu.memory_space<vmem>>, vector<1x1x8xf32>
    %17 = vector.shape_cast %16 : vector<1x1x8xf32> to vector<1x8xf32>
    %c0_22 = arith.constant 0 : index
    %c0_23 = arith.constant 0 : index
    %c0_24 = arith.constant 0 : index
    %18 = vector.load %arg4[%c0_22, %c0_23, %c0_24] : memref<2x32x96xf32, #tpu.memory_space<vmem>>, vector<1x32x96xf32>
    %19 = vector.shape_cast %18 : vector<1x32x96xf32> to vector<32x96xf32>
    %c0_25 = arith.constant 0 : index
    %c0_26 = arith.constant 0 : index
    %c0_27 = arith.constant 0 : index
    %20 = vector.load %arg5[%c0_25, %c0_26, %c0_27] : memref<2x1x96xf32, #tpu.memory_space<vmem>>, vector<1x1x96xf32>
    %21 = vector.shape_cast %20 : vector<1x1x96xf32> to vector<1x96xf32>
    %c0_28 = arith.constant 0 : index
    %c0_29 = arith.constant 0 : index
    %c0_30 = arith.constant 0 : index
    %22 = vector.load %arg6[%c0_28, %c0_29, %c0_30] : memref<2x32x32xf32, #tpu.memory_space<vmem>>, vector<1x32x32xf32>
    %23 = vector.shape_cast %22 : vector<1x32x32xf32> to vector<32x32xf32>
    %c0_31 = arith.constant 0 : index
    %c0_32 = arith.constant 0 : index
    %c0_33 = arith.constant 0 : index
    %24 = vector.load %arg7[%c0_31, %c0_32, %c0_33] : memref<2x1x32xf32, #tpu.memory_space<vmem>>, vector<1x1x32xf32>
    %25 = vector.shape_cast %24 : vector<1x1x32xf32> to vector<1x32xf32>
    %c0_34 = arith.constant 0 : index
    %c0_35 = arith.constant 0 : index
    %c0_36 = arith.constant 0 : index
    %26 = vector.load %arg8[%c0_34, %c0_35, %c0_36] : memref<2x3x32xf32, #tpu.memory_space<vmem>>, vector<1x3x32xf32>
    %27 = vector.shape_cast %26 : vector<1x3x32xf32> to vector<3x32xf32>
    %c0_37 = arith.constant 0 : index
    %c0_38 = arith.constant 0 : index
    %c0_39 = arith.constant 0 : index
    %28 = vector.load %arg9[%c0_37, %c0_38, %c0_39] : memref<2x3x32xf32, #tpu.memory_space<vmem>>, vector<1x3x32xf32>
    %29 = vector.shape_cast %28 : vector<1x3x32xf32> to vector<3x32xf32>
    %30 = vector.extract_strided_slice %27 {offsets = [0, 0], sizes = [1, 32], strides = [1, 1]} : vector<3x32xf32> to vector<1x32xf32>
    %31 = vector.extract_strided_slice %29 {offsets = [0, 0], sizes = [1, 32], strides = [1, 1]} : vector<3x32xf32> to vector<1x32xf32>
    %cst = arith.constant dense<0.000000e+00> : vector<16xf32>
    %32 = vector.multi_reduction <add>, %4, %cst [1] : vector<16x32xf32> to vector<16xf32>
    %33 = vector.shape_cast %32 : vector<16xf32> to vector<16x1xf32>
    %cst_40 = arith.constant 3.200000e+01 : f32
    %34 = vector.broadcast %cst_40 : f32 to vector<16x1xf32>
    %35 = arith.divf %33, %34 : vector<16x1xf32>
    %36 = vector.broadcast %35 : vector<16x1xf32> to vector<16x32xf32>
    %37 = arith.subf %4, %36 : vector<16x32xf32>
    %38 = arith.mulf %37, %37 : vector<16x32xf32>
    %cst_41 = arith.constant dense<0.000000e+00> : vector<16xf32>
    %39 = vector.multi_reduction <add>, %38, %cst_41 [1] : vector<16x32xf32> to vector<16xf32>
    %40 = vector.shape_cast %39 : vector<16xf32> to vector<16x1xf32>
    %cst_42 = arith.constant 3.100000e+01 : f32
    %41 = vector.broadcast %cst_42 : f32 to vector<16x1xf32>
    %42 = arith.divf %40, %41 : vector<16x1xf32>
    %43 = math.sqrt %42 : vector<16x1xf32>
    %44 = vector.broadcast %35 : vector<16x1xf32> to vector<16x32xf32>
    %45 = arith.subf %4, %44 : vector<16x32xf32>
    %46 = vector.broadcast %30 : vector<1x32xf32> to vector<16x32xf32>
    %47 = arith.mulf %46, %45 : vector<16x32xf32>
    %cst_43 = arith.constant 9.99999997E-7 : f32
    %48 = vector.broadcast %cst_43 : f32 to vector<16x1xf32>
    %49 = arith.addf %43, %48 : vector<16x1xf32>
    %50 = vector.broadcast %49 : vector<16x1xf32> to vector<16x32xf32>
    %51 = arith.divf %47, %50 : vector<16x32xf32>
    %52 = vector.broadcast %31 : vector<1x32xf32> to vector<16x32xf32>
    %53 = arith.addf %51, %52 : vector<16x32xf32>
    %cst_44 = arith.constant dense<0.000000e+00> : vector<16x96xf32>
    %54 = tpu.matmul %53, %19, %cst_44 {dimension_numbers = #tpu.dot_dimension_numbers<[1], [0], [0], [1], [0, 0, 1, 1], [], []>} : vector<16x32xf32>, vector<32x96xf32>, vector<16x96xf32> -> vector<16x96xf32>
    %55 = vector.broadcast %21 : vector<1x96xf32> to vector<16x96xf32>
    %56 = arith.addf %54, %55 : vector<16x96xf32>
    %57 = vector.extract_strided_slice %56 {offsets = [0, 0], sizes = [16, 32], strides = [1, 1]} : vector<16x96xf32> to vector<16x32xf32>
    %58 = vector.extract_strided_slice %56 {offsets = [0, 32], sizes = [16, 32], strides = [1, 1]} : vector<16x96xf32> to vector<16x32xf32>
    %59 = vector.extract_strided_slice %56 {offsets = [0, 64], sizes = [16, 32], strides = [1, 1]} : vector<16x96xf32> to vector<16x32xf32>
    %60 = vector.extract_strided_slice %57 {offsets = [0, 0], sizes = [8, 32], strides = [1, 1]} : vector<16x32xf32> to vector<8x32xf32>
    %61 = vector.extract_strided_slice %58 {offsets = [0, 0], sizes = [8, 32], strides = [1, 1]} : vector<16x32xf32> to vector<8x32xf32>
    %62 = vector.extract_strided_slice %59 {offsets = [0, 0], sizes = [8, 32], strides = [1, 1]} : vector<16x32xf32> to vector<8x32xf32>
    %63 = vector.extract_strided_slice %60 {offsets = [0, 0], sizes = [8, 8], strides = [1, 1]} : vector<8x32xf32> to vector<8x8xf32>
    %64 = vector.extract_strided_slice %61 {offsets = [0, 0], sizes = [8, 8], strides = [1, 1]} : vector<8x32xf32> to vector<8x8xf32>
    %cst_45 = arith.constant dense<0.000000e+00> : vector<8x8xf32>
    %65 = tpu.matmul %63, %64, %cst_45 {dimension_numbers = #tpu.dot_dimension_numbers<[1], [1], [0], [0], [0, 0, 1, 0], [], []>} : vector<8x8xf32>, vector<8x8xf32>, vector<8x8xf32> -> vector<8x8xf32>
    %cst_46 = arith.constant 0.353553385 : f32
    %66 = vector.broadcast %cst_46 : f32 to vector<8x8xf32>
    %67 = arith.mulf %65, %66 : vector<8x8xf32>
    %cst_47 = arith.constant 0.000000e+00 : f32
    %68 = vector.broadcast %cst_47 : f32 to vector<8x8xf32>
    %69 = arith.cmpf oeq, %11, %68 : vector<8x8xf32>
    %cst_48 = arith.constant -1.000000e+09 : f32
    %70 = vector.broadcast %cst_48 : f32 to vector<8x8xf32>
    %71 = arith.select %69, %70, %67 : vector<8x8xi1>, vector<8x8xf32>
    %cst_49 = arith.constant dense<0xFF800000> : vector<8xf32>
    %72 = vector.multi_reduction <maximumf>, %71, %cst_49 [1] : vector<8x8xf32> to vector<8xf32>
    %73 = vector.shape_cast %72 : vector<8xf32> to vector<8x1xf32>
    %74 = vector.broadcast %73 : vector<8x1xf32> to vector<8x8xf32>
    %75 = arith.subf %71, %74 : vector<8x8xf32>
    %76 = math.exp %75 : vector<8x8xf32>
    %cst_50 = arith.constant dense<0.000000e+00> : vector<8xf32>
    %77 = vector.multi_reduction <add>, %76, %cst_50 [1] : vector<8x8xf32> to vector<8xf32>
    %78 = vector.shape_cast %77 : vector<8xf32> to vector<8x1xf32>
    %79 = vector.broadcast %78 : vector<8x1xf32> to vector<8x8xf32>
    %80 = arith.divf %76, %79 : vector<8x8xf32>
    %81 = vector.extract_strided_slice %62 {offsets = [0, 0], sizes = [8, 8], strides = [1, 1]} : vector<8x32xf32> to vector<8x8xf32>
    %cst_51 = arith.constant dense<0.000000e+00> : vector<8x8xf32>
    %82 = tpu.matmul %80, %81, %cst_51 {dimension_numbers = #tpu.dot_dimension_numbers<[1], [0], [0], [1], [0, 0, 1, 1], [], []>} : vector<8x8xf32>, vector<8x8xf32>, vector<8x8xf32> -> vector<8x8xf32>
    %83 = vector.extract_strided_slice %23 {offsets = [0, 0], sizes = [8, 32], strides = [1, 1]} : vector<32x32xf32> to vector<8x32xf32>
    %cst_52 = arith.constant dense<0.000000e+00> : vector<8x32xf32>
    %84 = tpu.matmul %82, %83, %cst_52 {dimension_numbers = #tpu.dot_dimension_numbers<[1], [0], [0], [1], [0, 0, 1, 1], [], []>} : vector<8x8xf32>, vector<8x32xf32>, vector<8x32xf32> -> vector<8x32xf32>
    %85 = vector.extract_strided_slice %60 {offsets = [0, 8], sizes = [8, 8], strides = [1, 1]} : vector<8x32xf32> to vector<8x8xf32>
    %86 = vector.extract_strided_slice %61 {offsets = [0, 8], sizes = [8, 8], strides = [1, 1]} : vector<8x32xf32> to vector<8x8xf32>
    %cst_53 = arith.constant dense<0.000000e+00> : vector<8x8xf32>
    %87 = tpu.matmul %85, %86, %cst_53 {dimension_numbers = #tpu.dot_dimension_numbers<[1], [1], [0], [0], [0, 0, 1, 0], [], []>} : vector<8x8xf32>, vector<8x8xf32>, vector<8x8xf32> -> vector<8x8xf32>
    %cst_54 = arith.constant 0.353553385 : f32
    %88 = vector.broadcast %cst_54 : f32 to vector<8x8xf32>
    %89 = arith.mulf %87, %88 : vector<8x8xf32>
    %cst_55 = arith.constant 0.000000e+00 : f32
    %90 = vector.broadcast %cst_55 : f32 to vector<8x8xf32>
    %91 = arith.cmpf oeq, %11, %90 : vector<8x8xf32>
    %cst_56 = arith.constant -1.000000e+09 : f32
    %92 = vector.broadcast %cst_56 : f32 to vector<8x8xf32>
    %93 = arith.select %91, %92, %89 : vector<8x8xi1>, vector<8x8xf32>
    %cst_57 = arith.constant dense<0xFF800000> : vector<8xf32>
    %94 = vector.multi_reduction <maximumf>, %93, %cst_57 [1] : vector<8x8xf32> to vector<8xf32>
    %95 = vector.shape_cast %94 : vector<8xf32> to vector<8x1xf32>
    %96 = vector.broadcast %95 : vector<8x1xf32> to vector<8x8xf32>
    %97 = arith.subf %93, %96 : vector<8x8xf32>
    %98 = math.exp %97 : vector<8x8xf32>
    %cst_58 = arith.constant dense<0.000000e+00> : vector<8xf32>
    %99 = vector.multi_reduction <add>, %98, %cst_58 [1] : vector<8x8xf32> to vector<8xf32>
    %100 = vector.shape_cast %99 : vector<8xf32> to vector<8x1xf32>
    %101 = vector.broadcast %100 : vector<8x1xf32> to vector<8x8xf32>
    %102 = arith.divf %98, %101 : vector<8x8xf32>
    %103 = vector.extract_strided_slice %62 {offsets = [0, 8], sizes = [8, 8], strides = [1, 1]} : vector<8x32xf32> to vector<8x8xf32>
    %cst_59 = arith.constant dense<0.000000e+00> : vector<8x8xf32>
    %104 = tpu.matmul %102, %103, %cst_59 {dimension_numbers = #tpu.dot_dimension_numbers<[1], [0], [0], [1], [0, 0, 1, 1], [], []>} : vector<8x8xf32>, vector<8x8xf32>, vector<8x8xf32> -> vector<8x8xf32>
    %105 = vector.extract_strided_slice %23 {offsets = [8, 0], sizes = [8, 32], strides = [1, 1]} : vector<32x32xf32> to vector<8x32xf32>
    %cst_60 = arith.constant dense<0.000000e+00> : vector<8x32xf32>
    %106 = tpu.matmul %104, %105, %cst_60 {dimension_numbers = #tpu.dot_dimension_numbers<[1], [0], [0], [1], [0, 0, 1, 1], [], []>} : vector<8x8xf32>, vector<8x32xf32>, vector<8x32xf32> -> vector<8x32xf32>
    %107 = arith.addf %84, %106 : vector<8x32xf32>
    %108 = vector.extract_strided_slice %60 {offsets = [0, 16], sizes = [8, 8], strides = [1, 1]} : vector<8x32xf32> to vector<8x8xf32>
    %109 = vector.extract_strided_slice %61 {offsets = [0, 16], sizes = [8, 8], strides = [1, 1]} : vector<8x32xf32> to vector<8x8xf32>
    %cst_61 = arith.constant dense<0.000000e+00> : vector<8x8xf32>
    %110 = tpu.matmul %108, %109, %cst_61 {dimension_numbers = #tpu.dot_dimension_numbers<[1], [1], [0], [0], [0, 0, 1, 0], [], []>} : vector<8x8xf32>, vector<8x8xf32>, vector<8x8xf32> -> vector<8x8xf32>
    %cst_62 = arith.constant 0.353553385 : f32
    %111 = vector.broadcast %cst_62 : f32 to vector<8x8xf32>
    %112 = arith.mulf %110, %111 : vector<8x8xf32>
    %cst_63 = arith.constant 0.000000e+00 : f32
    %113 = vector.broadcast %cst_63 : f32 to vector<8x8xf32>
    %114 = arith.cmpf oeq, %11, %113 : vector<8x8xf32>
    %cst_64 = arith.constant -1.000000e+09 : f32
    %115 = vector.broadcast %cst_64 : f32 to vector<8x8xf32>
    %116 = arith.select %114, %115, %112 : vector<8x8xi1>, vector<8x8xf32>
    %cst_65 = arith.constant dense<0xFF800000> : vector<8xf32>
    %117 = vector.multi_reduction <maximumf>, %116, %cst_65 [1] : vector<8x8xf32> to vector<8xf32>
    %118 = vector.shape_cast %117 : vector<8xf32> to vector<8x1xf32>
    %119 = vector.broadcast %118 : vector<8x1xf32> to vector<8x8xf32>
    %120 = arith.subf %116, %119 : vector<8x8xf32>
    %121 = math.exp %120 : vector<8x8xf32>
    %cst_66 = arith.constant dense<0.000000e+00> : vector<8xf32>
    %122 = vector.multi_reduction <add>, %121, %cst_66 [1] : vector<8x8xf32> to vector<8xf32>
    %123 = vector.shape_cast %122 : vector<8xf32> to vector<8x1xf32>
    %124 = vector.broadcast %123 : vector<8x1xf32> to vector<8x8xf32>
    %125 = arith.divf %121, %124 : vector<8x8xf32>
    %126 = vector.extract_strided_slice %62 {offsets = [0, 16], sizes = [8, 8], strides = [1, 1]} : vector<8x32xf32> to vector<8x8xf32>
    %cst_67 = arith.constant dense<0.000000e+00> : vector<8x8xf32>
    %127 = tpu.matmul %125, %126, %cst_67 {dimension_numbers = #tpu.dot_dimension_numbers<[1], [0], [0], [1], [0, 0, 1, 1], [], []>} : vector<8x8xf32>, vector<8x8xf32>, vector<8x8xf32> -> vector<8x8xf32>
    %128 = vector.extract_strided_slice %23 {offsets = [16, 0], sizes = [8, 32], strides = [1, 1]} : vector<32x32xf32> to vector<8x32xf32>
    %cst_68 = arith.constant dense<0.000000e+00> : vector<8x32xf32>
    %129 = tpu.matmul %127, %128, %cst_68 {dimension_numbers = #tpu.dot_dimension_numbers<[1], [0], [0], [1], [0, 0, 1, 1], [], []>} : vector<8x8xf32>, vector<8x32xf32>, vector<8x32xf32> -> vector<8x32xf32>
    %130 = arith.addf %107, %129 : vector<8x32xf32>
    %131 = vector.extract_strided_slice %60 {offsets = [0, 24], sizes = [8, 8], strides = [1, 1]} : vector<8x32xf32> to vector<8x8xf32>
    %132 = vector.extract_strided_slice %61 {offsets = [0, 24], sizes = [8, 8], strides = [1, 1]} : vector<8x32xf32> to vector<8x8xf32>
    %cst_69 = arith.constant dense<0.000000e+00> : vector<8x8xf32>
    %133 = tpu.matmul %131, %132, %cst_69 {dimension_numbers = #tpu.dot_dimension_numbers<[1], [1], [0], [0], [0, 0, 1, 0], [], []>} : vector<8x8xf32>, vector<8x8xf32>, vector<8x8xf32> -> vector<8x8xf32>
    %cst_70 = arith.constant 0.353553385 : f32
    %134 = vector.broadcast %cst_70 : f32 to vector<8x8xf32>
    %135 = arith.mulf %133, %134 : vector<8x8xf32>
    %cst_71 = arith.constant 0.000000e+00 : f32
    %136 = vector.broadcast %cst_71 : f32 to vector<8x8xf32>
    %137 = arith.cmpf oeq, %11, %136 : vector<8x8xf32>
    %cst_72 = arith.constant -1.000000e+09 : f32
    %138 = vector.broadcast %cst_72 : f32 to vector<8x8xf32>
    %139 = arith.select %137, %138, %135 : vector<8x8xi1>, vector<8x8xf32>
    %cst_73 = arith.constant dense<0xFF800000> : vector<8xf32>
    %140 = vector.multi_reduction <maximumf>, %139, %cst_73 [1] : vector<8x8xf32> to vector<8xf32>
    %141 = vector.shape_cast %140 : vector<8xf32> to vector<8x1xf32>
    %142 = vector.broadcast %141 : vector<8x1xf32> to vector<8x8xf32>
    %143 = arith.subf %139, %142 : vector<8x8xf32>
    %144 = math.exp %143 : vector<8x8xf32>
    %cst_74 = arith.constant dense<0.000000e+00> : vector<8xf32>
    %145 = vector.multi_reduction <add>, %144, %cst_74 [1] : vector<8x8xf32> to vector<8xf32>
    %146 = vector.shape_cast %145 : vector<8xf32> to vector<8x1xf32>
    %147 = vector.broadcast %146 : vector<8x1xf32> to vector<8x8xf32>
    %148 = arith.divf %144, %147 : vector<8x8xf32>
    %149 = vector.extract_strided_slice %62 {offsets = [0, 24], sizes = [8, 8], strides = [1, 1]} : vector<8x32xf32> to vector<8x8xf32>
    %cst_75 = arith.constant dense<0.000000e+00> : vector<8x8xf32>
    %150 = tpu.matmul %148, %149, %cst_75 {dimension_numbers = #tpu.dot_dimension_numbers<[1], [0], [0], [1], [0, 0, 1, 1], [], []>} : vector<8x8xf32>, vector<8x8xf32>, vector<8x8xf32> -> vector<8x8xf32>
    %151 = vector.extract_strided_slice %23 {offsets = [24, 0], sizes = [8, 32], strides = [1, 1]} : vector<32x32xf32> to vector<8x32xf32>
    %cst_76 = arith.constant dense<0.000000e+00> : vector<8x32xf32>
    %152 = tpu.matmul %150, %151, %cst_76 {dimension_numbers = #tpu.dot_dimension_numbers<[1], [0], [0], [1], [0, 0, 1, 1], [], []>} : vector<8x8xf32>, vector<8x32xf32>, vector<8x32xf32> -> vector<8x32xf32>
    %153 = arith.addf %130, %152 : vector<8x32xf32>
    %154 = vector.broadcast %25 : vector<1x32xf32> to vector<8x32xf32>
    %155 = arith.addf %153, %154 : vector<8x32xf32>
    %156 = vector.extract_strided_slice %57 {offsets = [8, 0], sizes = [8, 32], strides = [1, 1]} : vector<16x32xf32> to vector<8x32xf32>
    %157 = vector.extract_strided_slice %58 {offsets = [8, 0], sizes = [8, 32], strides = [1, 1]} : vector<16x32xf32> to vector<8x32xf32>
    %158 = vector.extract_strided_slice %59 {offsets = [8, 0], sizes = [8, 32], strides = [1, 1]} : vector<16x32xf32> to vector<8x32xf32>
    %159 = vector.extract_strided_slice %156 {offsets = [0, 0], sizes = [8, 8], strides = [1, 1]} : vector<8x32xf32> to vector<8x8xf32>
    %160 = vector.extract_strided_slice %157 {offsets = [0, 0], sizes = [8, 8], strides = [1, 1]} : vector<8x32xf32> to vector<8x8xf32>
    %cst_77 = arith.constant dense<0.000000e+00> : vector<8x8xf32>
    %161 = tpu.matmul %159, %160, %cst_77 {dimension_numbers = #tpu.dot_dimension_numbers<[1], [1], [0], [0], [0, 0, 1, 0], [], []>} : vector<8x8xf32>, vector<8x8xf32>, vector<8x8xf32> -> vector<8x8xf32>
    %cst_78 = arith.constant 0.353553385 : f32
    %162 = vector.broadcast %cst_78 : f32 to vector<8x8xf32>
    %163 = arith.mulf %161, %162 : vector<8x8xf32>
    %cst_79 = arith.constant 0.000000e+00 : f32
    %164 = vector.broadcast %cst_79 : f32 to vector<8x8xf32>
    %165 = arith.cmpf oeq, %13, %164 : vector<8x8xf32>
    %cst_80 = arith.constant -1.000000e+09 : f32
    %166 = vector.broadcast %cst_80 : f32 to vector<8x8xf32>
    %167 = arith.select %165, %166, %163 : vector<8x8xi1>, vector<8x8xf32>
    %cst_81 = arith.constant dense<0xFF800000> : vector<8xf32>
    %168 = vector.multi_reduction <maximumf>, %167, %cst_81 [1] : vector<8x8xf32> to vector<8xf32>
    %169 = vector.shape_cast %168 : vector<8xf32> to vector<8x1xf32>
    %170 = vector.broadcast %169 : vector<8x1xf32> to vector<8x8xf32>
    %171 = arith.subf %167, %170 : vector<8x8xf32>
    %172 = math.exp %171 : vector<8x8xf32>
    %cst_82 = arith.constant dense<0.000000e+00> : vector<8xf32>
    %173 = vector.multi_reduction <add>, %172, %cst_82 [1] : vector<8x8xf32> to vector<8xf32>
    %174 = vector.shape_cast %173 : vector<8xf32> to vector<8x1xf32>
    %175 = vector.broadcast %174 : vector<8x1xf32> to vector<8x8xf32>
    %176 = arith.divf %172, %175 : vector<8x8xf32>
    %177 = vector.extract_strided_slice %158 {offsets = [0, 0], sizes = [8, 8], strides = [1, 1]} : vector<8x32xf32> to vector<8x8xf32>
    %cst_83 = arith.constant dense<0.000000e+00> : vector<8x8xf32>
    %178 = tpu.matmul %176, %177, %cst_83 {dimension_numbers = #tpu.dot_dimension_numbers<[1], [0], [0], [1], [0, 0, 1, 1], [], []>} : vector<8x8xf32>, vector<8x8xf32>, vector<8x8xf32> -> vector<8x8xf32>
    %179 = vector.extract_strided_slice %23 {offsets = [0, 0], sizes = [8, 32], strides = [1, 1]} : vector<32x32xf32> to vector<8x32xf32>
    %cst_84 = arith.constant dense<0.000000e+00> : vector<8x32xf32>
    %180 = tpu.matmul %178, %179, %cst_84 {dimension_numbers = #tpu.dot_dimension_numbers<[1], [0], [0], [1], [0, 0, 1, 1], [], []>} : vector<8x8xf32>, vector<8x32xf32>, vector<8x32xf32> -> vector<8x32xf32>
    %181 = vector.extract_strided_slice %156 {offsets = [0, 8], sizes = [8, 8], strides = [1, 1]} : vector<8x32xf32> to vector<8x8xf32>
    %182 = vector.extract_strided_slice %157 {offsets = [0, 8], sizes = [8, 8], strides = [1, 1]} : vector<8x32xf32> to vector<8x8xf32>
    %cst_85 = arith.constant dense<0.000000e+00> : vector<8x8xf32>
    %183 = tpu.matmul %181, %182, %cst_85 {dimension_numbers = #tpu.dot_dimension_numbers<[1], [1], [0], [0], [0, 0, 1, 0], [], []>} : vector<8x8xf32>, vector<8x8xf32>, vector<8x8xf32> -> vector<8x8xf32>
    %cst_86 = arith.constant 0.353553385 : f32
    %184 = vector.broadcast %cst_86 : f32 to vector<8x8xf32>
    %185 = arith.mulf %183, %184 : vector<8x8xf32>
    %cst_87 = arith.constant 0.000000e+00 : f32
    %186 = vector.broadcast %cst_87 : f32 to vector<8x8xf32>
    %187 = arith.cmpf oeq, %13, %186 : vector<8x8xf32>
    %cst_88 = arith.constant -1.000000e+09 : f32
    %188 = vector.broadcast %cst_88 : f32 to vector<8x8xf32>
    %189 = arith.select %187, %188, %185 : vector<8x8xi1>, vector<8x8xf32>
    %cst_89 = arith.constant dense<0xFF800000> : vector<8xf32>
    %190 = vector.multi_reduction <maximumf>, %189, %cst_89 [1] : vector<8x8xf32> to vector<8xf32>
    %191 = vector.shape_cast %190 : vector<8xf32> to vector<8x1xf32>
    %192 = vector.broadcast %191 : vector<8x1xf32> to vector<8x8xf32>
    %193 = arith.subf %189, %192 : vector<8x8xf32>
    %194 = math.exp %193 : vector<8x8xf32>
    %cst_90 = arith.constant dense<0.000000e+00> : vector<8xf32>
    %195 = vector.multi_reduction <add>, %194, %cst_90 [1] : vector<8x8xf32> to vector<8xf32>
    %196 = vector.shape_cast %195 : vector<8xf32> to vector<8x1xf32>
    %197 = vector.broadcast %196 : vector<8x1xf32> to vector<8x8xf32>
    %198 = arith.divf %194, %197 : vector<8x8xf32>
    %199 = vector.extract_strided_slice %158 {offsets = [0, 8], sizes = [8, 8], strides = [1, 1]} : vector<8x32xf32> to vector<8x8xf32>
    %cst_91 = arith.constant dense<0.000000e+00> : vector<8x8xf32>
    %200 = tpu.matmul %198, %199, %cst_91 {dimension_numbers = #tpu.dot_dimension_numbers<[1], [0], [0], [1], [0, 0, 1, 1], [], []>} : vector<8x8xf32>, vector<8x8xf32>, vector<8x8xf32> -> vector<8x8xf32>
    %201 = vector.extract_strided_slice %23 {offsets = [8, 0], sizes = [8, 32], strides = [1, 1]} : vector<32x32xf32> to vector<8x32xf32>
    %cst_92 = arith.constant dense<0.000000e+00> : vector<8x32xf32>
    %202 = tpu.matmul %200, %201, %cst_92 {dimension_numbers = #tpu.dot_dimension_numbers<[1], [0], [0], [1], [0, 0, 1, 1], [], []>} : vector<8x8xf32>, vector<8x32xf32>, vector<8x32xf32> -> vector<8x32xf32>
    %203 = arith.addf %180, %202 : vector<8x32xf32>
    %204 = vector.extract_strided_slice %156 {offsets = [0, 16], sizes = [8, 8], strides = [1, 1]} : vector<8x32xf32> to vector<8x8xf32>
    %205 = vector.extract_strided_slice %157 {offsets = [0, 16], sizes = [8, 8], strides = [1, 1]} : vector<8x32xf32> to vector<8x8xf32>
    %cst_93 = arith.constant dense<0.000000e+00> : vector<8x8xf32>
    %206 = tpu.matmul %204, %205, %cst_93 {dimension_numbers = #tpu.dot_dimension_numbers<[1], [1], [0], [0], [0, 0, 1, 0], [], []>} : vector<8x8xf32>, vector<8x8xf32>, vector<8x8xf32> -> vector<8x8xf32>
    %cst_94 = arith.constant 0.353553385 : f32
    %207 = vector.broadcast %cst_94 : f32 to vector<8x8xf32>
    %208 = arith.mulf %206, %207 : vector<8x8xf32>
    %cst_95 = arith.constant 0.000000e+00 : f32
    %209 = vector.broadcast %cst_95 : f32 to vector<8x8xf32>
    %210 = arith.cmpf oeq, %13, %209 : vector<8x8xf32>
    %cst_96 = arith.constant -1.000000e+09 : f32
    %211 = vector.broadcast %cst_96 : f32 to vector<8x8xf32>
    %212 = arith.select %210, %211, %208 : vector<8x8xi1>, vector<8x8xf32>
    %cst_97 = arith.constant dense<0xFF800000> : vector<8xf32>
    %213 = vector.multi_reduction <maximumf>, %212, %cst_97 [1] : vector<8x8xf32> to vector<8xf32>
    %214 = vector.shape_cast %213 : vector<8xf32> to vector<8x1xf32>
    %215 = vector.broadcast %214 : vector<8x1xf32> to vector<8x8xf32>
    %216 = arith.subf %212, %215 : vector<8x8xf32>
    %217 = math.exp %216 : vector<8x8xf32>
    %cst_98 = arith.constant dense<0.000000e+00> : vector<8xf32>
    %218 = vector.multi_reduction <add>, %217, %cst_98 [1] : vector<8x8xf32> to vector<8xf32>
    %219 = vector.shape_cast %218 : vector<8xf32> to vector<8x1xf32>
    %220 = vector.broadcast %219 : vector<8x1xf32> to vector<8x8xf32>
    %221 = arith.divf %217, %220 : vector<8x8xf32>
    %222 = vector.extract_strided_slice %158 {offsets = [0, 16], sizes = [8, 8], strides = [1, 1]} : vector<8x32xf32> to vector<8x8xf32>
    %cst_99 = arith.constant dense<0.000000e+00> : vector<8x8xf32>
    %223 = tpu.matmul %221, %222, %cst_99 {dimension_numbers = #tpu.dot_dimension_numbers<[1], [0], [0], [1], [0, 0, 1, 1], [], []>} : vector<8x8xf32>, vector<8x8xf32>, vector<8x8xf32> -> vector<8x8xf32>
    %224 = vector.extract_strided_slice %23 {offsets = [16, 0], sizes = [8, 32], strides = [1, 1]} : vector<32x32xf32> to vector<8x32xf32>
    %cst_100 = arith.constant dense<0.000000e+00> : vector<8x32xf32>
    %225 = tpu.matmul %223, %224, %cst_100 {dimension_numbers = #tpu.dot_dimension_numbers<[1], [0], [0], [1], [0, 0, 1, 1], [], []>} : vector<8x8xf32>, vector<8x32xf32>, vector<8x32xf32> -> vector<8x32xf32>
    %226 = arith.addf %203, %225 : vector<8x32xf32>
    %227 = vector.extract_strided_slice %156 {offsets = [0, 24], sizes = [8, 8], strides = [1, 1]} : vector<8x32xf32> to vector<8x8xf32>
    %228 = vector.extract_strided_slice %157 {offsets = [0, 24], sizes = [8, 8], strides = [1, 1]} : vector<8x32xf32> to vector<8x8xf32>
    %cst_101 = arith.constant dense<0.000000e+00> : vector<8x8xf32>
    %229 = tpu.matmul %227, %228, %cst_101 {dimension_numbers = #tpu.dot_dimension_numbers<[1], [1], [0], [0], [0, 0, 1, 0], [], []>} : vector<8x8xf32>, vector<8x8xf32>, vector<8x8xf32> -> vector<8x8xf32>
    %cst_102 = arith.constant 0.353553385 : f32
    %230 = vector.broadcast %cst_102 : f32 to vector<8x8xf32>
    %231 = arith.mulf %229, %230 : vector<8x8xf32>
    %cst_103 = arith.constant 0.000000e+00 : f32
    %232 = vector.broadcast %cst_103 : f32 to vector<8x8xf32>
    %233 = arith.cmpf oeq, %13, %232 : vector<8x8xf32>
    %cst_104 = arith.constant -1.000000e+09 : f32
    %234 = vector.broadcast %cst_104 : f32 to vector<8x8xf32>
    %235 = arith.select %233, %234, %231 : vector<8x8xi1>, vector<8x8xf32>
    %cst_105 = arith.constant dense<0xFF800000> : vector<8xf32>
    %236 = vector.multi_reduction <maximumf>, %235, %cst_105 [1] : vector<8x8xf32> to vector<8xf32>
    %237 = vector.shape_cast %236 : vector<8xf32> to vector<8x1xf32>
    %238 = vector.broadcast %237 : vector<8x1xf32> to vector<8x8xf32>
    %239 = arith.subf %235, %238 : vector<8x8xf32>
    %240 = math.exp %239 : vector<8x8xf32>
    %cst_106 = arith.constant dense<0.000000e+00> : vector<8xf32>
    %241 = vector.multi_reduction <add>, %240, %cst_106 [1] : vector<8x8xf32> to vector<8xf32>
    %242 = vector.shape_cast %241 : vector<8xf32> to vector<8x1xf32>
    %243 = vector.broadcast %242 : vector<8x1xf32> to vector<8x8xf32>
    %244 = arith.divf %240, %243 : vector<8x8xf32>
    %245 = vector.extract_strided_slice %158 {offsets = [0, 24], sizes = [8, 8], strides = [1, 1]} : vector<8x32xf32> to vector<8x8xf32>
    %cst_107 = arith.constant dense<0.000000e+00> : vector<8x8xf32>
    %246 = tpu.matmul %244, %245, %cst_107 {dimension_numbers = #tpu.dot_dimension_numbers<[1], [0], [0], [1], [0, 0, 1, 1], [], []>} : vector<8x8xf32>, vector<8x8xf32>, vector<8x8xf32> -> vector<8x8xf32>
    %247 = vector.extract_strided_slice %23 {offsets = [24, 0], sizes = [8, 32], strides = [1, 1]} : vector<32x32xf32> to vector<8x32xf32>
    %cst_108 = arith.constant dense<0.000000e+00> : vector<8x32xf32>
    %248 = tpu.matmul %246, %247, %cst_108 {dimension_numbers = #tpu.dot_dimension_numbers<[1], [0], [0], [1], [0, 0, 1, 1], [], []>} : vector<8x8xf32>, vector<8x32xf32>, vector<8x32xf32> -> vector<8x32xf32>
    %249 = arith.addf %226, %248 : vector<8x32xf32>
    %250 = vector.broadcast %25 : vector<1x32xf32> to vector<8x32xf32>
    %251 = arith.addf %249, %250 : vector<8x32xf32>
    %252 = tpu.concatenate %155, %251 in 0 : vector<8x32xf32>, vector<8x32xf32> -> vector<16x32xf32>
    %253 = arith.addf %4, %252 : vector<16x32xf32>
    %254 = vector.extract_strided_slice %27 {offsets = [1, 0], sizes = [1, 32], strides = [1, 1]} : vector<3x32xf32> to vector<1x32xf32>
    %255 = vector.extract_strided_slice %29 {offsets = [1, 0], sizes = [1, 32], strides = [1, 1]} : vector<3x32xf32> to vector<1x32xf32>
    %cst_109 = arith.constant dense<0.000000e+00> : vector<16xf32>
    %256 = vector.multi_reduction <add>, %253, %cst_109 [1] : vector<16x32xf32> to vector<16xf32>
    %257 = vector.shape_cast %256 : vector<16xf32> to vector<16x1xf32>
    %cst_110 = arith.constant 3.200000e+01 : f32
    %258 = vector.broadcast %cst_110 : f32 to vector<16x1xf32>
    %259 = arith.divf %257, %258 : vector<16x1xf32>
    %260 = vector.broadcast %259 : vector<16x1xf32> to vector<16x32xf32>
    %261 = arith.subf %253, %260 : vector<16x32xf32>
    %262 = arith.mulf %261, %261 : vector<16x32xf32>
    %cst_111 = arith.constant dense<0.000000e+00> : vector<16xf32>
    %263 = vector.multi_reduction <add>, %262, %cst_111 [1] : vector<16x32xf32> to vector<16xf32>
    %264 = vector.shape_cast %263 : vector<16xf32> to vector<16x1xf32>
    %cst_112 = arith.constant 3.100000e+01 : f32
    %265 = vector.broadcast %cst_112 : f32 to vector<16x1xf32>
    %266 = arith.divf %264, %265 : vector<16x1xf32>
    %267 = math.sqrt %266 : vector<16x1xf32>
    %268 = vector.broadcast %259 : vector<16x1xf32> to vector<16x32xf32>
    %269 = arith.subf %253, %268 : vector<16x32xf32>
    %270 = vector.broadcast %254 : vector<1x32xf32> to vector<16x32xf32>
    %271 = arith.mulf %270, %269 : vector<16x32xf32>
    %cst_113 = arith.constant 9.99999997E-7 : f32
    %272 = vector.broadcast %cst_113 : f32 to vector<16x1xf32>
    %273 = arith.addf %267, %272 : vector<16x1xf32>
    %274 = vector.broadcast %273 : vector<16x1xf32> to vector<16x32xf32>
    %275 = arith.divf %271, %274 : vector<16x32xf32>
    %276 = vector.broadcast %255 : vector<1x32xf32> to vector<16x32xf32>
    %277 = arith.addf %275, %276 : vector<16x32xf32>
    %278 = vector.extract_strided_slice %19 {offsets = [0, 0], sizes = [32, 32], strides = [1, 1]} : vector<32x96xf32> to vector<32x32xf32>
    %cst_114 = arith.constant dense<0.000000e+00> : vector<16x32xf32>
    %279 = tpu.matmul %277, %278, %cst_114 {dimension_numbers = #tpu.dot_dimension_numbers<[1], [0], [0], [1], [0, 0, 1, 1], [], []>} : vector<16x32xf32>, vector<32x32xf32>, vector<16x32xf32> -> vector<16x32xf32>
    %280 = vector.extract_strided_slice %21 {offsets = [0, 0], sizes = [1, 32], strides = [1, 1]} : vector<1x96xf32> to vector<1x32xf32>
    %281 = vector.broadcast %280 : vector<1x32xf32> to vector<16x32xf32>
    %282 = arith.addf %279, %281 : vector<16x32xf32>
    %283 = vector.extract_strided_slice %19 {offsets = [0, 32], sizes = [32, 64], strides = [1, 1]} : vector<32x96xf32> to vector<32x64xf32>
    %cst_115 = arith.constant dense<0.000000e+00> : vector<16x64xf32>
    %284 = tpu.matmul %9, %283, %cst_115 {dimension_numbers = #tpu.dot_dimension_numbers<[1], [0], [0], [1], [0, 0, 1, 1], [], []>} : vector<16x32xf32>, vector<32x64xf32>, vector<16x64xf32> -> vector<16x64xf32>
    %285 = vector.extract_strided_slice %21 {offsets = [0, 32], sizes = [1, 64], strides = [1, 1]} : vector<1x96xf32> to vector<1x64xf32>
    %286 = vector.broadcast %285 : vector<1x64xf32> to vector<16x64xf32>
    %287 = arith.addf %284, %286 : vector<16x64xf32>
    %288 = vector.extract_strided_slice %287 {offsets = [0, 0], sizes = [16, 32], strides = [1, 1]} : vector<16x64xf32> to vector<16x32xf32>
    %289 = vector.extract_strided_slice %287 {offsets = [0, 32], sizes = [16, 32], strides = [1, 1]} : vector<16x64xf32> to vector<16x32xf32>
    %290 = vector.extract_strided_slice %282 {offsets = [0, 0], sizes = [8, 32], strides = [1, 1]} : vector<16x32xf32> to vector<8x32xf32>
    %291 = vector.extract_strided_slice %288 {offsets = [0, 0], sizes = [8, 32], strides = [1, 1]} : vector<16x32xf32> to vector<8x32xf32>
    %292 = vector.extract_strided_slice %289 {offsets = [0, 0], sizes = [8, 32], strides = [1, 1]} : vector<16x32xf32> to vector<8x32xf32>
    %293 = vector.extract_strided_slice %290 {offsets = [0, 0], sizes = [8, 8], strides = [1, 1]} : vector<8x32xf32> to vector<8x8xf32>
    %294 = vector.extract_strided_slice %291 {offsets = [0, 0], sizes = [8, 8], strides = [1, 1]} : vector<8x32xf32> to vector<8x8xf32>
    %cst_116 = arith.constant dense<0.000000e+00> : vector<8x8xf32>
    %295 = tpu.matmul %293, %294, %cst_116 {dimension_numbers = #tpu.dot_dimension_numbers<[1], [1], [0], [0], [0, 0, 1, 0], [], []>} : vector<8x8xf32>, vector<8x8xf32>, vector<8x8xf32> -> vector<8x8xf32>
    %cst_117 = arith.constant 0.353553385 : f32
    %296 = vector.broadcast %cst_117 : f32 to vector<8x8xf32>
    %297 = arith.mulf %295, %296 : vector<8x8xf32>
    %cst_118 = arith.constant 0.000000e+00 : f32
    %298 = vector.broadcast %cst_118 : f32 to vector<1x8xf32>
    %299 = arith.cmpf oeq, %15, %298 : vector<1x8xf32>
    %cst_119 = arith.constant -1.000000e+09 : f32
    %300 = vector.shape_cast %299 : vector<1x8xi1> to vector<1x8xi1>
    %301 = vector.broadcast %300 : vector<1x8xi1> to vector<8x8xi1>
    %302 = vector.broadcast %cst_119 : f32 to vector<8x8xf32>
    %303 = arith.select %301, %302, %297 : vector<8x8xi1>, vector<8x8xf32>
    %cst_120 = arith.constant dense<0xFF800000> : vector<8xf32>
    %304 = vector.multi_reduction <maximumf>, %303, %cst_120 [1] : vector<8x8xf32> to vector<8xf32>
    %305 = vector.shape_cast %304 : vector<8xf32> to vector<8x1xf32>
    %306 = vector.broadcast %305 : vector<8x1xf32> to vector<8x8xf32>
    %307 = arith.subf %303, %306 : vector<8x8xf32>
    %308 = math.exp %307 : vector<8x8xf32>
    %cst_121 = arith.constant dense<0.000000e+00> : vector<8xf32>
    %309 = vector.multi_reduction <add>, %308, %cst_121 [1] : vector<8x8xf32> to vector<8xf32>
    %310 = vector.shape_cast %309 : vector<8xf32> to vector<8x1xf32>
    %311 = vector.broadcast %310 : vector<8x1xf32> to vector<8x8xf32>
    %312 = arith.divf %308, %311 : vector<8x8xf32>
    %313 = vector.extract_strided_slice %292 {offsets = [0, 0], sizes = [8, 8], strides = [1, 1]} : vector<8x32xf32> to vector<8x8xf32>
    %cst_122 = arith.constant dense<0.000000e+00> : vector<8x8xf32>
    %314 = tpu.matmul %312, %313, %cst_122 {dimension_numbers = #tpu.dot_dimension_numbers<[1], [0], [0], [1], [0, 0, 1, 1], [], []>} : vector<8x8xf32>, vector<8x8xf32>, vector<8x8xf32> -> vector<8x8xf32>
    %315 = vector.extract_strided_slice %23 {offsets = [0, 0], sizes = [8, 32], strides = [1, 1]} : vector<32x32xf32> to vector<8x32xf32>
    %cst_123 = arith.constant dense<0.000000e+00> : vector<8x32xf32>
    %316 = tpu.matmul %314, %315, %cst_123 {dimension_numbers = #tpu.dot_dimension_numbers<[1], [0], [0], [1], [0, 0, 1, 1], [], []>} : vector<8x8xf32>, vector<8x32xf32>, vector<8x32xf32> -> vector<8x32xf32>
    %317 = vector.extract_strided_slice %290 {offsets = [0, 8], sizes = [8, 8], strides = [1, 1]} : vector<8x32xf32> to vector<8x8xf32>
    %318 = vector.extract_strided_slice %291 {offsets = [0, 8], sizes = [8, 8], strides = [1, 1]} : vector<8x32xf32> to vector<8x8xf32>
    %cst_124 = arith.constant dense<0.000000e+00> : vector<8x8xf32>
    %319 = tpu.matmul %317, %318, %cst_124 {dimension_numbers = #tpu.dot_dimension_numbers<[1], [1], [0], [0], [0, 0, 1, 0], [], []>} : vector<8x8xf32>, vector<8x8xf32>, vector<8x8xf32> -> vector<8x8xf32>
    %cst_125 = arith.constant 0.353553385 : f32
    %320 = vector.broadcast %cst_125 : f32 to vector<8x8xf32>
    %321 = arith.mulf %319, %320 : vector<8x8xf32>
    %cst_126 = arith.constant 0.000000e+00 : f32
    %322 = vector.broadcast %cst_126 : f32 to vector<1x8xf32>
    %323 = arith.cmpf oeq, %15, %322 : vector<1x8xf32>
    %cst_127 = arith.constant -1.000000e+09 : f32
    %324 = vector.shape_cast %323 : vector<1x8xi1> to vector<1x8xi1>
    %325 = vector.broadcast %324 : vector<1x8xi1> to vector<8x8xi1>
    %326 = vector.broadcast %cst_127 : f32 to vector<8x8xf32>
    %327 = arith.select %325, %326, %321 : vector<8x8xi1>, vector<8x8xf32>
    %cst_128 = arith.constant dense<0xFF800000> : vector<8xf32>
    %328 = vector.multi_reduction <maximumf>, %327, %cst_128 [1] : vector<8x8xf32> to vector<8xf32>
    %329 = vector.shape_cast %328 : vector<8xf32> to vector<8x1xf32>
    %330 = vector.broadcast %329 : vector<8x1xf32> to vector<8x8xf32>
    %331 = arith.subf %327, %330 : vector<8x8xf32>
    %332 = math.exp %331 : vector<8x8xf32>
    %cst_129 = arith.constant dense<0.000000e+00> : vector<8xf32>
    %333 = vector.multi_reduction <add>, %332, %cst_129 [1] : vector<8x8xf32> to vector<8xf32>
    %334 = vector.shape_cast %333 : vector<8xf32> to vector<8x1xf32>
    %335 = vector.broadcast %334 : vector<8x1xf32> to vector<8x8xf32>
    %336 = arith.divf %332, %335 : vector<8x8xf32>
    %337 = vector.extract_strided_slice %292 {offsets = [0, 8], sizes = [8, 8], strides = [1, 1]} : vector<8x32xf32> to vector<8x8xf32>
    %cst_130 = arith.constant dense<0.000000e+00> : vector<8x8xf32>
    %338 = tpu.matmul %336, %337, %cst_130 {dimension_numbers = #tpu.dot_dimension_numbers<[1], [0], [0], [1], [0, 0, 1, 1], [], []>} : vector<8x8xf32>, vector<8x8xf32>, vector<8x8xf32> -> vector<8x8xf32>
    %339 = vector.extract_strided_slice %23 {offsets = [8, 0], sizes = [8, 32], strides = [1, 1]} : vector<32x32xf32> to vector<8x32xf32>
    %cst_131 = arith.constant dense<0.000000e+00> : vector<8x32xf32>
    %340 = tpu.matmul %338, %339, %cst_131 {dimension_numbers = #tpu.dot_dimension_numbers<[1], [0], [0], [1], [0, 0, 1, 1], [], []>} : vector<8x8xf32>, vector<8x32xf32>, vector<8x32xf32> -> vector<8x32xf32>
    %341 = arith.addf %316, %340 : vector<8x32xf32>
    %342 = vector.extract_strided_slice %290 {offsets = [0, 16], sizes = [8, 8], strides = [1, 1]} : vector<8x32xf32> to vector<8x8xf32>
    %343 = vector.extract_strided_slice %291 {offsets = [0, 16], sizes = [8, 8], strides = [1, 1]} : vector<8x32xf32> to vector<8x8xf32>
    %cst_132 = arith.constant dense<0.000000e+00> : vector<8x8xf32>
    %344 = tpu.matmul %342, %343, %cst_132 {dimension_numbers = #tpu.dot_dimension_numbers<[1], [1], [0], [0], [0, 0, 1, 0], [], []>} : vector<8x8xf32>, vector<8x8xf32>, vector<8x8xf32> -> vector<8x8xf32>
    %cst_133 = arith.constant 0.353553385 : f32
    %345 = vector.broadcast %cst_133 : f32 to vector<8x8xf32>
    %346 = arith.mulf %344, %345 : vector<8x8xf32>
    %cst_134 = arith.constant 0.000000e+00 : f32
    %347 = vector.broadcast %cst_134 : f32 to vector<1x8xf32>
    %348 = arith.cmpf oeq, %15, %347 : vector<1x8xf32>
    %cst_135 = arith.constant -1.000000e+09 : f32
    %349 = vector.shape_cast %348 : vector<1x8xi1> to vector<1x8xi1>
    %350 = vector.broadcast %349 : vector<1x8xi1> to vector<8x8xi1>
    %351 = vector.broadcast %cst_135 : f32 to vector<8x8xf32>
    %352 = arith.select %350, %351, %346 : vector<8x8xi1>, vector<8x8xf32>
    %cst_136 = arith.constant dense<0xFF800000> : vector<8xf32>
    %353 = vector.multi_reduction <maximumf>, %352, %cst_136 [1] : vector<8x8xf32> to vector<8xf32>
    %354 = vector.shape_cast %353 : vector<8xf32> to vector<8x1xf32>
    %355 = vector.broadcast %354 : vector<8x1xf32> to vector<8x8xf32>
    %356 = arith.subf %352, %355 : vector<8x8xf32>
    %357 = math.exp %356 : vector<8x8xf32>
    %cst_137 = arith.constant dense<0.000000e+00> : vector<8xf32>
    %358 = vector.multi_reduction <add>, %357, %cst_137 [1] : vector<8x8xf32> to vector<8xf32>
    %359 = vector.shape_cast %358 : vector<8xf32> to vector<8x1xf32>
    %360 = vector.broadcast %359 : vector<8x1xf32> to vector<8x8xf32>
    %361 = arith.divf %357, %360 : vector<8x8xf32>
    %362 = vector.extract_strided_slice %292 {offsets = [0, 16], sizes = [8, 8], strides = [1, 1]} : vector<8x32xf32> to vector<8x8xf32>
    %cst_138 = arith.constant dense<0.000000e+00> : vector<8x8xf32>
    %363 = tpu.matmul %361, %362, %cst_138 {dimension_numbers = #tpu.dot_dimension_numbers<[1], [0], [0], [1], [0, 0, 1, 1], [], []>} : vector<8x8xf32>, vector<8x8xf32>, vector<8x8xf32> -> vector<8x8xf32>
    %364 = vector.extract_strided_slice %23 {offsets = [16, 0], sizes = [8, 32], strides = [1, 1]} : vector<32x32xf32> to vector<8x32xf32>
    %cst_139 = arith.constant dense<0.000000e+00> : vector<8x32xf32>
    %365 = tpu.matmul %363, %364, %cst_139 {dimension_numbers = #tpu.dot_dimension_numbers<[1], [0], [0], [1], [0, 0, 1, 1], [], []>} : vector<8x8xf32>, vector<8x32xf32>, vector<8x32xf32> -> vector<8x32xf32>
    %366 = arith.addf %341, %365 : vector<8x32xf32>
    %367 = vector.extract_strided_slice %290 {offsets = [0, 24], sizes = [8, 8], strides = [1, 1]} : vector<8x32xf32> to vector<8x8xf32>
    %368 = vector.extract_strided_slice %291 {offsets = [0, 24], sizes = [8, 8], strides = [1, 1]} : vector<8x32xf32> to vector<8x8xf32>
    %cst_140 = arith.constant dense<0.000000e+00> : vector<8x8xf32>
    %369 = tpu.matmul %367, %368, %cst_140 {dimension_numbers = #tpu.dot_dimension_numbers<[1], [1], [0], [0], [0, 0, 1, 0], [], []>} : vector<8x8xf32>, vector<8x8xf32>, vector<8x8xf32> -> vector<8x8xf32>
    %cst_141 = arith.constant 0.353553385 : f32
    %370 = vector.broadcast %cst_141 : f32 to vector<8x8xf32>
    %371 = arith.mulf %369, %370 : vector<8x8xf32>
    %cst_142 = arith.constant 0.000000e+00 : f32
    %372 = vector.broadcast %cst_142 : f32 to vector<1x8xf32>
    %373 = arith.cmpf oeq, %15, %372 : vector<1x8xf32>
    %cst_143 = arith.constant -1.000000e+09 : f32
    %374 = vector.shape_cast %373 : vector<1x8xi1> to vector<1x8xi1>
    %375 = vector.broadcast %374 : vector<1x8xi1> to vector<8x8xi1>
    %376 = vector.broadcast %cst_143 : f32 to vector<8x8xf32>
    %377 = arith.select %375, %376, %371 : vector<8x8xi1>, vector<8x8xf32>
    %cst_144 = arith.constant dense<0xFF800000> : vector<8xf32>
    %378 = vector.multi_reduction <maximumf>, %377, %cst_144 [1] : vector<8x8xf32> to vector<8xf32>
    %379 = vector.shape_cast %378 : vector<8xf32> to vector<8x1xf32>
    %380 = vector.broadcast %379 : vector<8x1xf32> to vector<8x8xf32>
    %381 = arith.subf %377, %380 : vector<8x8xf32>
    %382 = math.exp %381 : vector<8x8xf32>
    %cst_145 = arith.constant dense<0.000000e+00> : vector<8xf32>
    %383 = vector.multi_reduction <add>, %382, %cst_145 [1] : vector<8x8xf32> to vector<8xf32>
    %384 = vector.shape_cast %383 : vector<8xf32> to vector<8x1xf32>
    %385 = vector.broadcast %384 : vector<8x1xf32> to vector<8x8xf32>
    %386 = arith.divf %382, %385 : vector<8x8xf32>
    %387 = vector.extract_strided_slice %292 {offsets = [0, 24], sizes = [8, 8], strides = [1, 1]} : vector<8x32xf32> to vector<8x8xf32>
    %cst_146 = arith.constant dense<0.000000e+00> : vector<8x8xf32>
    %388 = tpu.matmul %386, %387, %cst_146 {dimension_numbers = #tpu.dot_dimension_numbers<[1], [0], [0], [1], [0, 0, 1, 1], [], []>} : vector<8x8xf32>, vector<8x8xf32>, vector<8x8xf32> -> vector<8x8xf32>
    %389 = vector.extract_strided_slice %23 {offsets = [24, 0], sizes = [8, 32], strides = [1, 1]} : vector<32x32xf32> to vector<8x32xf32>
    %cst_147 = arith.constant dense<0.000000e+00> : vector<8x32xf32>
    %390 = tpu.matmul %388, %389, %cst_147 {dimension_numbers = #tpu.dot_dimension_numbers<[1], [0], [0], [1], [0, 0, 1, 1], [], []>} : vector<8x8xf32>, vector<8x32xf32>, vector<8x32xf32> -> vector<8x32xf32>
    %391 = arith.addf %366, %390 : vector<8x32xf32>
    %392 = vector.broadcast %25 : vector<1x32xf32> to vector<8x32xf32>
    %393 = arith.addf %391, %392 : vector<8x32xf32>
    %394 = vector.extract_strided_slice %282 {offsets = [8, 0], sizes = [8, 32], strides = [1, 1]} : vector<16x32xf32> to vector<8x32xf32>
    %395 = vector.extract_strided_slice %288 {offsets = [8, 0], sizes = [8, 32], strides = [1, 1]} : vector<16x32xf32> to vector<8x32xf32>
    %396 = vector.extract_strided_slice %289 {offsets = [8, 0], sizes = [8, 32], strides = [1, 1]} : vector<16x32xf32> to vector<8x32xf32>
    %397 = vector.extract_strided_slice %394 {offsets = [0, 0], sizes = [8, 8], strides = [1, 1]} : vector<8x32xf32> to vector<8x8xf32>
    %398 = vector.extract_strided_slice %395 {offsets = [0, 0], sizes = [8, 8], strides = [1, 1]} : vector<8x32xf32> to vector<8x8xf32>
    %cst_148 = arith.constant dense<0.000000e+00> : vector<8x8xf32>
    %399 = tpu.matmul %397, %398, %cst_148 {dimension_numbers = #tpu.dot_dimension_numbers<[1], [1], [0], [0], [0, 0, 1, 0], [], []>} : vector<8x8xf32>, vector<8x8xf32>, vector<8x8xf32> -> vector<8x8xf32>
    %cst_149 = arith.constant 0.353553385 : f32
    %400 = vector.broadcast %cst_149 : f32 to vector<8x8xf32>
    %401 = arith.mulf %399, %400 : vector<8x8xf32>
    %cst_150 = arith.constant 0.000000e+00 : f32
    %402 = vector.broadcast %cst_150 : f32 to vector<1x8xf32>
    %403 = arith.cmpf oeq, %17, %402 : vector<1x8xf32>
    %cst_151 = arith.constant -1.000000e+09 : f32
    %404 = vector.shape_cast %403 : vector<1x8xi1> to vector<1x8xi1>
    %405 = vector.broadcast %404 : vector<1x8xi1> to vector<8x8xi1>
    %406 = vector.broadcast %cst_151 : f32 to vector<8x8xf32>
    %407 = arith.select %405, %406, %401 : vector<8x8xi1>, vector<8x8xf32>
    %cst_152 = arith.constant dense<0xFF800000> : vector<8xf32>
    %408 = vector.multi_reduction <maximumf>, %407, %cst_152 [1] : vector<8x8xf32> to vector<8xf32>
    %409 = vector.shape_cast %408 : vector<8xf32> to vector<8x1xf32>
    %410 = vector.broadcast %409 : vector<8x1xf32> to vector<8x8xf32>
    %411 = arith.subf %407, %410 : vector<8x8xf32>
    %412 = math.exp %411 : vector<8x8xf32>
    %cst_153 = arith.constant dense<0.000000e+00> : vector<8xf32>
    %413 = vector.multi_reduction <add>, %412, %cst_153 [1] : vector<8x8xf32> to vector<8xf32>
    %414 = vector.shape_cast %413 : vector<8xf32> to vector<8x1xf32>
    %415 = vector.broadcast %414 : vector<8x1xf32> to vector<8x8xf32>
    %416 = arith.divf %412, %415 : vector<8x8xf32>
    %417 = vector.extract_strided_slice %396 {offsets = [0, 0], sizes = [8, 8], strides = [1, 1]} : vector<8x32xf32> to vector<8x8xf32>
    %cst_154 = arith.constant dense<0.000000e+00> : vector<8x8xf32>
    %418 = tpu.matmul %416, %417, %cst_154 {dimension_numbers = #tpu.dot_dimension_numbers<[1], [0], [0], [1], [0, 0, 1, 1], [], []>} : vector<8x8xf32>, vector<8x8xf32>, vector<8x8xf32> -> vector<8x8xf32>
    %419 = vector.extract_strided_slice %23 {offsets = [0, 0], sizes = [8, 32], strides = [1, 1]} : vector<32x32xf32> to vector<8x32xf32>
    %cst_155 = arith.constant dense<0.000000e+00> : vector<8x32xf32>
    %420 = tpu.matmul %418, %419, %cst_155 {dimension_numbers = #tpu.dot_dimension_numbers<[1], [0], [0], [1], [0, 0, 1, 1], [], []>} : vector<8x8xf32>, vector<8x32xf32>, vector<8x32xf32> -> vector<8x32xf32>
    %421 = vector.extract_strided_slice %394 {offsets = [0, 8], sizes = [8, 8], strides = [1, 1]} : vector<8x32xf32> to vector<8x8xf32>
    %422 = vector.extract_strided_slice %395 {offsets = [0, 8], sizes = [8, 8], strides = [1, 1]} : vector<8x32xf32> to vector<8x8xf32>
    %cst_156 = arith.constant dense<0.000000e+00> : vector<8x8xf32>
    %423 = tpu.matmul %421, %422, %cst_156 {dimension_numbers = #tpu.dot_dimension_numbers<[1], [1], [0], [0], [0, 0, 1, 0], [], []>} : vector<8x8xf32>, vector<8x8xf32>, vector<8x8xf32> -> vector<8x8xf32>
    %cst_157 = arith.constant 0.353553385 : f32
    %424 = vector.broadcast %cst_157 : f32 to vector<8x8xf32>
    %425 = arith.mulf %423, %424 : vector<8x8xf32>
    %cst_158 = arith.constant 0.000000e+00 : f32
    %426 = vector.broadcast %cst_158 : f32 to vector<1x8xf32>
    %427 = arith.cmpf oeq, %17, %426 : vector<1x8xf32>
    %cst_159 = arith.constant -1.000000e+09 : f32
    %428 = vector.shape_cast %427 : vector<1x8xi1> to vector<1x8xi1>
    %429 = vector.broadcast %428 : vector<1x8xi1> to vector<8x8xi1>
    %430 = vector.broadcast %cst_159 : f32 to vector<8x8xf32>
    %431 = arith.select %429, %430, %425 : vector<8x8xi1>, vector<8x8xf32>
    %cst_160 = arith.constant dense<0xFF800000> : vector<8xf32>
    %432 = vector.multi_reduction <maximumf>, %431, %cst_160 [1] : vector<8x8xf32> to vector<8xf32>
    %433 = vector.shape_cast %432 : vector<8xf32> to vector<8x1xf32>
    %434 = vector.broadcast %433 : vector<8x1xf32> to vector<8x8xf32>
    %435 = arith.subf %431, %434 : vector<8x8xf32>
    %436 = math.exp %435 : vector<8x8xf32>
    %cst_161 = arith.constant dense<0.000000e+00> : vector<8xf32>
    %437 = vector.multi_reduction <add>, %436, %cst_161 [1] : vector<8x8xf32> to vector<8xf32>
    %438 = vector.shape_cast %437 : vector<8xf32> to vector<8x1xf32>
    %439 = vector.broadcast %438 : vector<8x1xf32> to vector<8x8xf32>
    %440 = arith.divf %436, %439 : vector<8x8xf32>
    %441 = vector.extract_strided_slice %396 {offsets = [0, 8], sizes = [8, 8], strides = [1, 1]} : vector<8x32xf32> to vector<8x8xf32>
    %cst_162 = arith.constant dense<0.000000e+00> : vector<8x8xf32>
    %442 = tpu.matmul %440, %441, %cst_162 {dimension_numbers = #tpu.dot_dimension_numbers<[1], [0], [0], [1], [0, 0, 1, 1], [], []>} : vector<8x8xf32>, vector<8x8xf32>, vector<8x8xf32> -> vector<8x8xf32>
    %443 = vector.extract_strided_slice %23 {offsets = [8, 0], sizes = [8, 32], strides = [1, 1]} : vector<32x32xf32> to vector<8x32xf32>
    %cst_163 = arith.constant dense<0.000000e+00> : vector<8x32xf32>
    %444 = tpu.matmul %442, %443, %cst_163 {dimension_numbers = #tpu.dot_dimension_numbers<[1], [0], [0], [1], [0, 0, 1, 1], [], []>} : vector<8x8xf32>, vector<8x32xf32>, vector<8x32xf32> -> vector<8x32xf32>
    %445 = arith.addf %420, %444 : vector<8x32xf32>
    %446 = vector.extract_strided_slice %394 {offsets = [0, 16], sizes = [8, 8], strides = [1, 1]} : vector<8x32xf32> to vector<8x8xf32>
    %447 = vector.extract_strided_slice %395 {offsets = [0, 16], sizes = [8, 8], strides = [1, 1]} : vector<8x32xf32> to vector<8x8xf32>
    %cst_164 = arith.constant dense<0.000000e+00> : vector<8x8xf32>
    %448 = tpu.matmul %446, %447, %cst_164 {dimension_numbers = #tpu.dot_dimension_numbers<[1], [1], [0], [0], [0, 0, 1, 0], [], []>} : vector<8x8xf32>, vector<8x8xf32>, vector<8x8xf32> -> vector<8x8xf32>
    %cst_165 = arith.constant 0.353553385 : f32
    %449 = vector.broadcast %cst_165 : f32 to vector<8x8xf32>
    %450 = arith.mulf %448, %449 : vector<8x8xf32>
    %cst_166 = arith.constant 0.000000e+00 : f32
    %451 = vector.broadcast %cst_166 : f32 to vector<1x8xf32>
    %452 = arith.cmpf oeq, %17, %451 : vector<1x8xf32>
    %cst_167 = arith.constant -1.000000e+09 : f32
    %453 = vector.shape_cast %452 : vector<1x8xi1> to vector<1x8xi1>
    %454 = vector.broadcast %453 : vector<1x8xi1> to vector<8x8xi1>
    %455 = vector.broadcast %cst_167 : f32 to vector<8x8xf32>
    %456 = arith.select %454, %455, %450 : vector<8x8xi1>, vector<8x8xf32>
    %cst_168 = arith.constant dense<0xFF800000> : vector<8xf32>
    %457 = vector.multi_reduction <maximumf>, %456, %cst_168 [1] : vector<8x8xf32> to vector<8xf32>
    %458 = vector.shape_cast %457 : vector<8xf32> to vector<8x1xf32>
    %459 = vector.broadcast %458 : vector<8x1xf32> to vector<8x8xf32>
    %460 = arith.subf %456, %459 : vector<8x8xf32>
    %461 = math.exp %460 : vector<8x8xf32>
    %cst_169 = arith.constant dense<0.000000e+00> : vector<8xf32>
    %462 = vector.multi_reduction <add>, %461, %cst_169 [1] : vector<8x8xf32> to vector<8xf32>
    %463 = vector.shape_cast %462 : vector<8xf32> to vector<8x1xf32>
    %464 = vector.broadcast %463 : vector<8x1xf32> to vector<8x8xf32>
    %465 = arith.divf %461, %464 : vector<8x8xf32>
    %466 = vector.extract_strided_slice %396 {offsets = [0, 16], sizes = [8, 8], strides = [1, 1]} : vector<8x32xf32> to vector<8x8xf32>
    %cst_170 = arith.constant dense<0.000000e+00> : vector<8x8xf32>
    %467 = tpu.matmul %465, %466, %cst_170 {dimension_numbers = #tpu.dot_dimension_numbers<[1], [0], [0], [1], [0, 0, 1, 1], [], []>} : vector<8x8xf32>, vector<8x8xf32>, vector<8x8xf32> -> vector<8x8xf32>
    %468 = vector.extract_strided_slice %23 {offsets = [16, 0], sizes = [8, 32], strides = [1, 1]} : vector<32x32xf32> to vector<8x32xf32>
    %cst_171 = arith.constant dense<0.000000e+00> : vector<8x32xf32>
    %469 = tpu.matmul %467, %468, %cst_171 {dimension_numbers = #tpu.dot_dimension_numbers<[1], [0], [0], [1], [0, 0, 1, 1], [], []>} : vector<8x8xf32>, vector<8x32xf32>, vector<8x32xf32> -> vector<8x32xf32>
    %470 = arith.addf %445, %469 : vector<8x32xf32>
    %471 = vector.extract_strided_slice %394 {offsets = [0, 24], sizes = [8, 8], strides = [1, 1]} : vector<8x32xf32> to vector<8x8xf32>
    %472 = vector.extract_strided_slice %395 {offsets = [0, 24], sizes = [8, 8], strides = [1, 1]} : vector<8x32xf32> to vector<8x8xf32>
    %cst_172 = arith.constant dense<0.000000e+00> : vector<8x8xf32>
    %473 = tpu.matmul %471, %472, %cst_172 {dimension_numbers = #tpu.dot_dimension_numbers<[1], [1], [0], [0], [0, 0, 1, 0], [], []>} : vector<8x8xf32>, vector<8x8xf32>, vector<8x8xf32> -> vector<8x8xf32>
    %cst_173 = arith.constant 0.353553385 : f32
    %474 = vector.broadcast %cst_173 : f32 to vector<8x8xf32>
    %475 = arith.mulf %473, %474 : vector<8x8xf32>
    %cst_174 = arith.constant 0.000000e+00 : f32
    %476 = vector.broadcast %cst_174 : f32 to vector<1x8xf32>
    %477 = arith.cmpf oeq, %17, %476 : vector<1x8xf32>
    %cst_175 = arith.constant -1.000000e+09 : f32
    %478 = vector.shape_cast %477 : vector<1x8xi1> to vector<1x8xi1>
    %479 = vector.broadcast %478 : vector<1x8xi1> to vector<8x8xi1>
    %480 = vector.broadcast %cst_175 : f32 to vector<8x8xf32>
    %481 = arith.select %479, %480, %475 : vector<8x8xi1>, vector<8x8xf32>
    %cst_176 = arith.constant dense<0xFF800000> : vector<8xf32>
    %482 = vector.multi_reduction <maximumf>, %481, %cst_176 [1] : vector<8x8xf32> to vector<8xf32>
    %483 = vector.shape_cast %482 : vector<8xf32> to vector<8x1xf32>
    %484 = vector.broadcast %483 : vector<8x1xf32> to vector<8x8xf32>
    %485 = arith.subf %481, %484 : vector<8x8xf32>
    %486 = math.exp %485 : vector<8x8xf32>
    %cst_177 = arith.constant dense<0.000000e+00> : vector<8xf32>
    %487 = vector.multi_reduction <add>, %486, %cst_177 [1] : vector<8x8xf32> to vector<8xf32>
    %488 = vector.shape_cast %487 : vector<8xf32> to vector<8x1xf32>
    %489 = vector.broadcast %488 : vector<8x1xf32> to vector<8x8xf32>
    %490 = arith.divf %486, %489 : vector<8x8xf32>
    %491 = vector.extract_strided_slice %396 {offsets = [0, 24], sizes = [8, 8], strides = [1, 1]} : vector<8x32xf32> to vector<8x8xf32>
    %cst_178 = arith.constant dense<0.000000e+00> : vector<8x8xf32>
    %492 = tpu.matmul %490, %491, %cst_178 {dimension_numbers = #tpu.dot_dimension_numbers<[1], [0], [0], [1], [0, 0, 1, 1], [], []>} : vector<8x8xf32>, vector<8x8xf32>, vector<8x8xf32> -> vector<8x8xf32>
    %493 = vector.extract_strided_slice %23 {offsets = [24, 0], sizes = [8, 32], strides = [1, 1]} : vector<32x32xf32> to vector<8x32xf32>
    %cst_179 = arith.constant dense<0.000000e+00> : vector<8x32xf32>
    %494 = tpu.matmul %492, %493, %cst_179 {dimension_numbers = #tpu.dot_dimension_numbers<[1], [0], [0], [1], [0, 0, 1, 1], [], []>} : vector<8x8xf32>, vector<8x32xf32>, vector<8x32xf32> -> vector<8x32xf32>
    %495 = arith.addf %470, %494 : vector<8x32xf32>
    %496 = vector.broadcast %25 : vector<1x32xf32> to vector<8x32xf32>
    %497 = arith.addf %495, %496 : vector<8x32xf32>
    %498 = tpu.concatenate %393, %497 in 0 : vector<8x32xf32>, vector<8x32xf32> -> vector<16x32xf32>
    %499 = arith.addf %253, %498 : vector<16x32xf32>
    %500 = vector.extract_strided_slice %27 {offsets = [2, 0], sizes = [1, 32], strides = [1, 1]} : vector<3x32xf32> to vector<1x32xf32>
    %501 = vector.extract_strided_slice %29 {offsets = [2, 0], sizes = [1, 32], strides = [1, 1]} : vector<3x32xf32> to vector<1x32xf32>
    %cst_180 = arith.constant dense<0.000000e+00> : vector<16xf32>
    %502 = vector.multi_reduction <add>, %499, %cst_180 [1] : vector<16x32xf32> to vector<16xf32>
    %503 = vector.shape_cast %502 : vector<16xf32> to vector<16x1xf32>
    %cst_181 = arith.constant 3.200000e+01 : f32
    %504 = vector.broadcast %cst_181 : f32 to vector<16x1xf32>
    %505 = arith.divf %503, %504 : vector<16x1xf32>
    %506 = vector.broadcast %505 : vector<16x1xf32> to vector<16x32xf32>
    %507 = arith.subf %499, %506 : vector<16x32xf32>
    %508 = arith.mulf %507, %507 : vector<16x32xf32>
    %cst_182 = arith.constant dense<0.000000e+00> : vector<16xf32>
    %509 = vector.multi_reduction <add>, %508, %cst_182 [1] : vector<16x32xf32> to vector<16xf32>
    %510 = vector.shape_cast %509 : vector<16xf32> to vector<16x1xf32>
    %cst_183 = arith.constant 3.100000e+01 : f32
    %511 = vector.broadcast %cst_183 : f32 to vector<16x1xf32>
    %512 = arith.divf %510, %511 : vector<16x1xf32>
    %513 = math.sqrt %512 : vector<16x1xf32>
    %514 = vector.broadcast %505 : vector<16x1xf32> to vector<16x32xf32>
    %515 = arith.subf %499, %514 : vector<16x32xf32>
    %516 = vector.broadcast %500 : vector<1x32xf32> to vector<16x32xf32>
    %517 = arith.mulf %516, %515 : vector<16x32xf32>
    %cst_184 = arith.constant 9.99999997E-7 : f32
    %518 = vector.broadcast %cst_184 : f32 to vector<16x1xf32>
    %519 = arith.addf %513, %518 : vector<16x1xf32>
    %520 = vector.broadcast %519 : vector<16x1xf32> to vector<16x32xf32>
    %521 = arith.divf %517, %520 : vector<16x32xf32>
    %522 = vector.broadcast %501 : vector<1x32xf32> to vector<16x32xf32>
    %523 = arith.addf %521, %522 : vector<16x32xf32>
    %c0_185 = arith.constant 0 : index
    %c0_186 = arith.constant 0 : index
    %c0_187 = arith.constant 0 : index
    %524 = vector.load %arg10[%c0_185, %c0_186, %c0_187] : memref<2x32x64xf32, #tpu.memory_space<vmem>>, vector<1x32x64xf32>
    %525 = vector.shape_cast %524 : vector<1x32x64xf32> to vector<32x64xf32>
    %cst_188 = arith.constant dense<0.000000e+00> : vector<16x64xf32>
    %526 = tpu.matmul %523, %525, %cst_188 {dimension_numbers = #tpu.dot_dimension_numbers<[1], [0], [0], [1], [0, 0, 1, 1], [], []>} : vector<16x32xf32>, vector<32x64xf32>, vector<16x64xf32> -> vector<16x64xf32>
    %c0_189 = arith.constant 0 : index
    %c0_190 = arith.constant 0 : index
    %c0_191 = arith.constant 0 : index
    %527 = vector.load %arg11[%c0_189, %c0_190, %c0_191] : memref<2x1x64xf32, #tpu.memory_space<vmem>>, vector<1x1x64xf32>
    %528 = vector.shape_cast %527 : vector<1x1x64xf32> to vector<1x64xf32>
    %529 = vector.broadcast %528 : vector<1x64xf32> to vector<16x64xf32>
    %530 = arith.addf %526, %529 : vector<16x64xf32>
    %cst_192 = arith.constant 0.000000e+00 : f32
    %531 = vector.broadcast %cst_192 : f32 to vector<16x64xf32>
    %532 = arith.maximumf %530, %531 : vector<16x64xf32>
    %c0_193 = arith.constant 0 : index
    %c0_194 = arith.constant 0 : index
    %c0_195 = arith.constant 0 : index
    %533 = vector.load %arg12[%c0_193, %c0_194, %c0_195] : memref<2x64x32xf32, #tpu.memory_space<vmem>>, vector<1x64x32xf32>
    %534 = vector.shape_cast %533 : vector<1x64x32xf32> to vector<64x32xf32>
    %cst_196 = arith.constant dense<0.000000e+00> : vector<16x32xf32>
    %535 = tpu.matmul %532, %534, %cst_196 {dimension_numbers = #tpu.dot_dimension_numbers<[1], [0], [0], [1], [0, 0, 1, 1], [], []>} : vector<16x64xf32>, vector<64x32xf32>, vector<16x32xf32> -> vector<16x32xf32>
    %536 = arith.addf %499, %535 : vector<16x32xf32>
    %c0_197 = arith.constant 0 : index
    %c0_198 = arith.constant 0 : index
    %c0_199 = arith.constant 0 : index
    %537 = vector.load %arg13[%c0_197, %c0_198, %c0_199] : memref<2x1x32xf32, #tpu.memory_space<vmem>>, vector<1x1x32xf32>
    %538 = vector.shape_cast %537 : vector<1x1x32xf32> to vector<1x32xf32>
    %539 = vector.broadcast %538 : vector<1x32xf32> to vector<16x32xf32>
    %540 = arith.addf %536, %539 : vector<16x32xf32>
    %c1_200 = arith.constant 1 : index
    %c0_201 = arith.constant 0 : index
    %c0_202 = arith.constant 0 : index
    %541 = vector.load %arg4[%c1_200, %c0_201, %c0_202] : memref<2x32x96xf32, #tpu.memory_space<vmem>>, vector<1x32x96xf32>
    %542 = vector.shape_cast %541 : vector<1x32x96xf32> to vector<32x96xf32>
    %c1_203 = arith.constant 1 : index
    %c0_204 = arith.constant 0 : index
    %c0_205 = arith.constant 0 : index
    %543 = vector.load %arg5[%c1_203, %c0_204, %c0_205] : memref<2x1x96xf32, #tpu.memory_space<vmem>>, vector<1x1x96xf32>
    %544 = vector.shape_cast %543 : vector<1x1x96xf32> to vector<1x96xf32>
    %c1_206 = arith.constant 1 : index
    %c0_207 = arith.constant 0 : index
    %c0_208 = arith.constant 0 : index
    %545 = vector.load %arg6[%c1_206, %c0_207, %c0_208] : memref<2x32x32xf32, #tpu.memory_space<vmem>>, vector<1x32x32xf32>
    %546 = vector.shape_cast %545 : vector<1x32x32xf32> to vector<32x32xf32>
    %c1_209 = arith.constant 1 : index
    %c0_210 = arith.constant 0 : index
    %c0_211 = arith.constant 0 : index
    %547 = vector.load %arg7[%c1_209, %c0_210, %c0_211] : memref<2x1x32xf32, #tpu.memory_space<vmem>>, vector<1x1x32xf32>
    %548 = vector.shape_cast %547 : vector<1x1x32xf32> to vector<1x32xf32>
    %c1_212 = arith.constant 1 : index
    %c0_213 = arith.constant 0 : index
    %c0_214 = arith.constant 0 : index
    %549 = vector.load %arg8[%c1_212, %c0_213, %c0_214] : memref<2x3x32xf32, #tpu.memory_space<vmem>>, vector<1x3x32xf32>
    %550 = vector.shape_cast %549 : vector<1x3x32xf32> to vector<3x32xf32>
    %c1_215 = arith.constant 1 : index
    %c0_216 = arith.constant 0 : index
    %c0_217 = arith.constant 0 : index
    %551 = vector.load %arg9[%c1_215, %c0_216, %c0_217] : memref<2x3x32xf32, #tpu.memory_space<vmem>>, vector<1x3x32xf32>
    %552 = vector.shape_cast %551 : vector<1x3x32xf32> to vector<3x32xf32>
    %553 = vector.extract_strided_slice %550 {offsets = [0, 0], sizes = [1, 32], strides = [1, 1]} : vector<3x32xf32> to vector<1x32xf32>
    %554 = vector.extract_strided_slice %552 {offsets = [0, 0], sizes = [1, 32], strides = [1, 1]} : vector<3x32xf32> to vector<1x32xf32>
    %cst_218 = arith.constant dense<0.000000e+00> : vector<16xf32>
    %555 = vector.multi_reduction <add>, %540, %cst_218 [1] : vector<16x32xf32> to vector<16xf32>
    %556 = vector.shape_cast %555 : vector<16xf32> to vector<16x1xf32>
    %cst_219 = arith.constant 3.200000e+01 : f32
    %557 = vector.broadcast %cst_219 : f32 to vector<16x1xf32>
    %558 = arith.divf %556, %557 : vector<16x1xf32>
    %559 = vector.broadcast %558 : vector<16x1xf32> to vector<16x32xf32>
    %560 = arith.subf %540, %559 : vector<16x32xf32>
    %561 = arith.mulf %560, %560 : vector<16x32xf32>
    %cst_220 = arith.constant dense<0.000000e+00> : vector<16xf32>
    %562 = vector.multi_reduction <add>, %561, %cst_220 [1] : vector<16x32xf32> to vector<16xf32>
    %563 = vector.shape_cast %562 : vector<16xf32> to vector<16x1xf32>
    %cst_221 = arith.constant 3.100000e+01 : f32
    %564 = vector.broadcast %cst_221 : f32 to vector<16x1xf32>
    %565 = arith.divf %563, %564 : vector<16x1xf32>
    %566 = math.sqrt %565 : vector<16x1xf32>
    %567 = vector.broadcast %558 : vector<16x1xf32> to vector<16x32xf32>
    %568 = arith.subf %540, %567 : vector<16x32xf32>
    %569 = vector.broadcast %553 : vector<1x32xf32> to vector<16x32xf32>
    %570 = arith.mulf %569, %568 : vector<16x32xf32>
    %cst_222 = arith.constant 9.99999997E-7 : f32
    %571 = vector.broadcast %cst_222 : f32 to vector<16x1xf32>
    %572 = arith.addf %566, %571 : vector<16x1xf32>
    %573 = vector.broadcast %572 : vector<16x1xf32> to vector<16x32xf32>
    %574 = arith.divf %570, %573 : vector<16x32xf32>
    %575 = vector.broadcast %554 : vector<1x32xf32> to vector<16x32xf32>
    %576 = arith.addf %574, %575 : vector<16x32xf32>
    %cst_223 = arith.constant dense<0.000000e+00> : vector<16x96xf32>
    %577 = tpu.matmul %576, %542, %cst_223 {dimension_numbers = #tpu.dot_dimension_numbers<[1], [0], [0], [1], [0, 0, 1, 1], [], []>} : vector<16x32xf32>, vector<32x96xf32>, vector<16x96xf32> -> vector<16x96xf32>
    %578 = vector.broadcast %544 : vector<1x96xf32> to vector<16x96xf32>
    %579 = arith.addf %577, %578 : vector<16x96xf32>
    %580 = vector.extract_strided_slice %579 {offsets = [0, 0], sizes = [16, 32], strides = [1, 1]} : vector<16x96xf32> to vector<16x32xf32>
    %581 = vector.extract_strided_slice %579 {offsets = [0, 32], sizes = [16, 32], strides = [1, 1]} : vector<16x96xf32> to vector<16x32xf32>
    %582 = vector.extract_strided_slice %579 {offsets = [0, 64], sizes = [16, 32], strides = [1, 1]} : vector<16x96xf32> to vector<16x32xf32>
    %583 = vector.extract_strided_slice %580 {offsets = [0, 0], sizes = [8, 32], strides = [1, 1]} : vector<16x32xf32> to vector<8x32xf32>
    %584 = vector.extract_strided_slice %581 {offsets = [0, 0], sizes = [8, 32], strides = [1, 1]} : vector<16x32xf32> to vector<8x32xf32>
    %585 = vector.extract_strided_slice %582 {offsets = [0, 0], sizes = [8, 32], strides = [1, 1]} : vector<16x32xf32> to vector<8x32xf32>
    %586 = vector.extract_strided_slice %583 {offsets = [0, 0], sizes = [8, 8], strides = [1, 1]} : vector<8x32xf32> to vector<8x8xf32>
    %587 = vector.extract_strided_slice %584 {offsets = [0, 0], sizes = [8, 8], strides = [1, 1]} : vector<8x32xf32> to vector<8x8xf32>
    %cst_224 = arith.constant dense<0.000000e+00> : vector<8x8xf32>
    %588 = tpu.matmul %586, %587, %cst_224 {dimension_numbers = #tpu.dot_dimension_numbers<[1], [1], [0], [0], [0, 0, 1, 0], [], []>} : vector<8x8xf32>, vector<8x8xf32>, vector<8x8xf32> -> vector<8x8xf32>
    %cst_225 = arith.constant 0.353553385 : f32
    %589 = vector.broadcast %cst_225 : f32 to vector<8x8xf32>
    %590 = arith.mulf %588, %589 : vector<8x8xf32>
    %cst_226 = arith.constant 0.000000e+00 : f32
    %591 = vector.broadcast %cst_226 : f32 to vector<8x8xf32>
    %592 = arith.cmpf oeq, %11, %591 : vector<8x8xf32>
    %cst_227 = arith.constant -1.000000e+09 : f32
    %593 = vector.broadcast %cst_227 : f32 to vector<8x8xf32>
    %594 = arith.select %592, %593, %590 : vector<8x8xi1>, vector<8x8xf32>
    %cst_228 = arith.constant dense<0xFF800000> : vector<8xf32>
    %595 = vector.multi_reduction <maximumf>, %594, %cst_228 [1] : vector<8x8xf32> to vector<8xf32>
    %596 = vector.shape_cast %595 : vector<8xf32> to vector<8x1xf32>
    %597 = vector.broadcast %596 : vector<8x1xf32> to vector<8x8xf32>
    %598 = arith.subf %594, %597 : vector<8x8xf32>
    %599 = math.exp %598 : vector<8x8xf32>
    %cst_229 = arith.constant dense<0.000000e+00> : vector<8xf32>
    %600 = vector.multi_reduction <add>, %599, %cst_229 [1] : vector<8x8xf32> to vector<8xf32>
    %601 = vector.shape_cast %600 : vector<8xf32> to vector<8x1xf32>
    %602 = vector.broadcast %601 : vector<8x1xf32> to vector<8x8xf32>
    %603 = arith.divf %599, %602 : vector<8x8xf32>
    %604 = vector.extract_strided_slice %585 {offsets = [0, 0], sizes = [8, 8], strides = [1, 1]} : vector<8x32xf32> to vector<8x8xf32>
    %cst_230 = arith.constant dense<0.000000e+00> : vector<8x8xf32>
    %605 = tpu.matmul %603, %604, %cst_230 {dimension_numbers = #tpu.dot_dimension_numbers<[1], [0], [0], [1], [0, 0, 1, 1], [], []>} : vector<8x8xf32>, vector<8x8xf32>, vector<8x8xf32> -> vector<8x8xf32>
    %606 = vector.extract_strided_slice %546 {offsets = [0, 0], sizes = [8, 32], strides = [1, 1]} : vector<32x32xf32> to vector<8x32xf32>
    %cst_231 = arith.constant dense<0.000000e+00> : vector<8x32xf32>
    %607 = tpu.matmul %605, %606, %cst_231 {dimension_numbers = #tpu.dot_dimension_numbers<[1], [0], [0], [1], [0, 0, 1, 1], [], []>} : vector<8x8xf32>, vector<8x32xf32>, vector<8x32xf32> -> vector<8x32xf32>
    %608 = vector.extract_strided_slice %583 {offsets = [0, 8], sizes = [8, 8], strides = [1, 1]} : vector<8x32xf32> to vector<8x8xf32>
    %609 = vector.extract_strided_slice %584 {offsets = [0, 8], sizes = [8, 8], strides = [1, 1]} : vector<8x32xf32> to vector<8x8xf32>
    %cst_232 = arith.constant dense<0.000000e+00> : vector<8x8xf32>
    %610 = tpu.matmul %608, %609, %cst_232 {dimension_numbers = #tpu.dot_dimension_numbers<[1], [1], [0], [0], [0, 0, 1, 0], [], []>} : vector<8x8xf32>, vector<8x8xf32>, vector<8x8xf32> -> vector<8x8xf32>
    %cst_233 = arith.constant 0.353553385 : f32
    %611 = vector.broadcast %cst_233 : f32 to vector<8x8xf32>
    %612 = arith.mulf %610, %611 : vector<8x8xf32>
    %cst_234 = arith.constant 0.000000e+00 : f32
    %613 = vector.broadcast %cst_234 : f32 to vector<8x8xf32>
    %614 = arith.cmpf oeq, %11, %613 : vector<8x8xf32>
    %cst_235 = arith.constant -1.000000e+09 : f32
    %615 = vector.broadcast %cst_235 : f32 to vector<8x8xf32>
    %616 = arith.select %614, %615, %612 : vector<8x8xi1>, vector<8x8xf32>
    %cst_236 = arith.constant dense<0xFF800000> : vector<8xf32>
    %617 = vector.multi_reduction <maximumf>, %616, %cst_236 [1] : vector<8x8xf32> to vector<8xf32>
    %618 = vector.shape_cast %617 : vector<8xf32> to vector<8x1xf32>
    %619 = vector.broadcast %618 : vector<8x1xf32> to vector<8x8xf32>
    %620 = arith.subf %616, %619 : vector<8x8xf32>
    %621 = math.exp %620 : vector<8x8xf32>
    %cst_237 = arith.constant dense<0.000000e+00> : vector<8xf32>
    %622 = vector.multi_reduction <add>, %621, %cst_237 [1] : vector<8x8xf32> to vector<8xf32>
    %623 = vector.shape_cast %622 : vector<8xf32> to vector<8x1xf32>
    %624 = vector.broadcast %623 : vector<8x1xf32> to vector<8x8xf32>
    %625 = arith.divf %621, %624 : vector<8x8xf32>
    %626 = vector.extract_strided_slice %585 {offsets = [0, 8], sizes = [8, 8], strides = [1, 1]} : vector<8x32xf32> to vector<8x8xf32>
    %cst_238 = arith.constant dense<0.000000e+00> : vector<8x8xf32>
    %627 = tpu.matmul %625, %626, %cst_238 {dimension_numbers = #tpu.dot_dimension_numbers<[1], [0], [0], [1], [0, 0, 1, 1], [], []>} : vector<8x8xf32>, vector<8x8xf32>, vector<8x8xf32> -> vector<8x8xf32>
    %628 = vector.extract_strided_slice %546 {offsets = [8, 0], sizes = [8, 32], strides = [1, 1]} : vector<32x32xf32> to vector<8x32xf32>
    %cst_239 = arith.constant dense<0.000000e+00> : vector<8x32xf32>
    %629 = tpu.matmul %627, %628, %cst_239 {dimension_numbers = #tpu.dot_dimension_numbers<[1], [0], [0], [1], [0, 0, 1, 1], [], []>} : vector<8x8xf32>, vector<8x32xf32>, vector<8x32xf32> -> vector<8x32xf32>
    %630 = arith.addf %607, %629 : vector<8x32xf32>
    %631 = vector.extract_strided_slice %583 {offsets = [0, 16], sizes = [8, 8], strides = [1, 1]} : vector<8x32xf32> to vector<8x8xf32>
    %632 = vector.extract_strided_slice %584 {offsets = [0, 16], sizes = [8, 8], strides = [1, 1]} : vector<8x32xf32> to vector<8x8xf32>
    %cst_240 = arith.constant dense<0.000000e+00> : vector<8x8xf32>
    %633 = tpu.matmul %631, %632, %cst_240 {dimension_numbers = #tpu.dot_dimension_numbers<[1], [1], [0], [0], [0, 0, 1, 0], [], []>} : vector<8x8xf32>, vector<8x8xf32>, vector<8x8xf32> -> vector<8x8xf32>
    %cst_241 = arith.constant 0.353553385 : f32
    %634 = vector.broadcast %cst_241 : f32 to vector<8x8xf32>
    %635 = arith.mulf %633, %634 : vector<8x8xf32>
    %cst_242 = arith.constant 0.000000e+00 : f32
    %636 = vector.broadcast %cst_242 : f32 to vector<8x8xf32>
    %637 = arith.cmpf oeq, %11, %636 : vector<8x8xf32>
    %cst_243 = arith.constant -1.000000e+09 : f32
    %638 = vector.broadcast %cst_243 : f32 to vector<8x8xf32>
    %639 = arith.select %637, %638, %635 : vector<8x8xi1>, vector<8x8xf32>
    %cst_244 = arith.constant dense<0xFF800000> : vector<8xf32>
    %640 = vector.multi_reduction <maximumf>, %639, %cst_244 [1] : vector<8x8xf32> to vector<8xf32>
    %641 = vector.shape_cast %640 : vector<8xf32> to vector<8x1xf32>
    %642 = vector.broadcast %641 : vector<8x1xf32> to vector<8x8xf32>
    %643 = arith.subf %639, %642 : vector<8x8xf32>
    %644 = math.exp %643 : vector<8x8xf32>
    %cst_245 = arith.constant dense<0.000000e+00> : vector<8xf32>
    %645 = vector.multi_reduction <add>, %644, %cst_245 [1] : vector<8x8xf32> to vector<8xf32>
    %646 = vector.shape_cast %645 : vector<8xf32> to vector<8x1xf32>
    %647 = vector.broadcast %646 : vector<8x1xf32> to vector<8x8xf32>
    %648 = arith.divf %644, %647 : vector<8x8xf32>
    %649 = vector.extract_strided_slice %585 {offsets = [0, 16], sizes = [8, 8], strides = [1, 1]} : vector<8x32xf32> to vector<8x8xf32>
    %cst_246 = arith.constant dense<0.000000e+00> : vector<8x8xf32>
    %650 = tpu.matmul %648, %649, %cst_246 {dimension_numbers = #tpu.dot_dimension_numbers<[1], [0], [0], [1], [0, 0, 1, 1], [], []>} : vector<8x8xf32>, vector<8x8xf32>, vector<8x8xf32> -> vector<8x8xf32>
    %651 = vector.extract_strided_slice %546 {offsets = [16, 0], sizes = [8, 32], strides = [1, 1]} : vector<32x32xf32> to vector<8x32xf32>
    %cst_247 = arith.constant dense<0.000000e+00> : vector<8x32xf32>
    %652 = tpu.matmul %650, %651, %cst_247 {dimension_numbers = #tpu.dot_dimension_numbers<[1], [0], [0], [1], [0, 0, 1, 1], [], []>} : vector<8x8xf32>, vector<8x32xf32>, vector<8x32xf32> -> vector<8x32xf32>
    %653 = arith.addf %630, %652 : vector<8x32xf32>
    %654 = vector.extract_strided_slice %583 {offsets = [0, 24], sizes = [8, 8], strides = [1, 1]} : vector<8x32xf32> to vector<8x8xf32>
    %655 = vector.extract_strided_slice %584 {offsets = [0, 24], sizes = [8, 8], strides = [1, 1]} : vector<8x32xf32> to vector<8x8xf32>
    %cst_248 = arith.constant dense<0.000000e+00> : vector<8x8xf32>
    %656 = tpu.matmul %654, %655, %cst_248 {dimension_numbers = #tpu.dot_dimension_numbers<[1], [1], [0], [0], [0, 0, 1, 0], [], []>} : vector<8x8xf32>, vector<8x8xf32>, vector<8x8xf32> -> vector<8x8xf32>
    %cst_249 = arith.constant 0.353553385 : f32
    %657 = vector.broadcast %cst_249 : f32 to vector<8x8xf32>
    %658 = arith.mulf %656, %657 : vector<8x8xf32>
    %cst_250 = arith.constant 0.000000e+00 : f32
    %659 = vector.broadcast %cst_250 : f32 to vector<8x8xf32>
    %660 = arith.cmpf oeq, %11, %659 : vector<8x8xf32>
    %cst_251 = arith.constant -1.000000e+09 : f32
    %661 = vector.broadcast %cst_251 : f32 to vector<8x8xf32>
    %662 = arith.select %660, %661, %658 : vector<8x8xi1>, vector<8x8xf32>
    %cst_252 = arith.constant dense<0xFF800000> : vector<8xf32>
    %663 = vector.multi_reduction <maximumf>, %662, %cst_252 [1] : vector<8x8xf32> to vector<8xf32>
    %664 = vector.shape_cast %663 : vector<8xf32> to vector<8x1xf32>
    %665 = vector.broadcast %664 : vector<8x1xf32> to vector<8x8xf32>
    %666 = arith.subf %662, %665 : vector<8x8xf32>
    %667 = math.exp %666 : vector<8x8xf32>
    %cst_253 = arith.constant dense<0.000000e+00> : vector<8xf32>
    %668 = vector.multi_reduction <add>, %667, %cst_253 [1] : vector<8x8xf32> to vector<8xf32>
    %669 = vector.shape_cast %668 : vector<8xf32> to vector<8x1xf32>
    %670 = vector.broadcast %669 : vector<8x1xf32> to vector<8x8xf32>
    %671 = arith.divf %667, %670 : vector<8x8xf32>
    %672 = vector.extract_strided_slice %585 {offsets = [0, 24], sizes = [8, 8], strides = [1, 1]} : vector<8x32xf32> to vector<8x8xf32>
    %cst_254 = arith.constant dense<0.000000e+00> : vector<8x8xf32>
    %673 = tpu.matmul %671, %672, %cst_254 {dimension_numbers = #tpu.dot_dimension_numbers<[1], [0], [0], [1], [0, 0, 1, 1], [], []>} : vector<8x8xf32>, vector<8x8xf32>, vector<8x8xf32> -> vector<8x8xf32>
    %674 = vector.extract_strided_slice %546 {offsets = [24, 0], sizes = [8, 32], strides = [1, 1]} : vector<32x32xf32> to vector<8x32xf32>
    %cst_255 = arith.constant dense<0.000000e+00> : vector<8x32xf32>
    %675 = tpu.matmul %673, %674, %cst_255 {dimension_numbers = #tpu.dot_dimension_numbers<[1], [0], [0], [1], [0, 0, 1, 1], [], []>} : vector<8x8xf32>, vector<8x32xf32>, vector<8x32xf32> -> vector<8x32xf32>
    %676 = arith.addf %653, %675 : vector<8x32xf32>
    %677 = vector.broadcast %548 : vector<1x32xf32> to vector<8x32xf32>
    %678 = arith.addf %676, %677 : vector<8x32xf32>
    %679 = vector.extract_strided_slice %580 {offsets = [8, 0], sizes = [8, 32], strides = [1, 1]} : vector<16x32xf32> to vector<8x32xf32>
    %680 = vector.extract_strided_slice %581 {offsets = [8, 0], sizes = [8, 32], strides = [1, 1]} : vector<16x32xf32> to vector<8x32xf32>
    %681 = vector.extract_strided_slice %582 {offsets = [8, 0], sizes = [8, 32], strides = [1, 1]} : vector<16x32xf32> to vector<8x32xf32>
    %682 = vector.extract_strided_slice %679 {offsets = [0, 0], sizes = [8, 8], strides = [1, 1]} : vector<8x32xf32> to vector<8x8xf32>
    %683 = vector.extract_strided_slice %680 {offsets = [0, 0], sizes = [8, 8], strides = [1, 1]} : vector<8x32xf32> to vector<8x8xf32>
    %cst_256 = arith.constant dense<0.000000e+00> : vector<8x8xf32>
    %684 = tpu.matmul %682, %683, %cst_256 {dimension_numbers = #tpu.dot_dimension_numbers<[1], [1], [0], [0], [0, 0, 1, 0], [], []>} : vector<8x8xf32>, vector<8x8xf32>, vector<8x8xf32> -> vector<8x8xf32>
    %cst_257 = arith.constant 0.353553385 : f32
    %685 = vector.broadcast %cst_257 : f32 to vector<8x8xf32>
    %686 = arith.mulf %684, %685 : vector<8x8xf32>
    %cst_258 = arith.constant 0.000000e+00 : f32
    %687 = vector.broadcast %cst_258 : f32 to vector<8x8xf32>
    %688 = arith.cmpf oeq, %13, %687 : vector<8x8xf32>
    %cst_259 = arith.constant -1.000000e+09 : f32
    %689 = vector.broadcast %cst_259 : f32 to vector<8x8xf32>
    %690 = arith.select %688, %689, %686 : vector<8x8xi1>, vector<8x8xf32>
    %cst_260 = arith.constant dense<0xFF800000> : vector<8xf32>
    %691 = vector.multi_reduction <maximumf>, %690, %cst_260 [1] : vector<8x8xf32> to vector<8xf32>
    %692 = vector.shape_cast %691 : vector<8xf32> to vector<8x1xf32>
    %693 = vector.broadcast %692 : vector<8x1xf32> to vector<8x8xf32>
    %694 = arith.subf %690, %693 : vector<8x8xf32>
    %695 = math.exp %694 : vector<8x8xf32>
    %cst_261 = arith.constant dense<0.000000e+00> : vector<8xf32>
    %696 = vector.multi_reduction <add>, %695, %cst_261 [1] : vector<8x8xf32> to vector<8xf32>
    %697 = vector.shape_cast %696 : vector<8xf32> to vector<8x1xf32>
    %698 = vector.broadcast %697 : vector<8x1xf32> to vector<8x8xf32>
    %699 = arith.divf %695, %698 : vector<8x8xf32>
    %700 = vector.extract_strided_slice %681 {offsets = [0, 0], sizes = [8, 8], strides = [1, 1]} : vector<8x32xf32> to vector<8x8xf32>
    %cst_262 = arith.constant dense<0.000000e+00> : vector<8x8xf32>
    %701 = tpu.matmul %699, %700, %cst_262 {dimension_numbers = #tpu.dot_dimension_numbers<[1], [0], [0], [1], [0, 0, 1, 1], [], []>} : vector<8x8xf32>, vector<8x8xf32>, vector<8x8xf32> -> vector<8x8xf32>
    %702 = vector.extract_strided_slice %546 {offsets = [0, 0], sizes = [8, 32], strides = [1, 1]} : vector<32x32xf32> to vector<8x32xf32>
    %cst_263 = arith.constant dense<0.000000e+00> : vector<8x32xf32>
    %703 = tpu.matmul %701, %702, %cst_263 {dimension_numbers = #tpu.dot_dimension_numbers<[1], [0], [0], [1], [0, 0, 1, 1], [], []>} : vector<8x8xf32>, vector<8x32xf32>, vector<8x32xf32> -> vector<8x32xf32>
    %704 = vector.extract_strided_slice %679 {offsets = [0, 8], sizes = [8, 8], strides = [1, 1]} : vector<8x32xf32> to vector<8x8xf32>
    %705 = vector.extract_strided_slice %680 {offsets = [0, 8], sizes = [8, 8], strides = [1, 1]} : vector<8x32xf32> to vector<8x8xf32>
    %cst_264 = arith.constant dense<0.000000e+00> : vector<8x8xf32>
    %706 = tpu.matmul %704, %705, %cst_264 {dimension_numbers = #tpu.dot_dimension_numbers<[1], [1], [0], [0], [0, 0, 1, 0], [], []>} : vector<8x8xf32>, vector<8x8xf32>, vector<8x8xf32> -> vector<8x8xf32>
    %cst_265 = arith.constant 0.353553385 : f32
    %707 = vector.broadcast %cst_265 : f32 to vector<8x8xf32>
    %708 = arith.mulf %706, %707 : vector<8x8xf32>
    %cst_266 = arith.constant 0.000000e+00 : f32
    %709 = vector.broadcast %cst_266 : f32 to vector<8x8xf32>
    %710 = arith.cmpf oeq, %13, %709 : vector<8x8xf32>
    %cst_267 = arith.constant -1.000000e+09 : f32
    %711 = vector.broadcast %cst_267 : f32 to vector<8x8xf32>
    %712 = arith.select %710, %711, %708 : vector<8x8xi1>, vector<8x8xf32>
    %cst_268 = arith.constant dense<0xFF800000> : vector<8xf32>
    %713 = vector.multi_reduction <maximumf>, %712, %cst_268 [1] : vector<8x8xf32> to vector<8xf32>
    %714 = vector.shape_cast %713 : vector<8xf32> to vector<8x1xf32>
    %715 = vector.broadcast %714 : vector<8x1xf32> to vector<8x8xf32>
    %716 = arith.subf %712, %715 : vector<8x8xf32>
    %717 = math.exp %716 : vector<8x8xf32>
    %cst_269 = arith.constant dense<0.000000e+00> : vector<8xf32>
    %718 = vector.multi_reduction <add>, %717, %cst_269 [1] : vector<8x8xf32> to vector<8xf32>
    %719 = vector.shape_cast %718 : vector<8xf32> to vector<8x1xf32>
    %720 = vector.broadcast %719 : vector<8x1xf32> to vector<8x8xf32>
    %721 = arith.divf %717, %720 : vector<8x8xf32>
    %722 = vector.extract_strided_slice %681 {offsets = [0, 8], sizes = [8, 8], strides = [1, 1]} : vector<8x32xf32> to vector<8x8xf32>
    %cst_270 = arith.constant dense<0.000000e+00> : vector<8x8xf32>
    %723 = tpu.matmul %721, %722, %cst_270 {dimension_numbers = #tpu.dot_dimension_numbers<[1], [0], [0], [1], [0, 0, 1, 1], [], []>} : vector<8x8xf32>, vector<8x8xf32>, vector<8x8xf32> -> vector<8x8xf32>
    %724 = vector.extract_strided_slice %546 {offsets = [8, 0], sizes = [8, 32], strides = [1, 1]} : vector<32x32xf32> to vector<8x32xf32>
    %cst_271 = arith.constant dense<0.000000e+00> : vector<8x32xf32>
    %725 = tpu.matmul %723, %724, %cst_271 {dimension_numbers = #tpu.dot_dimension_numbers<[1], [0], [0], [1], [0, 0, 1, 1], [], []>} : vector<8x8xf32>, vector<8x32xf32>, vector<8x32xf32> -> vector<8x32xf32>
    %726 = arith.addf %703, %725 : vector<8x32xf32>
    %727 = vector.extract_strided_slice %679 {offsets = [0, 16], sizes = [8, 8], strides = [1, 1]} : vector<8x32xf32> to vector<8x8xf32>
    %728 = vector.extract_strided_slice %680 {offsets = [0, 16], sizes = [8, 8], strides = [1, 1]} : vector<8x32xf32> to vector<8x8xf32>
    %cst_272 = arith.constant dense<0.000000e+00> : vector<8x8xf32>
    %729 = tpu.matmul %727, %728, %cst_272 {dimension_numbers = #tpu.dot_dimension_numbers<[1], [1], [0], [0], [0, 0, 1, 0], [], []>} : vector<8x8xf32>, vector<8x8xf32>, vector<8x8xf32> -> vector<8x8xf32>
    %cst_273 = arith.constant 0.353553385 : f32
    %730 = vector.broadcast %cst_273 : f32 to vector<8x8xf32>
    %731 = arith.mulf %729, %730 : vector<8x8xf32>
    %cst_274 = arith.constant 0.000000e+00 : f32
    %732 = vector.broadcast %cst_274 : f32 to vector<8x8xf32>
    %733 = arith.cmpf oeq, %13, %732 : vector<8x8xf32>
    %cst_275 = arith.constant -1.000000e+09 : f32
    %734 = vector.broadcast %cst_275 : f32 to vector<8x8xf32>
    %735 = arith.select %733, %734, %731 : vector<8x8xi1>, vector<8x8xf32>
    %cst_276 = arith.constant dense<0xFF800000> : vector<8xf32>
    %736 = vector.multi_reduction <maximumf>, %735, %cst_276 [1] : vector<8x8xf32> to vector<8xf32>
    %737 = vector.shape_cast %736 : vector<8xf32> to vector<8x1xf32>
    %738 = vector.broadcast %737 : vector<8x1xf32> to vector<8x8xf32>
    %739 = arith.subf %735, %738 : vector<8x8xf32>
    %740 = math.exp %739 : vector<8x8xf32>
    %cst_277 = arith.constant dense<0.000000e+00> : vector<8xf32>
    %741 = vector.multi_reduction <add>, %740, %cst_277 [1] : vector<8x8xf32> to vector<8xf32>
    %742 = vector.shape_cast %741 : vector<8xf32> to vector<8x1xf32>
    %743 = vector.broadcast %742 : vector<8x1xf32> to vector<8x8xf32>
    %744 = arith.divf %740, %743 : vector<8x8xf32>
    %745 = vector.extract_strided_slice %681 {offsets = [0, 16], sizes = [8, 8], strides = [1, 1]} : vector<8x32xf32> to vector<8x8xf32>
    %cst_278 = arith.constant dense<0.000000e+00> : vector<8x8xf32>
    %746 = tpu.matmul %744, %745, %cst_278 {dimension_numbers = #tpu.dot_dimension_numbers<[1], [0], [0], [1], [0, 0, 1, 1], [], []>} : vector<8x8xf32>, vector<8x8xf32>, vector<8x8xf32> -> vector<8x8xf32>
    %747 = vector.extract_strided_slice %546 {offsets = [16, 0], sizes = [8, 32], strides = [1, 1]} : vector<32x32xf32> to vector<8x32xf32>
    %cst_279 = arith.constant dense<0.000000e+00> : vector<8x32xf32>
    %748 = tpu.matmul %746, %747, %cst_279 {dimension_numbers = #tpu.dot_dimension_numbers<[1], [0], [0], [1], [0, 0, 1, 1], [], []>} : vector<8x8xf32>, vector<8x32xf32>, vector<8x32xf32> -> vector<8x32xf32>
    %749 = arith.addf %726, %748 : vector<8x32xf32>
    %750 = vector.extract_strided_slice %679 {offsets = [0, 24], sizes = [8, 8], strides = [1, 1]} : vector<8x32xf32> to vector<8x8xf32>
    %751 = vector.extract_strided_slice %680 {offsets = [0, 24], sizes = [8, 8], strides = [1, 1]} : vector<8x32xf32> to vector<8x8xf32>
    %cst_280 = arith.constant dense<0.000000e+00> : vector<8x8xf32>
    %752 = tpu.matmul %750, %751, %cst_280 {dimension_numbers = #tpu.dot_dimension_numbers<[1], [1], [0], [0], [0, 0, 1, 0], [], []>} : vector<8x8xf32>, vector<8x8xf32>, vector<8x8xf32> -> vector<8x8xf32>
    %cst_281 = arith.constant 0.353553385 : f32
    %753 = vector.broadcast %cst_281 : f32 to vector<8x8xf32>
    %754 = arith.mulf %752, %753 : vector<8x8xf32>
    %cst_282 = arith.constant 0.000000e+00 : f32
    %755 = vector.broadcast %cst_282 : f32 to vector<8x8xf32>
    %756 = arith.cmpf oeq, %13, %755 : vector<8x8xf32>
    %cst_283 = arith.constant -1.000000e+09 : f32
    %757 = vector.broadcast %cst_283 : f32 to vector<8x8xf32>
    %758 = arith.select %756, %757, %754 : vector<8x8xi1>, vector<8x8xf32>
    %cst_284 = arith.constant dense<0xFF800000> : vector<8xf32>
    %759 = vector.multi_reduction <maximumf>, %758, %cst_284 [1] : vector<8x8xf32> to vector<8xf32>
    %760 = vector.shape_cast %759 : vector<8xf32> to vector<8x1xf32>
    %761 = vector.broadcast %760 : vector<8x1xf32> to vector<8x8xf32>
    %762 = arith.subf %758, %761 : vector<8x8xf32>
    %763 = math.exp %762 : vector<8x8xf32>
    %cst_285 = arith.constant dense<0.000000e+00> : vector<8xf32>
    %764 = vector.multi_reduction <add>, %763, %cst_285 [1] : vector<8x8xf32> to vector<8xf32>
    %765 = vector.shape_cast %764 : vector<8xf32> to vector<8x1xf32>
    %766 = vector.broadcast %765 : vector<8x1xf32> to vector<8x8xf32>
    %767 = arith.divf %763, %766 : vector<8x8xf32>
    %768 = vector.extract_strided_slice %681 {offsets = [0, 24], sizes = [8, 8], strides = [1, 1]} : vector<8x32xf32> to vector<8x8xf32>
    %cst_286 = arith.constant dense<0.000000e+00> : vector<8x8xf32>
    %769 = tpu.matmul %767, %768, %cst_286 {dimension_numbers = #tpu.dot_dimension_numbers<[1], [0], [0], [1], [0, 0, 1, 1], [], []>} : vector<8x8xf32>, vector<8x8xf32>, vector<8x8xf32> -> vector<8x8xf32>
    %770 = vector.extract_strided_slice %546 {offsets = [24, 0], sizes = [8, 32], strides = [1, 1]} : vector<32x32xf32> to vector<8x32xf32>
    %cst_287 = arith.constant dense<0.000000e+00> : vector<8x32xf32>
    %771 = tpu.matmul %769, %770, %cst_287 {dimension_numbers = #tpu.dot_dimension_numbers<[1], [0], [0], [1], [0, 0, 1, 1], [], []>} : vector<8x8xf32>, vector<8x32xf32>, vector<8x32xf32> -> vector<8x32xf32>
    %772 = arith.addf %749, %771 : vector<8x32xf32>
    %773 = vector.broadcast %548 : vector<1x32xf32> to vector<8x32xf32>
    %774 = arith.addf %772, %773 : vector<8x32xf32>
    %775 = tpu.concatenate %678, %774 in 0 : vector<8x32xf32>, vector<8x32xf32> -> vector<16x32xf32>
    %776 = arith.addf %540, %775 : vector<16x32xf32>
    %777 = vector.extract_strided_slice %550 {offsets = [1, 0], sizes = [1, 32], strides = [1, 1]} : vector<3x32xf32> to vector<1x32xf32>
    %778 = vector.extract_strided_slice %552 {offsets = [1, 0], sizes = [1, 32], strides = [1, 1]} : vector<3x32xf32> to vector<1x32xf32>
    %cst_288 = arith.constant dense<0.000000e+00> : vector<16xf32>
    %779 = vector.multi_reduction <add>, %776, %cst_288 [1] : vector<16x32xf32> to vector<16xf32>
    %780 = vector.shape_cast %779 : vector<16xf32> to vector<16x1xf32>
    %cst_289 = arith.constant 3.200000e+01 : f32
    %781 = vector.broadcast %cst_289 : f32 to vector<16x1xf32>
    %782 = arith.divf %780, %781 : vector<16x1xf32>
    %783 = vector.broadcast %782 : vector<16x1xf32> to vector<16x32xf32>
    %784 = arith.subf %776, %783 : vector<16x32xf32>
    %785 = arith.mulf %784, %784 : vector<16x32xf32>
    %cst_290 = arith.constant dense<0.000000e+00> : vector<16xf32>
    %786 = vector.multi_reduction <add>, %785, %cst_290 [1] : vector<16x32xf32> to vector<16xf32>
    %787 = vector.shape_cast %786 : vector<16xf32> to vector<16x1xf32>
    %cst_291 = arith.constant 3.100000e+01 : f32
    %788 = vector.broadcast %cst_291 : f32 to vector<16x1xf32>
    %789 = arith.divf %787, %788 : vector<16x1xf32>
    %790 = math.sqrt %789 : vector<16x1xf32>
    %791 = vector.broadcast %782 : vector<16x1xf32> to vector<16x32xf32>
    %792 = arith.subf %776, %791 : vector<16x32xf32>
    %793 = vector.broadcast %777 : vector<1x32xf32> to vector<16x32xf32>
    %794 = arith.mulf %793, %792 : vector<16x32xf32>
    %cst_292 = arith.constant 9.99999997E-7 : f32
    %795 = vector.broadcast %cst_292 : f32 to vector<16x1xf32>
    %796 = arith.addf %790, %795 : vector<16x1xf32>
    %797 = vector.broadcast %796 : vector<16x1xf32> to vector<16x32xf32>
    %798 = arith.divf %794, %797 : vector<16x32xf32>
    %799 = vector.broadcast %778 : vector<1x32xf32> to vector<16x32xf32>
    %800 = arith.addf %798, %799 : vector<16x32xf32>
    %801 = vector.extract_strided_slice %542 {offsets = [0, 0], sizes = [32, 32], strides = [1, 1]} : vector<32x96xf32> to vector<32x32xf32>
    %cst_293 = arith.constant dense<0.000000e+00> : vector<16x32xf32>
    %802 = tpu.matmul %800, %801, %cst_293 {dimension_numbers = #tpu.dot_dimension_numbers<[1], [0], [0], [1], [0, 0, 1, 1], [], []>} : vector<16x32xf32>, vector<32x32xf32>, vector<16x32xf32> -> vector<16x32xf32>
    %803 = vector.extract_strided_slice %544 {offsets = [0, 0], sizes = [1, 32], strides = [1, 1]} : vector<1x96xf32> to vector<1x32xf32>
    %804 = vector.broadcast %803 : vector<1x32xf32> to vector<16x32xf32>
    %805 = arith.addf %802, %804 : vector<16x32xf32>
    %806 = vector.extract_strided_slice %542 {offsets = [0, 32], sizes = [32, 64], strides = [1, 1]} : vector<32x96xf32> to vector<32x64xf32>
    %cst_294 = arith.constant dense<0.000000e+00> : vector<16x64xf32>
    %807 = tpu.matmul %9, %806, %cst_294 {dimension_numbers = #tpu.dot_dimension_numbers<[1], [0], [0], [1], [0, 0, 1, 1], [], []>} : vector<16x32xf32>, vector<32x64xf32>, vector<16x64xf32> -> vector<16x64xf32>
    %808 = vector.extract_strided_slice %544 {offsets = [0, 32], sizes = [1, 64], strides = [1, 1]} : vector<1x96xf32> to vector<1x64xf32>
    %809 = vector.broadcast %808 : vector<1x64xf32> to vector<16x64xf32>
    %810 = arith.addf %807, %809 : vector<16x64xf32>
    %811 = vector.extract_strided_slice %810 {offsets = [0, 0], sizes = [16, 32], strides = [1, 1]} : vector<16x64xf32> to vector<16x32xf32>
    %812 = vector.extract_strided_slice %810 {offsets = [0, 32], sizes = [16, 32], strides = [1, 1]} : vector<16x64xf32> to vector<16x32xf32>
    %813 = vector.extract_strided_slice %805 {offsets = [0, 0], sizes = [8, 32], strides = [1, 1]} : vector<16x32xf32> to vector<8x32xf32>
    %814 = vector.extract_strided_slice %811 {offsets = [0, 0], sizes = [8, 32], strides = [1, 1]} : vector<16x32xf32> to vector<8x32xf32>
    %815 = vector.extract_strided_slice %812 {offsets = [0, 0], sizes = [8, 32], strides = [1, 1]} : vector<16x32xf32> to vector<8x32xf32>
    %816 = vector.extract_strided_slice %813 {offsets = [0, 0], sizes = [8, 8], strides = [1, 1]} : vector<8x32xf32> to vector<8x8xf32>
    %817 = vector.extract_strided_slice %814 {offsets = [0, 0], sizes = [8, 8], strides = [1, 1]} : vector<8x32xf32> to vector<8x8xf32>
    %cst_295 = arith.constant dense<0.000000e+00> : vector<8x8xf32>
    %818 = tpu.matmul %816, %817, %cst_295 {dimension_numbers = #tpu.dot_dimension_numbers<[1], [1], [0], [0], [0, 0, 1, 0], [], []>} : vector<8x8xf32>, vector<8x8xf32>, vector<8x8xf32> -> vector<8x8xf32>
    %cst_296 = arith.constant 0.353553385 : f32
    %819 = vector.broadcast %cst_296 : f32 to vector<8x8xf32>
    %820 = arith.mulf %818, %819 : vector<8x8xf32>
    %cst_297 = arith.constant 0.000000e+00 : f32
    %821 = vector.broadcast %cst_297 : f32 to vector<1x8xf32>
    %822 = arith.cmpf oeq, %15, %821 : vector<1x8xf32>
    %cst_298 = arith.constant -1.000000e+09 : f32
    %823 = vector.shape_cast %822 : vector<1x8xi1> to vector<1x8xi1>
    %824 = vector.broadcast %823 : vector<1x8xi1> to vector<8x8xi1>
    %825 = vector.broadcast %cst_298 : f32 to vector<8x8xf32>
    %826 = arith.select %824, %825, %820 : vector<8x8xi1>, vector<8x8xf32>
    %cst_299 = arith.constant dense<0xFF800000> : vector<8xf32>
    %827 = vector.multi_reduction <maximumf>, %826, %cst_299 [1] : vector<8x8xf32> to vector<8xf32>
    %828 = vector.shape_cast %827 : vector<8xf32> to vector<8x1xf32>
    %829 = vector.broadcast %828 : vector<8x1xf32> to vector<8x8xf32>
    %830 = arith.subf %826, %829 : vector<8x8xf32>
    %831 = math.exp %830 : vector<8x8xf32>
    %cst_300 = arith.constant dense<0.000000e+00> : vector<8xf32>
    %832 = vector.multi_reduction <add>, %831, %cst_300 [1] : vector<8x8xf32> to vector<8xf32>
    %833 = vector.shape_cast %832 : vector<8xf32> to vector<8x1xf32>
    %834 = vector.broadcast %833 : vector<8x1xf32> to vector<8x8xf32>
    %835 = arith.divf %831, %834 : vector<8x8xf32>
    %836 = vector.extract_strided_slice %815 {offsets = [0, 0], sizes = [8, 8], strides = [1, 1]} : vector<8x32xf32> to vector<8x8xf32>
    %cst_301 = arith.constant dense<0.000000e+00> : vector<8x8xf32>
    %837 = tpu.matmul %835, %836, %cst_301 {dimension_numbers = #tpu.dot_dimension_numbers<[1], [0], [0], [1], [0, 0, 1, 1], [], []>} : vector<8x8xf32>, vector<8x8xf32>, vector<8x8xf32> -> vector<8x8xf32>
    %838 = vector.extract_strided_slice %546 {offsets = [0, 0], sizes = [8, 32], strides = [1, 1]} : vector<32x32xf32> to vector<8x32xf32>
    %cst_302 = arith.constant dense<0.000000e+00> : vector<8x32xf32>
    %839 = tpu.matmul %837, %838, %cst_302 {dimension_numbers = #tpu.dot_dimension_numbers<[1], [0], [0], [1], [0, 0, 1, 1], [], []>} : vector<8x8xf32>, vector<8x32xf32>, vector<8x32xf32> -> vector<8x32xf32>
    %840 = vector.extract_strided_slice %813 {offsets = [0, 8], sizes = [8, 8], strides = [1, 1]} : vector<8x32xf32> to vector<8x8xf32>
    %841 = vector.extract_strided_slice %814 {offsets = [0, 8], sizes = [8, 8], strides = [1, 1]} : vector<8x32xf32> to vector<8x8xf32>
    %cst_303 = arith.constant dense<0.000000e+00> : vector<8x8xf32>
    %842 = tpu.matmul %840, %841, %cst_303 {dimension_numbers = #tpu.dot_dimension_numbers<[1], [1], [0], [0], [0, 0, 1, 0], [], []>} : vector<8x8xf32>, vector<8x8xf32>, vector<8x8xf32> -> vector<8x8xf32>
    %cst_304 = arith.constant 0.353553385 : f32
    %843 = vector.broadcast %cst_304 : f32 to vector<8x8xf32>
    %844 = arith.mulf %842, %843 : vector<8x8xf32>
    %cst_305 = arith.constant 0.000000e+00 : f32
    %845 = vector.broadcast %cst_305 : f32 to vector<1x8xf32>
    %846 = arith.cmpf oeq, %15, %845 : vector<1x8xf32>
    %cst_306 = arith.constant -1.000000e+09 : f32
    %847 = vector.shape_cast %846 : vector<1x8xi1> to vector<1x8xi1>
    %848 = vector.broadcast %847 : vector<1x8xi1> to vector<8x8xi1>
    %849 = vector.broadcast %cst_306 : f32 to vector<8x8xf32>
    %850 = arith.select %848, %849, %844 : vector<8x8xi1>, vector<8x8xf32>
    %cst_307 = arith.constant dense<0xFF800000> : vector<8xf32>
    %851 = vector.multi_reduction <maximumf>, %850, %cst_307 [1] : vector<8x8xf32> to vector<8xf32>
    %852 = vector.shape_cast %851 : vector<8xf32> to vector<8x1xf32>
    %853 = vector.broadcast %852 : vector<8x1xf32> to vector<8x8xf32>
    %854 = arith.subf %850, %853 : vector<8x8xf32>
    %855 = math.exp %854 : vector<8x8xf32>
    %cst_308 = arith.constant dense<0.000000e+00> : vector<8xf32>
    %856 = vector.multi_reduction <add>, %855, %cst_308 [1] : vector<8x8xf32> to vector<8xf32>
    %857 = vector.shape_cast %856 : vector<8xf32> to vector<8x1xf32>
    %858 = vector.broadcast %857 : vector<8x1xf32> to vector<8x8xf32>
    %859 = arith.divf %855, %858 : vector<8x8xf32>
    %860 = vector.extract_strided_slice %815 {offsets = [0, 8], sizes = [8, 8], strides = [1, 1]} : vector<8x32xf32> to vector<8x8xf32>
    %cst_309 = arith.constant dense<0.000000e+00> : vector<8x8xf32>
    %861 = tpu.matmul %859, %860, %cst_309 {dimension_numbers = #tpu.dot_dimension_numbers<[1], [0], [0], [1], [0, 0, 1, 1], [], []>} : vector<8x8xf32>, vector<8x8xf32>, vector<8x8xf32> -> vector<8x8xf32>
    %862 = vector.extract_strided_slice %546 {offsets = [8, 0], sizes = [8, 32], strides = [1, 1]} : vector<32x32xf32> to vector<8x32xf32>
    %cst_310 = arith.constant dense<0.000000e+00> : vector<8x32xf32>
    %863 = tpu.matmul %861, %862, %cst_310 {dimension_numbers = #tpu.dot_dimension_numbers<[1], [0], [0], [1], [0, 0, 1, 1], [], []>} : vector<8x8xf32>, vector<8x32xf32>, vector<8x32xf32> -> vector<8x32xf32>
    %864 = arith.addf %839, %863 : vector<8x32xf32>
    %865 = vector.extract_strided_slice %813 {offsets = [0, 16], sizes = [8, 8], strides = [1, 1]} : vector<8x32xf32> to vector<8x8xf32>
    %866 = vector.extract_strided_slice %814 {offsets = [0, 16], sizes = [8, 8], strides = [1, 1]} : vector<8x32xf32> to vector<8x8xf32>
    %cst_311 = arith.constant dense<0.000000e+00> : vector<8x8xf32>
    %867 = tpu.matmul %865, %866, %cst_311 {dimension_numbers = #tpu.dot_dimension_numbers<[1], [1], [0], [0], [0, 0, 1, 0], [], []>} : vector<8x8xf32>, vector<8x8xf32>, vector<8x8xf32> -> vector<8x8xf32>
    %cst_312 = arith.constant 0.353553385 : f32
    %868 = vector.broadcast %cst_312 : f32 to vector<8x8xf32>
    %869 = arith.mulf %867, %868 : vector<8x8xf32>
    %cst_313 = arith.constant 0.000000e+00 : f32
    %870 = vector.broadcast %cst_313 : f32 to vector<1x8xf32>
    %871 = arith.cmpf oeq, %15, %870 : vector<1x8xf32>
    %cst_314 = arith.constant -1.000000e+09 : f32
    %872 = vector.shape_cast %871 : vector<1x8xi1> to vector<1x8xi1>
    %873 = vector.broadcast %872 : vector<1x8xi1> to vector<8x8xi1>
    %874 = vector.broadcast %cst_314 : f32 to vector<8x8xf32>
    %875 = arith.select %873, %874, %869 : vector<8x8xi1>, vector<8x8xf32>
    %cst_315 = arith.constant dense<0xFF800000> : vector<8xf32>
    %876 = vector.multi_reduction <maximumf>, %875, %cst_315 [1] : vector<8x8xf32> to vector<8xf32>
    %877 = vector.shape_cast %876 : vector<8xf32> to vector<8x1xf32>
    %878 = vector.broadcast %877 : vector<8x1xf32> to vector<8x8xf32>
    %879 = arith.subf %875, %878 : vector<8x8xf32>
    %880 = math.exp %879 : vector<8x8xf32>
    %cst_316 = arith.constant dense<0.000000e+00> : vector<8xf32>
    %881 = vector.multi_reduction <add>, %880, %cst_316 [1] : vector<8x8xf32> to vector<8xf32>
    %882 = vector.shape_cast %881 : vector<8xf32> to vector<8x1xf32>
    %883 = vector.broadcast %882 : vector<8x1xf32> to vector<8x8xf32>
    %884 = arith.divf %880, %883 : vector<8x8xf32>
    %885 = vector.extract_strided_slice %815 {offsets = [0, 16], sizes = [8, 8], strides = [1, 1]} : vector<8x32xf32> to vector<8x8xf32>
    %cst_317 = arith.constant dense<0.000000e+00> : vector<8x8xf32>
    %886 = tpu.matmul %884, %885, %cst_317 {dimension_numbers = #tpu.dot_dimension_numbers<[1], [0], [0], [1], [0, 0, 1, 1], [], []>} : vector<8x8xf32>, vector<8x8xf32>, vector<8x8xf32> -> vector<8x8xf32>
    %887 = vector.extract_strided_slice %546 {offsets = [16, 0], sizes = [8, 32], strides = [1, 1]} : vector<32x32xf32> to vector<8x32xf32>
    %cst_318 = arith.constant dense<0.000000e+00> : vector<8x32xf32>
    %888 = tpu.matmul %886, %887, %cst_318 {dimension_numbers = #tpu.dot_dimension_numbers<[1], [0], [0], [1], [0, 0, 1, 1], [], []>} : vector<8x8xf32>, vector<8x32xf32>, vector<8x32xf32> -> vector<8x32xf32>
    %889 = arith.addf %864, %888 : vector<8x32xf32>
    %890 = vector.extract_strided_slice %813 {offsets = [0, 24], sizes = [8, 8], strides = [1, 1]} : vector<8x32xf32> to vector<8x8xf32>
    %891 = vector.extract_strided_slice %814 {offsets = [0, 24], sizes = [8, 8], strides = [1, 1]} : vector<8x32xf32> to vector<8x8xf32>
    %cst_319 = arith.constant dense<0.000000e+00> : vector<8x8xf32>
    %892 = tpu.matmul %890, %891, %cst_319 {dimension_numbers = #tpu.dot_dimension_numbers<[1], [1], [0], [0], [0, 0, 1, 0], [], []>} : vector<8x8xf32>, vector<8x8xf32>, vector<8x8xf32> -> vector<8x8xf32>
    %cst_320 = arith.constant 0.353553385 : f32
    %893 = vector.broadcast %cst_320 : f32 to vector<8x8xf32>
    %894 = arith.mulf %892, %893 : vector<8x8xf32>
    %cst_321 = arith.constant 0.000000e+00 : f32
    %895 = vector.broadcast %cst_321 : f32 to vector<1x8xf32>
    %896 = arith.cmpf oeq, %15, %895 : vector<1x8xf32>
    %cst_322 = arith.constant -1.000000e+09 : f32
    %897 = vector.shape_cast %896 : vector<1x8xi1> to vector<1x8xi1>
    %898 = vector.broadcast %897 : vector<1x8xi1> to vector<8x8xi1>
    %899 = vector.broadcast %cst_322 : f32 to vector<8x8xf32>
    %900 = arith.select %898, %899, %894 : vector<8x8xi1>, vector<8x8xf32>
    %cst_323 = arith.constant dense<0xFF800000> : vector<8xf32>
    %901 = vector.multi_reduction <maximumf>, %900, %cst_323 [1] : vector<8x8xf32> to vector<8xf32>
    %902 = vector.shape_cast %901 : vector<8xf32> to vector<8x1xf32>
    %903 = vector.broadcast %902 : vector<8x1xf32> to vector<8x8xf32>
    %904 = arith.subf %900, %903 : vector<8x8xf32>
    %905 = math.exp %904 : vector<8x8xf32>
    %cst_324 = arith.constant dense<0.000000e+00> : vector<8xf32>
    %906 = vector.multi_reduction <add>, %905, %cst_324 [1] : vector<8x8xf32> to vector<8xf32>
    %907 = vector.shape_cast %906 : vector<8xf32> to vector<8x1xf32>
    %908 = vector.broadcast %907 : vector<8x1xf32> to vector<8x8xf32>
    %909 = arith.divf %905, %908 : vector<8x8xf32>
    %910 = vector.extract_strided_slice %815 {offsets = [0, 24], sizes = [8, 8], strides = [1, 1]} : vector<8x32xf32> to vector<8x8xf32>
    %cst_325 = arith.constant dense<0.000000e+00> : vector<8x8xf32>
    %911 = tpu.matmul %909, %910, %cst_325 {dimension_numbers = #tpu.dot_dimension_numbers<[1], [0], [0], [1], [0, 0, 1, 1], [], []>} : vector<8x8xf32>, vector<8x8xf32>, vector<8x8xf32> -> vector<8x8xf32>
    %912 = vector.extract_strided_slice %546 {offsets = [24, 0], sizes = [8, 32], strides = [1, 1]} : vector<32x32xf32> to vector<8x32xf32>
    %cst_326 = arith.constant dense<0.000000e+00> : vector<8x32xf32>
    %913 = tpu.matmul %911, %912, %cst_326 {dimension_numbers = #tpu.dot_dimension_numbers<[1], [0], [0], [1], [0, 0, 1, 1], [], []>} : vector<8x8xf32>, vector<8x32xf32>, vector<8x32xf32> -> vector<8x32xf32>
    %914 = arith.addf %889, %913 : vector<8x32xf32>
    %915 = vector.broadcast %548 : vector<1x32xf32> to vector<8x32xf32>
    %916 = arith.addf %914, %915 : vector<8x32xf32>
    %917 = vector.extract_strided_slice %805 {offsets = [8, 0], sizes = [8, 32], strides = [1, 1]} : vector<16x32xf32> to vector<8x32xf32>
    %918 = vector.extract_strided_slice %811 {offsets = [8, 0], sizes = [8, 32], strides = [1, 1]} : vector<16x32xf32> to vector<8x32xf32>
    %919 = vector.extract_strided_slice %812 {offsets = [8, 0], sizes = [8, 32], strides = [1, 1]} : vector<16x32xf32> to vector<8x32xf32>
    %920 = vector.extract_strided_slice %917 {offsets = [0, 0], sizes = [8, 8], strides = [1, 1]} : vector<8x32xf32> to vector<8x8xf32>
    %921 = vector.extract_strided_slice %918 {offsets = [0, 0], sizes = [8, 8], strides = [1, 1]} : vector<8x32xf32> to vector<8x8xf32>
    %cst_327 = arith.constant dense<0.000000e+00> : vector<8x8xf32>
    %922 = tpu.matmul %920, %921, %cst_327 {dimension_numbers = #tpu.dot_dimension_numbers<[1], [1], [0], [0], [0, 0, 1, 0], [], []>} : vector<8x8xf32>, vector<8x8xf32>, vector<8x8xf32> -> vector<8x8xf32>
    %cst_328 = arith.constant 0.353553385 : f32
    %923 = vector.broadcast %cst_328 : f32 to vector<8x8xf32>
    %924 = arith.mulf %922, %923 : vector<8x8xf32>
    %cst_329 = arith.constant 0.000000e+00 : f32
    %925 = vector.broadcast %cst_329 : f32 to vector<1x8xf32>
    %926 = arith.cmpf oeq, %17, %925 : vector<1x8xf32>
    %cst_330 = arith.constant -1.000000e+09 : f32
    %927 = vector.shape_cast %926 : vector<1x8xi1> to vector<1x8xi1>
    %928 = vector.broadcast %927 : vector<1x8xi1> to vector<8x8xi1>
    %929 = vector.broadcast %cst_330 : f32 to vector<8x8xf32>
    %930 = arith.select %928, %929, %924 : vector<8x8xi1>, vector<8x8xf32>
    %cst_331 = arith.constant dense<0xFF800000> : vector<8xf32>
    %931 = vector.multi_reduction <maximumf>, %930, %cst_331 [1] : vector<8x8xf32> to vector<8xf32>
    %932 = vector.shape_cast %931 : vector<8xf32> to vector<8x1xf32>
    %933 = vector.broadcast %932 : vector<8x1xf32> to vector<8x8xf32>
    %934 = arith.subf %930, %933 : vector<8x8xf32>
    %935 = math.exp %934 : vector<8x8xf32>
    %cst_332 = arith.constant dense<0.000000e+00> : vector<8xf32>
    %936 = vector.multi_reduction <add>, %935, %cst_332 [1] : vector<8x8xf32> to vector<8xf32>
    %937 = vector.shape_cast %936 : vector<8xf32> to vector<8x1xf32>
    %938 = vector.broadcast %937 : vector<8x1xf32> to vector<8x8xf32>
    %939 = arith.divf %935, %938 : vector<8x8xf32>
    %940 = vector.extract_strided_slice %919 {offsets = [0, 0], sizes = [8, 8], strides = [1, 1]} : vector<8x32xf32> to vector<8x8xf32>
    %cst_333 = arith.constant dense<0.000000e+00> : vector<8x8xf32>
    %941 = tpu.matmul %939, %940, %cst_333 {dimension_numbers = #tpu.dot_dimension_numbers<[1], [0], [0], [1], [0, 0, 1, 1], [], []>} : vector<8x8xf32>, vector<8x8xf32>, vector<8x8xf32> -> vector<8x8xf32>
    %942 = vector.extract_strided_slice %546 {offsets = [0, 0], sizes = [8, 32], strides = [1, 1]} : vector<32x32xf32> to vector<8x32xf32>
    %cst_334 = arith.constant dense<0.000000e+00> : vector<8x32xf32>
    %943 = tpu.matmul %941, %942, %cst_334 {dimension_numbers = #tpu.dot_dimension_numbers<[1], [0], [0], [1], [0, 0, 1, 1], [], []>} : vector<8x8xf32>, vector<8x32xf32>, vector<8x32xf32> -> vector<8x32xf32>
    %944 = vector.extract_strided_slice %917 {offsets = [0, 8], sizes = [8, 8], strides = [1, 1]} : vector<8x32xf32> to vector<8x8xf32>
    %945 = vector.extract_strided_slice %918 {offsets = [0, 8], sizes = [8, 8], strides = [1, 1]} : vector<8x32xf32> to vector<8x8xf32>
    %cst_335 = arith.constant dense<0.000000e+00> : vector<8x8xf32>
    %946 = tpu.matmul %944, %945, %cst_335 {dimension_numbers = #tpu.dot_dimension_numbers<[1], [1], [0], [0], [0, 0, 1, 0], [], []>} : vector<8x8xf32>, vector<8x8xf32>, vector<8x8xf32> -> vector<8x8xf32>
    %cst_336 = arith.constant 0.353553385 : f32
    %947 = vector.broadcast %cst_336 : f32 to vector<8x8xf32>
    %948 = arith.mulf %946, %947 : vector<8x8xf32>
    %cst_337 = arith.constant 0.000000e+00 : f32
    %949 = vector.broadcast %cst_337 : f32 to vector<1x8xf32>
    %950 = arith.cmpf oeq, %17, %949 : vector<1x8xf32>
    %cst_338 = arith.constant -1.000000e+09 : f32
    %951 = vector.shape_cast %950 : vector<1x8xi1> to vector<1x8xi1>
    %952 = vector.broadcast %951 : vector<1x8xi1> to vector<8x8xi1>
    %953 = vector.broadcast %cst_338 : f32 to vector<8x8xf32>
    %954 = arith.select %952, %953, %948 : vector<8x8xi1>, vector<8x8xf32>
    %cst_339 = arith.constant dense<0xFF800000> : vector<8xf32>
    %955 = vector.multi_reduction <maximumf>, %954, %cst_339 [1] : vector<8x8xf32> to vector<8xf32>
    %956 = vector.shape_cast %955 : vector<8xf32> to vector<8x1xf32>
    %957 = vector.broadcast %956 : vector<8x1xf32> to vector<8x8xf32>
    %958 = arith.subf %954, %957 : vector<8x8xf32>
    %959 = math.exp %958 : vector<8x8xf32>
    %cst_340 = arith.constant dense<0.000000e+00> : vector<8xf32>
    %960 = vector.multi_reduction <add>, %959, %cst_340 [1] : vector<8x8xf32> to vector<8xf32>
    %961 = vector.shape_cast %960 : vector<8xf32> to vector<8x1xf32>
    %962 = vector.broadcast %961 : vector<8x1xf32> to vector<8x8xf32>
    %963 = arith.divf %959, %962 : vector<8x8xf32>
    %964 = vector.extract_strided_slice %919 {offsets = [0, 8], sizes = [8, 8], strides = [1, 1]} : vector<8x32xf32> to vector<8x8xf32>
    %cst_341 = arith.constant dense<0.000000e+00> : vector<8x8xf32>
    %965 = tpu.matmul %963, %964, %cst_341 {dimension_numbers = #tpu.dot_dimension_numbers<[1], [0], [0], [1], [0, 0, 1, 1], [], []>} : vector<8x8xf32>, vector<8x8xf32>, vector<8x8xf32> -> vector<8x8xf32>
    %966 = vector.extract_strided_slice %546 {offsets = [8, 0], sizes = [8, 32], strides = [1, 1]} : vector<32x32xf32> to vector<8x32xf32>
    %cst_342 = arith.constant dense<0.000000e+00> : vector<8x32xf32>
    %967 = tpu.matmul %965, %966, %cst_342 {dimension_numbers = #tpu.dot_dimension_numbers<[1], [0], [0], [1], [0, 0, 1, 1], [], []>} : vector<8x8xf32>, vector<8x32xf32>, vector<8x32xf32> -> vector<8x32xf32>
    %968 = arith.addf %943, %967 : vector<8x32xf32>
    %969 = vector.extract_strided_slice %917 {offsets = [0, 16], sizes = [8, 8], strides = [1, 1]} : vector<8x32xf32> to vector<8x8xf32>
    %970 = vector.extract_strided_slice %918 {offsets = [0, 16], sizes = [8, 8], strides = [1, 1]} : vector<8x32xf32> to vector<8x8xf32>
    %cst_343 = arith.constant dense<0.000000e+00> : vector<8x8xf32>
    %971 = tpu.matmul %969, %970, %cst_343 {dimension_numbers = #tpu.dot_dimension_numbers<[1], [1], [0], [0], [0, 0, 1, 0], [], []>} : vector<8x8xf32>, vector<8x8xf32>, vector<8x8xf32> -> vector<8x8xf32>
    %cst_344 = arith.constant 0.353553385 : f32
    %972 = vector.broadcast %cst_344 : f32 to vector<8x8xf32>
    %973 = arith.mulf %971, %972 : vector<8x8xf32>
    %cst_345 = arith.constant 0.000000e+00 : f32
    %974 = vector.broadcast %cst_345 : f32 to vector<1x8xf32>
    %975 = arith.cmpf oeq, %17, %974 : vector<1x8xf32>
    %cst_346 = arith.constant -1.000000e+09 : f32
    %976 = vector.shape_cast %975 : vector<1x8xi1> to vector<1x8xi1>
    %977 = vector.broadcast %976 : vector<1x8xi1> to vector<8x8xi1>
    %978 = vector.broadcast %cst_346 : f32 to vector<8x8xf32>
    %979 = arith.select %977, %978, %973 : vector<8x8xi1>, vector<8x8xf32>
    %cst_347 = arith.constant dense<0xFF800000> : vector<8xf32>
    %980 = vector.multi_reduction <maximumf>, %979, %cst_347 [1] : vector<8x8xf32> to vector<8xf32>
    %981 = vector.shape_cast %980 : vector<8xf32> to vector<8x1xf32>
    %982 = vector.broadcast %981 : vector<8x1xf32> to vector<8x8xf32>
    %983 = arith.subf %979, %982 : vector<8x8xf32>
    %984 = math.exp %983 : vector<8x8xf32>
    %cst_348 = arith.constant dense<0.000000e+00> : vector<8xf32>
    %985 = vector.multi_reduction <add>, %984, %cst_348 [1] : vector<8x8xf32> to vector<8xf32>
    %986 = vector.shape_cast %985 : vector<8xf32> to vector<8x1xf32>
    %987 = vector.broadcast %986 : vector<8x1xf32> to vector<8x8xf32>
    %988 = arith.divf %984, %987 : vector<8x8xf32>
    %989 = vector.extract_strided_slice %919 {offsets = [0, 16], sizes = [8, 8], strides = [1, 1]} : vector<8x32xf32> to vector<8x8xf32>
    %cst_349 = arith.constant dense<0.000000e+00> : vector<8x8xf32>
    %990 = tpu.matmul %988, %989, %cst_349 {dimension_numbers = #tpu.dot_dimension_numbers<[1], [0], [0], [1], [0, 0, 1, 1], [], []>} : vector<8x8xf32>, vector<8x8xf32>, vector<8x8xf32> -> vector<8x8xf32>
    %991 = vector.extract_strided_slice %546 {offsets = [16, 0], sizes = [8, 32], strides = [1, 1]} : vector<32x32xf32> to vector<8x32xf32>
    %cst_350 = arith.constant dense<0.000000e+00> : vector<8x32xf32>
    %992 = tpu.matmul %990, %991, %cst_350 {dimension_numbers = #tpu.dot_dimension_numbers<[1], [0], [0], [1], [0, 0, 1, 1], [], []>} : vector<8x8xf32>, vector<8x32xf32>, vector<8x32xf32> -> vector<8x32xf32>
    %993 = arith.addf %968, %992 : vector<8x32xf32>
    %994 = vector.extract_strided_slice %917 {offsets = [0, 24], sizes = [8, 8], strides = [1, 1]} : vector<8x32xf32> to vector<8x8xf32>
    %995 = vector.extract_strided_slice %918 {offsets = [0, 24], sizes = [8, 8], strides = [1, 1]} : vector<8x32xf32> to vector<8x8xf32>
    %cst_351 = arith.constant dense<0.000000e+00> : vector<8x8xf32>
    %996 = tpu.matmul %994, %995, %cst_351 {dimension_numbers = #tpu.dot_dimension_numbers<[1], [1], [0], [0], [0, 0, 1, 0], [], []>} : vector<8x8xf32>, vector<8x8xf32>, vector<8x8xf32> -> vector<8x8xf32>
    %cst_352 = arith.constant 0.353553385 : f32
    %997 = vector.broadcast %cst_352 : f32 to vector<8x8xf32>
    %998 = arith.mulf %996, %997 : vector<8x8xf32>
    %cst_353 = arith.constant 0.000000e+00 : f32
    %999 = vector.broadcast %cst_353 : f32 to vector<1x8xf32>
    %1000 = arith.cmpf oeq, %17, %999 : vector<1x8xf32>
    %cst_354 = arith.constant -1.000000e+09 : f32
    %1001 = vector.shape_cast %1000 : vector<1x8xi1> to vector<1x8xi1>
    %1002 = vector.broadcast %1001 : vector<1x8xi1> to vector<8x8xi1>
    %1003 = vector.broadcast %cst_354 : f32 to vector<8x8xf32>
    %1004 = arith.select %1002, %1003, %998 : vector<8x8xi1>, vector<8x8xf32>
    %cst_355 = arith.constant dense<0xFF800000> : vector<8xf32>
    %1005 = vector.multi_reduction <maximumf>, %1004, %cst_355 [1] : vector<8x8xf32> to vector<8xf32>
    %1006 = vector.shape_cast %1005 : vector<8xf32> to vector<8x1xf32>
    %1007 = vector.broadcast %1006 : vector<8x1xf32> to vector<8x8xf32>
    %1008 = arith.subf %1004, %1007 : vector<8x8xf32>
    %1009 = math.exp %1008 : vector<8x8xf32>
    %cst_356 = arith.constant dense<0.000000e+00> : vector<8xf32>
    %1010 = vector.multi_reduction <add>, %1009, %cst_356 [1] : vector<8x8xf32> to vector<8xf32>
    %1011 = vector.shape_cast %1010 : vector<8xf32> to vector<8x1xf32>
    %1012 = vector.broadcast %1011 : vector<8x1xf32> to vector<8x8xf32>
    %1013 = arith.divf %1009, %1012 : vector<8x8xf32>
    %1014 = vector.extract_strided_slice %919 {offsets = [0, 24], sizes = [8, 8], strides = [1, 1]} : vector<8x32xf32> to vector<8x8xf32>
    %cst_357 = arith.constant dense<0.000000e+00> : vector<8x8xf32>
    %1015 = tpu.matmul %1013, %1014, %cst_357 {dimension_numbers = #tpu.dot_dimension_numbers<[1], [0], [0], [1], [0, 0, 1, 1], [], []>} : vector<8x8xf32>, vector<8x8xf32>, vector<8x8xf32> -> vector<8x8xf32>
    %1016 = vector.extract_strided_slice %546 {offsets = [24, 0], sizes = [8, 32], strides = [1, 1]} : vector<32x32xf32> to vector<8x32xf32>
    %cst_358 = arith.constant dense<0.000000e+00> : vector<8x32xf32>
    %1017 = tpu.matmul %1015, %1016, %cst_358 {dimension_numbers = #tpu.dot_dimension_numbers<[1], [0], [0], [1], [0, 0, 1, 1], [], []>} : vector<8x8xf32>, vector<8x32xf32>, vector<8x32xf32> -> vector<8x32xf32>
    %1018 = arith.addf %993, %1017 : vector<8x32xf32>
    %1019 = vector.broadcast %548 : vector<1x32xf32> to vector<8x32xf32>
    %1020 = arith.addf %1018, %1019 : vector<8x32xf32>
    %1021 = tpu.concatenate %916, %1020 in 0 : vector<8x32xf32>, vector<8x32xf32> -> vector<16x32xf32>
    %1022 = arith.addf %776, %1021 : vector<16x32xf32>
    %1023 = vector.extract_strided_slice %550 {offsets = [2, 0], sizes = [1, 32], strides = [1, 1]} : vector<3x32xf32> to vector<1x32xf32>
    %1024 = vector.extract_strided_slice %552 {offsets = [2, 0], sizes = [1, 32], strides = [1, 1]} : vector<3x32xf32> to vector<1x32xf32>
    %cst_359 = arith.constant dense<0.000000e+00> : vector<16xf32>
    %1025 = vector.multi_reduction <add>, %1022, %cst_359 [1] : vector<16x32xf32> to vector<16xf32>
    %1026 = vector.shape_cast %1025 : vector<16xf32> to vector<16x1xf32>
    %cst_360 = arith.constant 3.200000e+01 : f32
    %1027 = vector.broadcast %cst_360 : f32 to vector<16x1xf32>
    %1028 = arith.divf %1026, %1027 : vector<16x1xf32>
    %1029 = vector.broadcast %1028 : vector<16x1xf32> to vector<16x32xf32>
    %1030 = arith.subf %1022, %1029 : vector<16x32xf32>
    %1031 = arith.mulf %1030, %1030 : vector<16x32xf32>
    %cst_361 = arith.constant dense<0.000000e+00> : vector<16xf32>
    %1032 = vector.multi_reduction <add>, %1031, %cst_361 [1] : vector<16x32xf32> to vector<16xf32>
    %1033 = vector.shape_cast %1032 : vector<16xf32> to vector<16x1xf32>
    %cst_362 = arith.constant 3.100000e+01 : f32
    %1034 = vector.broadcast %cst_362 : f32 to vector<16x1xf32>
    %1035 = arith.divf %1033, %1034 : vector<16x1xf32>
    %1036 = math.sqrt %1035 : vector<16x1xf32>
    %1037 = vector.broadcast %1028 : vector<16x1xf32> to vector<16x32xf32>
    %1038 = arith.subf %1022, %1037 : vector<16x32xf32>
    %1039 = vector.broadcast %1023 : vector<1x32xf32> to vector<16x32xf32>
    %1040 = arith.mulf %1039, %1038 : vector<16x32xf32>
    %cst_363 = arith.constant 9.99999997E-7 : f32
    %1041 = vector.broadcast %cst_363 : f32 to vector<16x1xf32>
    %1042 = arith.addf %1036, %1041 : vector<16x1xf32>
    %1043 = vector.broadcast %1042 : vector<16x1xf32> to vector<16x32xf32>
    %1044 = arith.divf %1040, %1043 : vector<16x32xf32>
    %1045 = vector.broadcast %1024 : vector<1x32xf32> to vector<16x32xf32>
    %1046 = arith.addf %1044, %1045 : vector<16x32xf32>
    %c1_364 = arith.constant 1 : index
    %c0_365 = arith.constant 0 : index
    %c0_366 = arith.constant 0 : index
    %1047 = vector.load %arg10[%c1_364, %c0_365, %c0_366] : memref<2x32x64xf32, #tpu.memory_space<vmem>>, vector<1x32x64xf32>
    %1048 = vector.shape_cast %1047 : vector<1x32x64xf32> to vector<32x64xf32>
    %cst_367 = arith.constant dense<0.000000e+00> : vector<16x64xf32>
    %1049 = tpu.matmul %1046, %1048, %cst_367 {dimension_numbers = #tpu.dot_dimension_numbers<[1], [0], [0], [1], [0, 0, 1, 1], [], []>} : vector<16x32xf32>, vector<32x64xf32>, vector<16x64xf32> -> vector<16x64xf32>
    %c1_368 = arith.constant 1 : index
    %c0_369 = arith.constant 0 : index
    %c0_370 = arith.constant 0 : index
    %1050 = vector.load %arg11[%c1_368, %c0_369, %c0_370] : memref<2x1x64xf32, #tpu.memory_space<vmem>>, vector<1x1x64xf32>
    %1051 = vector.shape_cast %1050 : vector<1x1x64xf32> to vector<1x64xf32>
    %1052 = vector.broadcast %1051 : vector<1x64xf32> to vector<16x64xf32>
    %1053 = arith.addf %1049, %1052 : vector<16x64xf32>
    %cst_371 = arith.constant 0.000000e+00 : f32
    %1054 = vector.broadcast %cst_371 : f32 to vector<16x64xf32>
    %1055 = arith.maximumf %1053, %1054 : vector<16x64xf32>
    %c1_372 = arith.constant 1 : index
    %c0_373 = arith.constant 0 : index
    %c0_374 = arith.constant 0 : index
    %1056 = vector.load %arg12[%c1_372, %c0_373, %c0_374] : memref<2x64x32xf32, #tpu.memory_space<vmem>>, vector<1x64x32xf32>
    %1057 = vector.shape_cast %1056 : vector<1x64x32xf32> to vector<64x32xf32>
    %cst_375 = arith.constant dense<0.000000e+00> : vector<16x32xf32>
    %1058 = tpu.matmul %1055, %1057, %cst_375 {dimension_numbers = #tpu.dot_dimension_numbers<[1], [0], [0], [1], [0, 0, 1, 1], [], []>} : vector<16x64xf32>, vector<64x32xf32>, vector<16x32xf32> -> vector<16x32xf32>
    %1059 = arith.addf %1022, %1058 : vector<16x32xf32>
    %c1_376 = arith.constant 1 : index
    %c0_377 = arith.constant 0 : index
    %c0_378 = arith.constant 0 : index
    %1060 = vector.load %arg13[%c1_376, %c0_377, %c0_378] : memref<2x1x32xf32, #tpu.memory_space<vmem>>, vector<1x1x32xf32>
    %1061 = vector.shape_cast %1060 : vector<1x1x32xf32> to vector<1x32xf32>
    %1062 = vector.broadcast %1061 : vector<1x32xf32> to vector<16x32xf32>
    %1063 = arith.addf %1059, %1062 : vector<16x32xf32>
    %c0_379 = arith.constant 0 : index
    %c0_380 = arith.constant 0 : index
    %1064 = vector.load %arg14[%c0_379, %c0_380] : memref<1x32xf32, #tpu.memory_space<vmem>>, vector<1x32xf32>
    %c0_381 = arith.constant 0 : index
    %c0_382 = arith.constant 0 : index
    %1065 = vector.load %arg15[%c0_381, %c0_382] : memref<1x32xf32, #tpu.memory_space<vmem>>, vector<1x32xf32>
    %cst_383 = arith.constant dense<0.000000e+00> : vector<16xf32>
    %1066 = vector.multi_reduction <add>, %1063, %cst_383 [1] : vector<16x32xf32> to vector<16xf32>
    %1067 = vector.shape_cast %1066 : vector<16xf32> to vector<16x1xf32>
    %cst_384 = arith.constant 3.200000e+01 : f32
    %1068 = vector.broadcast %cst_384 : f32 to vector<16x1xf32>
    %1069 = arith.divf %1067, %1068 : vector<16x1xf32>
    %1070 = vector.broadcast %1069 : vector<16x1xf32> to vector<16x32xf32>
    %1071 = arith.subf %1063, %1070 : vector<16x32xf32>
    %1072 = arith.mulf %1071, %1071 : vector<16x32xf32>
    %cst_385 = arith.constant dense<0.000000e+00> : vector<16xf32>
    %1073 = vector.multi_reduction <add>, %1072, %cst_385 [1] : vector<16x32xf32> to vector<16xf32>
    %1074 = vector.shape_cast %1073 : vector<16xf32> to vector<16x1xf32>
    %cst_386 = arith.constant 3.100000e+01 : f32
    %1075 = vector.broadcast %cst_386 : f32 to vector<16x1xf32>
    %1076 = arith.divf %1074, %1075 : vector<16x1xf32>
    %1077 = math.sqrt %1076 : vector<16x1xf32>
    %1078 = vector.broadcast %1069 : vector<16x1xf32> to vector<16x32xf32>
    %1079 = arith.subf %1063, %1078 : vector<16x32xf32>
    %1080 = vector.broadcast %1064 : vector<1x32xf32> to vector<16x32xf32>
    %1081 = arith.mulf %1080, %1079 : vector<16x32xf32>
    %cst_387 = arith.constant 9.99999997E-7 : f32
    %1082 = vector.broadcast %cst_387 : f32 to vector<16x1xf32>
    %1083 = arith.addf %1077, %1082 : vector<16x1xf32>
    %1084 = vector.broadcast %1083 : vector<16x1xf32> to vector<16x32xf32>
    %1085 = arith.divf %1081, %1084 : vector<16x32xf32>
    %1086 = vector.broadcast %1065 : vector<1x32xf32> to vector<16x32xf32>
    %1087 = arith.addf %1085, %1086 : vector<16x32xf32>
    %1088 = vector.extract_strided_slice %1087 {offsets = [0, 0], sizes = [8, 32], strides = [1, 1]} : vector<16x32xf32> to vector<8x32xf32>
    %c0_388 = arith.constant 0 : index
    %c0_389 = arith.constant 0 : index
    %c0_390 = arith.constant 0 : index
    %1089 = vector.load %arg16[%c0_388, %c0_389, %c0_390] : memref<2x8x32xf32, #tpu.memory_space<vmem>>, vector<1x8x32xf32>
    %1090 = vector.shape_cast %1089 : vector<1x8x32xf32> to vector<8x32xf32>
    %1091 = vector.shape_cast %1088 : vector<8x32xf32> to vector<1x8x32xf32>
    tpu.vector_store %arg16[%c0_388, %c0_389, %c0_390], %1091 {strides = array<i32>} : memref<2x8x32xf32, #tpu.memory_space<vmem>>, vector<1x8x32xf32>,
    %1092 = vector.extract_strided_slice %1087 {offsets = [8, 0], sizes = [8, 32], strides = [1, 1]} : vector<16x32xf32> to vector<8x32xf32>
    %c1_391 = arith.constant 1 : index
    %c0_392 = arith.constant 0 : index
    %c0_393 = arith.constant 0 : index
    %1093 = vector.load %arg16[%c1_391, %c0_392, %c0_393] : memref<2x8x32xf32, #tpu.memory_space<vmem>>, vector<1x8x32xf32>
    %1094 = vector.shape_cast %1093 : vector<1x8x32xf32> to vector<8x32xf32>
    %1095 = vector.shape_cast %1092 : vector<8x32xf32> to vector<1x8x32xf32>
    tpu.vector_store %arg16[%c1_391, %c0_392, %c0_393], %1095 {strides = array<i32>} : memref<2x8x32xf32, #tpu.memory_space<vmem>>, vector<1x8x32xf32>,
    return
  }
}

</mosaic_0001>

<bundles_post_ra>
// kernel: decoder_forward.1
= control target key start
LH: loop header
LB: loop body
LE: loop exit
PB: predicated region body
PF: predicated region fallthrough
CT: control target
= control target key end

     0   :  { %s6120_s0 = inlined_call_operand.vmem [shape: f32[2,8,32], index: 0, kind: input, shape index: {}]   ;;  %s6121_s1 = inlined_call_operand.vmem [shape: f32[2,8,32], index: 1, kind: input, shape index: {}]   ;;  %s6122_s2 = inlined_call_operand.vmem [shape: f32[2,1,8], index: 2, kind: input, shape index: {}]   ;;  %s6123_s3 = inlined_call_operand.vmem [shape: f32[2,8,8], index: 3, kind: input, shape index: {}]   ;;  %s6124_s4 = inlined_call_operand.vmem [shape: f32[2,32,96], index: 4, kind: input, shape index: {}]   ;;  %s6125_s5 = inlined_call_operand.vmem [shape: f32[2,1,96], index: 5, kind: input, shape index: {}]   ;;  %s6126_s6 = inlined_call_operand.vmem [shape: f32[2,32,32], index: 6, kind: input, shape index: {}]   ;;  %s6127_s7 = inlined_call_operand.vmem [shape: f32[2,1,32], index: 7, kind: input, shape index: {}]   ;;  %s6128_s8 = inlined_call_operand.vmem [shape: f32[2,3,32], index: 8, kind: input, shape index: {}]   ;;  %s6129_s9 = inlined_call_operand.vmem [shape: f32[2,3,32], index: 9, kind: input, shape index: {}]   ;;  %s6130_s10 = inlined_call_operand.vmem [shape: f32[2,32,64], index: 10, kind: input, shape index: {}]   ;;  %s6131_s11 = inlined_call_operand.vmem [shape: f32[2,1,64], index: 11, kind: input, shape index: {}]   ;;  %s6132_s12 = inlined_call_operand.vmem [shape: f32[2,64,32], index: 12, kind: input, shape index: {}]   ;;  %s6133_s13 = inlined_call_operand.vmem [shape: f32[2,1,32], index: 13, kind: input, shape index: {}]   ;;  %s6134_s14 = inlined_call_operand.vmem [shape: f32[1,32], index: 14, kind: input, shape index: {}]   ;;  %s6135_s15 = inlined_call_operand.vmem [shape: f32[1,32], index: 15, kind: input, shape index: {}]   ;;  %s6136_s16 = inlined_call_operand.hbm [shape: f32[2,8,32], index: 16, kind: output, shape index: {}]  }
   0x1   :  { %6142 = sst [smem:[#allocation5_spill]] %s6120_s0 }
   0x2   :  { %s6143_s23 = sld [smem:[#allocation5_spill]]  ;;  %vm78_vm0 = vcmask 261120  }
   0x8   :  { %v4990_v0 = vld [vmem:[%s6143_s23] sm:$0xff] }
   0x9   :  { %v79_v1 = vsel %vm78_vm0, %v4990_v0, 0.0 }
   0xa   :  { %80 = vadd.xlane.f32.xlu0 %v79_v1 }
   0xb   :  { %21 = vsyncpa [#allocation3], 0  ;;  %v4885_v2 = vmov 32.0   ;;  %v4886_v14 = vmov 31.0   ;;  %v5002_v18 = vld [vmem:[%s6124_s4 + $0x18] sm:$0xff]  ;;  %v5007_v19 = vld [vmem:[%s6124_s4 + $0x10] sm:$0xff] }
   0xc   :  { %4655 = vrcp.f32 %v4885_v2  ;;  %196 = vmatpush.msra.mxu0 %v5002_v18  ;;  %v5013_v21 = vld [vmem:[%s6124_s4 + $0x8] sm:$0xff]  ;;  %v5019_v22 = vld [vmem:[%s6124_s4] sm:$0xff]  ;;  %s4887_s24 = smov 120   ;;  %s4888_s25 = smov 96   ;;  %vm210_vm9 = vcmask 64512  }
   0xd   :  { %4657 = vrcp.f32 %v4886_v14  ;;  %v5029_v40 = vld [vmem:[%s6128_s8] sm:$0x7]  ;;  %s4889_s26 = smov 88   ;;  %s6140_s29 = smov 56  }
   0xe   :  { %197 = vmatpush.msra.mxu0 %v5007_v19  ;;  %v137_v43 = vperm.slane %v5029_v40, 0  ;;  %v5035_v46 = vld [vmem:[%s6129_s9] sm:$0x7]  ;;  %s4891_s30 = smov 112   ;;  %s4892_s0 = smov 64  }
   0xf   :  { %v172_v51 = vperm.slane %v5035_v46, 0  ;;  %v5046_v55 = vld [vmem:[%s6125_s5] ss:$0 sm:$0xff]  ;;  %s4893_s17 = smov 80   ;;  %s4894_s21 = smov 72  }
  0x10   :  { %198 = vmatpush.msra.mxu0 %v5013_v21  ;;  %v5065_v61 = vld [vmem:[%s6123_s3] sm:$0xff]  ;;  %s4895_s28 = smov 104   ;;  %s4896_s18 = smov 48  }
  0x11   :  { %vm236_vm10 = vcmp.eq.f32.partialorder %v5065_v61, 0.0  ;;  %s6138_s20 = smov 40   ;;  %s6148_s27 = smov 56  }
  0x12   :  { %v4656_v3 = vpop.eup %4655  ;;  %199 = vmatpush.msra.mxu0 %v5019_v22  ;;  %s6149_s22 = smov 40  }
  0x13   :  { %v86_v4 = vmul.f32 32.0, %v4656_v3  ;;  %vm90_vm1 = vweird.f32 %v4656_v3  ;;  %v4658_v15 = vpop.eup %4657 }
  0x14   :  { %v105_v16 = vmul.f32 31.0, %v4658_v15  ;;  %vm109_vm2 = vweird.f32 %v4658_v15 }
  0x15   :  { %v87_v5 = vsub.f32 1.0, %v86_v4 }
  0x16   :  { %v106_v17 = vsub.f32 1.0, %v105_v16 }
  0x17   :  { %v88_v6 = vmul.f32 %v4656_v3, %v87_v5 }
  0x18   :  { %v107_v20 = vmul.f32 %v4658_v15, %v106_v17 }
  0x19   :  { %v89_v7 = vadd.f32 %v4656_v3, %v88_v6 }
  0x1a   :  { %v108_v23 = vadd.f32 %v4658_v15, %v107_v20  ;;  %v5087_v20 = vld [vmem:[%s6143_s23 + $0x8] sm:$0xff] }
  0x1b   :  { %v4994_v8 = vsel %vm90_vm1, %v4656_v3, %v89_v7 }
  0x1c   :  { %v5023_v24 = vsel %vm109_vm2, %v4658_v15, %v108_v23  ;;  %v82_v23 = vsel %vm78_vm0, %v5087_v20, 0.0 }
  0x7d   :  { %v81_v9 = vpop.xlane.xlu0 %80 }
  0x7e   :  { %v92_v10 = vmul.f32 %v4994_v8, %v81_v9 }
  0x80   :  { %v94_v11 = vsub.f32 %v4990_v0, %v92_v10 }
  0x82   :  { %v96_v12 = vmul.f32 %v94_v11, %v94_v11  ;;  %v138_v49 = vmul.f32 %v137_v43, %v94_v11 }
  0x84   :  { %v98_v13 = vsel %vm78_vm0, %v96_v12, 0.0 }
  0x85   :  { %99 = vadd.xlane.f32.xlu0 %v98_v13 }
  0xf8   :  { %v100_v25 = vpop.xlane.xlu0 %99 }
  0xf9   :  { %v111_v26 = vmul.f32 %v5023_v24, %v100_v25 }
  0xfb   :  { %4659 = vrsqrt.f32 %v111_v26  ;;  %vm120_vm3 = vcmp.eq.f32.partialorder %v111_v26, inf  ;;  %v123_v34 = vand.u32 2147483648, %v111_v26  ;;  %vm122_vm4 = vcmp.eq.f32.partialorder %v111_v26, 0.0 }
 0x101   :  { %v4660_v27 = vpop.eup %4659 }
 0x102   :  { %v114_v28 = vmul.f32 %v4660_v27, %v111_v26 }
 0x104   :  { %v115_v29 = vmul.f32 %v4660_v27, %v114_v28 }
 0x106   :  { %v116_v30 = vmul.f32 0.5, %v115_v29 }
 0x108   :  { %v117_v31 = vsub.f32 1.5, %v116_v30 }
 0x10a   :  { %v118_v32 = vmul.f32 %v4660_v27, %v117_v31 }
 0x10c   :  { %v119_v33 = vmul.f32 %v118_v32, %v111_v26 }
 0x10e   :  { %v121_v35 = vsel %vm120_vm3, %v111_v26, %v119_v33 }
 0x10f   :  { %v124_v36 = vsel %vm122_vm4, %v123_v34, %v121_v35 }
 0x110   :  { %v140_v37 = vadd.f32 1e-06, %v124_v36 }
 0x112   :  { %4661 = vrcp.f32 %v140_v37  ;;  %v153_v42 = vand.u32 2147483648, %v140_v37  ;;  %v151_v45 = vand.u32 2147483647, %v140_v37  ;;  %vm147_vm6 = vweird.f32 %v140_v37 }
 0x114   :  { %v154_v48 = vor.u32 1.1754944e-38, %v153_v42  ;;  %vm152_vm8 = vcmp.eq.f32.partialorder %v151_v45, 8.507059e+37 }
 0x118   :  { %v4662_v38 = vpop.eup %4661 }
 0x119   :  { %v143_v39 = vmul.f32 %v4662_v38, %v140_v37  ;;  %vm148_vm5 = vweird.f32 %v4662_v38 }
 0x11a   :  { %vm149_vm7 = vmor %vm147_vm6, %vm148_vm5 }
 0x11b   :  { %v144_v41 = vsub.f32 1.0, %v143_v39 }
 0x11d   :  { %v145_v44 = vmul.f32 %v4662_v38, %v144_v41 }
 0x11f   :  { %v146_v47 = vadd.f32 %v4662_v38, %v145_v44 }
 0x121   :  { %v150_v50 = vsel %vm149_vm7, %v4662_v38, %v146_v47 }
 0x122   :  { %v155_v52 = vsel %vm152_vm8, %v154_v48, %v150_v50 }
 0x123   :  { %v156_v53 = vmul.f32 %v155_v52, %v138_v49  ;;  %v5094_v49 = vld [vmem:[%s6126_s6 + $0x8] sm:$0xff] }
 0x125   :  { %v173_v54 = vadd.f32 %v172_v51, %v156_v53 }
 0x127   :  { %4434 = vmatmul.msk.f32.vlgmr.msra.gmra.mxu0 %vm78_vm0, %v173_v54 }
 0x1a4   :  { %v201_v56 = vpop.f32.mrf.mxu0 }
 0x1a5   :  { %v5049_v57 = vadd.f32 %v5046_v55, %v201_v56 }
 0x1a7   :  { %288 = vrot.lane.b32.xlu2 %v5049_v57, %s4887_s24  ;;  %208 = vrot.lane.b32.xlu1 %v5049_v57, %s4888_s25 }
 0x1af   :  { %290 = vrot.lane.b32.xlu1 %v5049_v57, %s4889_s26 }
 0x201   :  { %v289_v60 = vpop.permute.xlu2 %288 }
 0x219   :  { %v209_v58 = vpop.permute.xlu1 %208 }
 0x21a   :  { %4436 = vmatpush.xpose.msk.msra.mxu1 %vm210_vm9, %v209_v58 }
 0x21d   :  { %4437 = vmatmul.msk.f32.vlgmr.msra.gmra.mxu1 %vm210_vm9, %v5049_v57 }
 0x221   :  { %v291_v59 = vpop.permute.xlu1 %290 }
 0x222   :  { %4439 = vmatpush.xpose.msk.msra.mxu3 %vm210_vm9, %v291_v59 }
 0x225   :  { %4440 = vmatmul.msk.f32.vlgmr.msra.gmra.mxu3 %vm210_vm9, %v289_v60 }
 0x29a   :  { %v232_v62 = vpop.f32.mrf.mxu1 }
 0x29b   :  { %v235_v63 = vmul.f32 0.35355338, %v232_v62 }
 0x29d   :  { %v237_v1 = vsel %vm236_vm10, -1e+09, %v235_v63 }
 0x29e   :  { %v238_v2 = vsel %vm210_vm9, %v237_v1, -inf }
 0x29f   :  { %239 = vmax.xlane.f32.xlu2 %v238_v2  ;;  %v5108_v2 = vld [vmem:[%s6126_s6] sm:$0xff] }
 0x2a0   :  { %409 = vmatpush.msrb.mxu3 %v5108_v2 }
 0x2a8   :  { %v313_v3 = vpop.f32.mrf.mxu3 }
 0x2a9   :  { %v316_v4 = vmul.f32 0.35355338, %v313_v3 }
 0x2ab   :  { %v317_v5 = vsel %vm236_vm10, -1e+09, %v316_v4 }
 0x2ac   :  { %v318_v6 = vsel %vm210_vm9, %v317_v5, -inf }
 0x2ad   :  { %319 = vmax.xlane.f32.xlu0 %v318_v6 }
 0x2b7   :  { %342 = vrot.lane.b32.xlu2 %v5049_v57, %s6140_s29 }
 0x312   :  { %v240_v7 = vpop.xlane.xlu2 %239 }
 0x313   :  { %v241_v9 = vsub.f32 %v237_v1, %v240_v7 }
 0x315   :  { %v242_v10 = vmul.f32 1.442695, %v241_v9 }
 0x317   :  { %4663 = vpow2.f32 %v242_v10 }
 0x31a   :  { %v343_v50 = vpop.permute.xlu2 %342 }
 0x31d   :  { %v4664_v11 = vpop.eup %4663 }
 0x31e   :  { %v244_v12 = vsel %vm210_vm9, %v4664_v11, 0.0 }
 0x31f   :  { %245 = vadd.xlane.f32.xlu1 %v244_v12 }
 0x320   :  { %v320_v13 = vpop.xlane.xlu0 %319 }
 0x321   :  { %v321_v14 = vsub.f32 %v317_v5, %v320_v13 }
 0x323   :  { %v322_v15 = vmul.f32 1.442695, %v321_v14 }
 0x325   :  { %4665 = vpow2.f32 %v322_v15 }
 0x32b   :  { %v4666_v16 = vpop.eup %4665 }
 0x32c   :  { %v324_v17 = vsel %vm210_vm9, %v4666_v16, 0.0 }
 0x32d   :  { %325 = vadd.xlane.f32.xlu0 %v324_v17 }
 0x338   :  { %414 = vrot.lane.b32.xlu1 %v5049_v57, %s4891_s30 }
 0x341   :  { %262 = vrot.lane.b32.xlu0 %v5049_v57, %s4892_s0 }
 0x349   :  { %416 = vrot.lane.b32.xlu0 %v5049_v57, %s4893_s17 }
 0x373   :  { %83 = vadd.xlane.f32.xlu0 %v82_v23 }
 0x392   :  { %v246_v25 = vpop.xlane.xlu1 %245 }
 0x393   :  { %4667 = vrcp.f32 %v246_v25  ;;  %v258_v34 = vand.u32 2147483648, %v246_v25  ;;  %vm252_vm12 = vweird.f32 %v246_v25  ;;  %v256_v36 = vand.u32 2147483647, %v246_v25 }
 0x395   :  { %v259_v39 = vor.u32 1.1754944e-38, %v258_v34  ;;  %vm257_vm14 = vcmp.eq.f32.partialorder %v256_v36, 8.507059e+37 }
 0x399   :  { %v4668_v26 = vpop.eup %4667 }
 0x39a   :  { %v248_v27 = vmul.f32 %v4668_v26, %v246_v25  ;;  %vm253_vm11 = vweird.f32 %v4668_v26 }
 0x39b   :  { %vm254_vm13 = vmor %vm252_vm12, %vm253_vm11 }
 0x39c   :  { %v249_v29 = vsub.f32 1.0, %v248_v27 }
 0x39e   :  { %v250_v30 = vmul.f32 %v4668_v26, %v249_v29 }
 0x3a0   :  { %v326_v28 = vpop.xlane.xlu0 %325  ;;  %v251_v33 = vadd.f32 %v4668_v26, %v250_v30 }
 0x3a1   :  { %4669 = vrcp.f32 %v326_v28  ;;  %v338_v44 = vand.u32 2147483648, %v326_v28  ;;  %vm332_vm1 = vweird.f32 %v326_v28  ;;  %v336_v48 = vand.u32 2147483647, %v326_v28 }
 0x3a2   :  { %v255_v38 = vsel %vm254_vm13, %v4668_v26, %v251_v33 }
 0x3a3   :  { %v260_v41 = vsel %vm257_vm14, %v259_v39, %v255_v38  ;;  %v339_v53 = vor.u32 1.1754944e-38, %v338_v44  ;;  %vm337_vm3 = vcmp.eq.f32.partialorder %v336_v48, 8.507059e+37 }
 0x3a4   :  { %v261_v47 = vmul.f32 %v4664_v11, %v260_v41 }
 0x3a7   :  { %v4670_v31 = vpop.eup %4669 }
 0x3a8   :  { %v328_v32 = vmul.f32 %v4670_v31, %v326_v28  ;;  %vm333_vm15 = vweird.f32 %v4670_v31 }
 0x3a9   :  { %vm334_vm2 = vmor %vm332_vm1, %vm333_vm15 }
 0x3aa   :  { %v329_v35 = vsub.f32 1.0, %v328_v32  ;;  %v415_v5 = vpop.permute.xlu1 %414 }
 0x3ac   :  { %v330_v37 = vmul.f32 %v4670_v31, %v329_v35 }
 0x3ae   :  { %v331_v42 = vadd.f32 %v4670_v31, %v330_v37 }
 0x3b0   :  { %v335_v52 = vsel %vm334_vm2, %v4670_v31, %v331_v42 }
 0x3b1   :  { %v340_v54 = vsel %vm337_vm3, %v339_v53, %v335_v52 }
 0x3b2   :  { %v341_v58 = vmul.f32 %v4666_v16, %v340_v54 }
 0x3b3   :  { %v263_v45 = vpop.permute.xlu0 %262 }
 0x3b4   :  { %283 = vmatpush.msra.mxu2 %v263_v45 }
 0x3b5   :  { %4438 = vmatmul.msk.f32.vlgmr.msra.gmra.mxu2 %vm210_vm9, %v261_v47 }
 0x3b6   :  { %363 = vmatpush.msrb.mxu2 %v343_v50 }
 0x3b8   :  { %386 = vmatpush.msra.mxu2 %v5094_v49 }
 0x3bb   :  { %v417_v56 = vpop.permute.xlu0 %416 }
 0x3bd   :  { %4441 = vmatmul.msk.f32.vlgmr.msrb.gmra.mxu2 %vm210_vm9, %v341_v58  ;;  %v5140_v58 = vld [vmem:[%s6126_s6 + $0x10] sm:$0xff] }
 0x3be   :  { %4444 = vmatpush.xpose.msk.msrb.mxu2 %vm210_vm9, %v417_v56  ;;  %512 = vmatpush.msra.mxu3 %v5140_v58 }
 0x3e6   :  { %v84_v59 = vpop.xlane.xlu0 %83 }
 0x3e7   :  { %v93_v60 = vmul.f32 %v4994_v8, %v84_v59 }
 0x3e9   :  { %v95_v62 = vsub.f32 %v5087_v20, %v93_v60 }
 0x3eb   :  { %v97_v63 = vmul.f32 %v95_v62, %v95_v62  ;;  %v139_v31 = vmul.f32 %v137_v43, %v95_v62 }
 0x3ed   :  { %v101_v1 = vsel %vm78_vm0, %v97_v63, 0.0 }
 0x3ee   :  { %102 = vadd.xlane.f32.xlu2 %v101_v1 }
 0x406   :  { %520 = vrot.lane.b32.xlu2 %v5049_v57, %s4894_s21 }
 0x438   :  { %v285_v3 = vpop.f32.mrf.mxu2 }
 0x439   :  { %4443 = vmatmul.msk.f32.vlgmr.msrb.gmra.mxu3 %vm210_vm9, %v285_v3 }
 0x440   :  { %v365_v4 = vpop.f32.mrf.mxu2 }
 0x441   :  { %4442 = vmatmul.msk.f32.vlgmr.msra.gmra.mxu2 %vm210_vm9, %v365_v4 }
 0x449   :  { %4445 = vmatmul.msk.f32.vlgmr.msrb.gmra.mxu2 %vm210_vm9, %v415_v5 }
 0x461   :  { %v103_v6 = vpop.xlane.xlu2 %102 }
 0x462   :  { %v112_v9 = vmul.f32 %v5023_v24, %v103_v6 }
 0x464   :  { %4671 = vrsqrt.f32 %v112_v9  ;;  %vm132_vm4 = vcmp.eq.f32.partialorder %v112_v9, inf  ;;  %v135_v17 = vand.u32 2147483648, %v112_v9  ;;  %vm134_vm5 = vcmp.eq.f32.partialorder %v112_v9, 0.0 }
 0x469   :  { %v521_v7 = vpop.permute.xlu2 %520 }
 0x46a   :  { %4448 = vmatpush.xpose.msk.msrb.mxu0 %vm210_vm9, %v521_v7  ;;  %v4672_v10 = vpop.eup %4671 }
 0x46b   :  { %v126_v11 = vmul.f32 %v4672_v10, %v112_v9 }
 0x46d   :  { %v127_v12 = vmul.f32 %v4672_v10, %v126_v11 }
 0x46f   :  { %v128_v13 = vmul.f32 0.5, %v127_v12 }
 0x471   :  { %v129_v14 = vsub.f32 1.5, %v128_v13 }
 0x473   :  { %v130_v15 = vmul.f32 %v4672_v10, %v129_v14 }
 0x475   :  { %v131_v16 = vmul.f32 %v130_v15, %v112_v9 }
 0x477   :  { %v133_v23 = vsel %vm132_vm4, %v112_v9, %v131_v16 }
 0x478   :  { %v136_v25 = vsel %vm134_vm5, %v135_v17, %v133_v23 }
 0x479   :  { %v141_v26 = vadd.f32 1e-06, %v136_v25 }
 0x47b   :  { %4673 = vrcp.f32 %v141_v26  ;;  %v168_v32 = vand.u32 2147483648, %v141_v26  ;;  %vm162_vm6 = vweird.f32 %v141_v26  ;;  %v166_v34 = vand.u32 2147483647, %v141_v26 }
 0x47d   :  { %v169_v35 = vor.u32 1.1754944e-38, %v168_v32  ;;  %vm167_vm11 = vcmp.eq.f32.partialorder %v166_v34, 8.507059e+37 }
 0x481   :  { %v4674_v27 = vpop.eup %4673 }
 0x482   :  { %v158_v28 = vmul.f32 %v4674_v27, %v141_v26  ;;  %vm163_vm7 = vweird.f32 %v4674_v27 }
 0x483   :  { %vm164_vm8 = vmor %vm162_vm6, %vm163_vm7 }
 0x484   :  { %v159_v29 = vsub.f32 1.0, %v158_v28 }
 0x486   :  { %v160_v30 = vmul.f32 %v4674_v27, %v159_v29 }
 0x488   :  { %v161_v33 = vadd.f32 %v4674_v27, %v160_v30 }
 0x48a   :  { %v165_v36 = vsel %vm164_vm8, %v4674_v27, %v161_v33 }
 0x48b   :  { %v170_v37 = vsel %vm167_vm11, %v169_v35, %v165_v36 }
 0x48c   :  { %v171_v38 = vmul.f32 %v170_v37, %v139_v31 }
 0x48e   :  { %v174_v39 = vadd.f32 %v172_v51, %v171_v38 }
 0x490   :  { %4435 = vmatmul.msk.f32.gmra.mxu0 %vm78_vm0, %v174_v39  ;;  %v5176_v39 = vld [vmem:[%s6123_s3 + $0x8] sm:$0xff] }
 0x491   :  { %vm654_vm5 = vcmp.eq.f32.partialorder %v5176_v39, 0.0 }
 0x4bc   :  { %v5168_v29 = vpop.f32.mrf.mxu3 }
 0x4c4   :  { %v5121_v41 = vpop.f32.mrf.mxu2 }
 0x4cc   :  { %v439_v42 = vpop.f32.mrf.mxu2 }
 0x4cd   :  { %v442_v43 = vmul.f32 0.35355338, %v439_v42 }
 0x4cf   :  { %v443_v44 = vsel %vm236_vm10, -1e+09, %v442_v43 }
 0x4d0   :  { %v444_v45 = vsel %vm210_vm9, %v443_v44, -inf }
 0x4d1   :  { %445 = vmax.xlane.f32.xlu1 %v444_v45 }
 0x4ea   :  { %518 = vrot.lane.b32.xlu1 %v5049_v57, %s4895_s28 }
 0x50d   :  { %v204_v54 = vpop.f32.mrf.mxu0 }
 0x50e   :  { %v5133_v56 = vadd.f32 %v5046_v55, %v204_v54 }
 0x544   :  { %v446_v47 = vpop.xlane.xlu1 %445 }
 0x545   :  { %v447_v48 = vsub.f32 %v443_v44, %v446_v47 }
 0x547   :  { %v448_v50 = vmul.f32 1.442695, %v447_v48 }
 0x549   :  { %4675 = vpow2.f32 %v448_v50 }
 0x54f   :  { %v4676_v51 = vpop.eup %4675 }
 0x550   :  { %v450_v52 = vsel %vm210_vm9, %v4676_v51, 0.0 }
 0x551   :  { %451 = vadd.xlane.f32.xlu0 %v450_v52 }
 0x55c   :  { %v519_v53 = vpop.permute.xlu1 %518 }
 0x55d   :  { %4449 = vmatmul.msk.f32.vlgmr.msrb.gmra.mxu0 %vm210_vm9, %v519_v53 }
 0x565   :  { %468 = vrot.lane.b32.xlu0 %v5049_v57, %s4896_s18 }
 0x56d   :  { %627 = vrot.lane.b32.xlu0 %v5133_v56, %s4888_s25 }
 0x5c4   :  { %v452_v59 = vpop.xlane.xlu0 %451 }
 0x5c5   :  { %4677 = vrcp.f32 %v452_v59  ;;  %v464_v1 = vand.u32 2147483648, %v452_v59  ;;  %v462_v4 = vand.u32 2147483647, %v452_v59  ;;  %vm458_vm13 = vweird.f32 %v452_v59 }
 0x5c7   :  { %v465_v6 = vor.u32 1.1754944e-38, %v464_v1  ;;  %vm463_vm15 = vcmp.eq.f32.partialorder %v462_v4, 8.507059e+37 }
 0x5cb   :  { %v4678_v60 = vpop.eup %4677 }
 0x5cc   :  { %v454_v62 = vmul.f32 %v4678_v60, %v452_v59  ;;  %vm459_vm12 = vweird.f32 %v4678_v60 }
 0x5cd   :  { %vm460_vm14 = vmor %vm458_vm13, %vm459_vm12 }
 0x5ce   :  { %v455_v63 = vsub.f32 1.0, %v454_v62 }
 0x5d0   :  { %v456_v3 = vmul.f32 %v4678_v60, %v455_v63 }
 0x5d2   :  { %v457_v5 = vadd.f32 %v4678_v60, %v456_v3 }
 0x5d4   :  { %v461_v7 = vsel %vm460_vm14, %v4678_v60, %v457_v5  ;;  %v5190_v60 = vld [vmem:[%s6126_s6 + $0x18] sm:$0xff] }
 0x5d5   :  { %v466_v9 = vsel %vm463_vm15, %v465_v6, %v461_v7 }
 0x5d6   :  { %v467_v10 = vmul.f32 %v4676_v51, %v466_v9 }
 0x5d7   :  { %v469_v11 = vpop.permute.xlu0 %468 }
 0x5d8   :  { %489 = vmatpush.msrb.mxu1 %v469_v11 }
 0x5d9   :  { %4446 = vmatmul.msk.f32.vlgmr.msrb.gmra.mxu1 %vm210_vm9, %v467_v10 }
 0x5da   :  { %v543_v12 = vpop.f32.mrf.mxu0  ;;  %616 = vmatpush.msra.mxu1 %v5190_v60 }
 0x5db   :  { %v546_v13 = vmul.f32 0.35355338, %v543_v12 }
 0x5dd   :  { %v547_v14 = vsel %vm236_vm10, -1e+09, %v546_v13 }
 0x5de   :  { %v548_v15 = vsel %vm210_vm9, %v547_v14, -inf }
 0x5df   :  { %v628_v16 = vpop.permute.xlu0 %627  ;;  %549 = vmax.xlane.f32.xlu0 %v548_v15 }
 0x5e0   :  { %4452 = vmatpush.xpose.msk.msrb.mxu3 %vm210_vm9, %v628_v16 }
 0x5f3   :  { %708 = vrot.lane.b32.xlu0 %v5133_v56, %s4889_s26 }
 0x5fb   :  { %834 = vrot.lane.b32.xlu0 %v5133_v56, %s4893_s17 }
 0x652   :  { %v550_v17 = vpop.xlane.xlu0 %549 }
 0x653   :  { %v551_v23 = vsub.f32 %v547_v14, %v550_v17 }
 0x655   :  { %v552_v25 = vmul.f32 1.442695, %v551_v23 }
 0x656   :  { %v491_v26 = vpop.f32.mrf.mxu1 }
 0x657   :  { %4679 = vpow2.f32 %v552_v25  ;;  %4447 = vmatmul.msk.f32.vlgmr.msra.gmra.mxu3 %vm210_vm9, %v491_v26 }
 0x658   :  { %804 = vmatpush.msra.mxu3 %v5094_v49 }
 0x65d   :  { %v4680_v27 = vpop.eup %4679 }
 0x65e   :  { %v554_v28 = vsel %vm210_vm9, %v4680_v27, 0.0 }
 0x65f   :  { %4453 = vmatmul.msk.f32.vlgmr.msrb.gmra.mxu3 %vm210_vm9, %v5133_v56  ;;  %555 = vadd.xlane.f32.xlu2 %v554_v28 }
 0x660   :  { %930 = vmatpush.msrb.mxu3 %v5140_v58 }
 0x665   :  { %v709_v34 = vpop.permute.xlu0 %708 }
 0x66d   :  { %v835_v53 = vpop.permute.xlu0 %834 }
 0x677   :  { %572 = vrot.lane.b32.xlu2 %v5049_v57, %s6138_s20 }
 0x67f   :  { %832 = vrot.lane.b32.xlu2 %v5133_v56, %s4891_s30 }
 0x687   :  { %680 = vrot.lane.b32.xlu2 %v5133_v56, %s4892_s0 }
 0x68f   :  { %938 = vrot.lane.b32.xlu2 %v5133_v56, %s4894_s21 }
 0x697   :  { %936 = vrot.lane.b32.xlu2 %v5133_v56, %s4895_s28 }
 0x6d2   :  { %v556_v30 = vpop.xlane.xlu2 %555 }
 0x6d3   :  { %4681 = vrcp.f32 %v556_v30  ;;  %v568_v36 = vand.u32 2147483648, %v556_v30  ;;  %v566_v38 = vand.u32 2147483647, %v556_v30  ;;  %vm562_vm2 = vweird.f32 %v556_v30 }
 0x6d5   :  { %v569_v43 = vor.u32 1.1754944e-38, %v568_v36  ;;  %vm567_vm4 = vcmp.eq.f32.partialorder %v566_v38, 8.507059e+37  ;;  %v5208_v36 = vld [vmem:[%s6127_s7] ss:$0 sm:$0xff] }
 0x6d9   :  { %v4682_v31 = vpop.eup %4681 }
 0x6da   :  { %v558_v32 = vmul.f32 %v4682_v31, %v556_v30  ;;  %v5170_v33 = vpop.f32.mrf.mxu3  ;;  %v573_v57 = vpop.permute.xlu2 %572  ;;  %vm563_vm1 = vweird.f32 %v4682_v31 }
 0x6db   :  { %593 = vmatpush.msra.mxu2 %v573_v57  ;;  %vm564_vm3 = vmor %vm562_vm2, %vm563_vm1 }
 0x6dc   :  { %v559_v35 = vsub.f32 1.0, %v558_v32 }
 0x6dd   :  { %4455 = vmatpush.xpose.msk.msrb.mxu2 %vm210_vm9, %v709_v34 }
 0x6de   :  { %v560_v37 = vmul.f32 %v4682_v31, %v559_v35 }
 0x6e0   :  { %v561_v42 = vadd.f32 %v4682_v31, %v560_v37 }
 0x6e2   :  { %v565_v44 = vsel %vm564_vm3, %v4682_v31, %v561_v42  ;;  %v650_v45 = vpop.f32.mrf.mxu3  ;;  %v833_v47 = vpop.permute.xlu2 %832  ;;  %v412_v31 = vadd.f32 %v5168_v29, %v5121_v41 }
 0x6e3   :  { %v653_v48 = vmul.f32 0.35355338, %v650_v45  ;;  %v570_v50 = vsel %vm567_vm4, %v569_v43, %v565_v44 }
 0x6e4   :  { %v571_v51 = vmul.f32 %v4680_v27, %v570_v50  ;;  %v517_v34 = vadd.f32 %v5170_v33, %v412_v31 }
 0x6e5   :  { %v655_v52 = vsel %vm654_vm5, -1e+09, %v653_v48 }
 0x6e6   :  { %4450 = vmatmul.msk.f32.vlgmr.msra.gmra.mxu2 %vm210_vm9, %v571_v51  ;;  %v656_v54 = vsel %vm210_vm9, %v655_v52, -inf }
 0x6e7   :  { %4460 = vmatpush.xpose.msk.msra.mxu2 %vm210_vm9, %v835_v53  ;;  %657 = vmax.xlane.f32.xlu1 %v656_v54 }
 0x6ea   :  { %v681_v59 = vpop.permute.xlu2 %680 }
 0x6eb   :  { %701 = vmatpush.msra.mxu0 %v681_v59 }
 0x6ed   :  { %827 = vmatpush.msrb.mxu0 %v5108_v2 }
 0x6f2   :  { %v939_v26 = vpop.permute.xlu2 %938 }
 0x6fa   :  { %v937_v45 = vpop.permute.xlu2 %936 }
 0x700   :  { %706 = vrot.lane.b32.xlu1 %v5133_v56, %s4887_s24 }
 0x75a   :  { %v658_v62 = vpop.xlane.xlu1 %657 }
 0x75b   :  { %v659_v63 = vsub.f32 %v655_v52, %v658_v62 }
 0x75d   :  { %v660_v1 = vmul.f32 1.442695, %v659_v63 }
 0x75f   :  { %4683 = vpow2.f32 %v660_v1 }
 0x765   :  { %v4684_v3 = vpop.eup %4683 }
 0x766   :  { %v662_v4 = vsel %vm210_vm9, %v4684_v3, 0.0 }
 0x767   :  { %663 = vadd.xlane.f32.xlu0 %v662_v4 }
 0x769   :  { %v595_v5 = vpop.f32.mrf.mxu2 }
 0x76a   :  { %4451 = vmatmul.msk.f32.vlgmr.msra.gmra.mxu1 %vm210_vm9, %v595_v5 }
 0x772   :  { %v707_v6 = vpop.permute.xlu1 %706 }
 0x773   :  { %4456 = vmatmul.msk.f32.vlgmr.msrb.gmra.mxu2 %vm210_vm9, %v707_v6 }
 0x77b   :  { %4461 = vmatmul.msk.f32.vlgmr.msra.gmra.mxu2 %vm210_vm9, %v833_v47 }
 0x7da   :  { %v664_v7 = vpop.xlane.xlu0 %663 }
 0x7db   :  { %4685 = vrcp.f32 %v664_v7  ;;  %v676_v12 = vand.u32 2147483648, %v664_v7  ;;  %v674_v14 = vand.u32 2147483647, %v664_v7  ;;  %vm670_vm7 = vweird.f32 %v664_v7 }
 0x7dd   :  { %v677_v16 = vor.u32 1.1754944e-38, %v676_v12  ;;  %vm675_vm11 = vcmp.eq.f32.partialorder %v674_v14, 8.507059e+37 }
 0x7e1   :  { %v4686_v9 = vpop.eup %4685 }
 0x7e2   :  { %v666_v10 = vmul.f32 %v4686_v9, %v664_v7  ;;  %vm671_vm6 = vweird.f32 %v4686_v9  ;;  %v4625_v7 = vpack.i.bf16 %v5007_v19, %v5002_v18 }
 0x7e3   :  { %vm672_vm8 = vmor %vm670_vm7, %vm671_vm6 }
 0x7e4   :  { %v667_v11 = vsub.f32 1.0, %v666_v10 }
 0x7e6   :  { %v668_v13 = vmul.f32 %v4686_v9, %v667_v11 }
 0x7e7   :  { %v618_v57 = vpop.f32.mrf.mxu1 }
 0x7e8   :  { %v669_v15 = vadd.f32 %v4686_v9, %v668_v13  ;;  %v621_v35 = vadd.f32 %v618_v57, %v517_v34 }
 0x7ea   :  { %v673_v17 = vsel %vm672_vm8, %v4686_v9, %v669_v15  ;;  %v625_v43 = vadd.f32 %v5208_v36, %v621_v35 }
 0x7eb   :  { %v678_v23 = vsel %vm675_vm11, %v677_v16, %v673_v17 }
 0x7ec   :  { %v679_v25 = vmul.f32 %v4684_v3, %v678_v23  ;;  %v5215_v29 = vadd.f32 %v625_v43, %v4990_v0 }
 0x7ee   :  { %4454 = vmatmul.msk.f32.vlgmr.msra.gmra.mxu0 %vm210_vm9, %v679_v25  ;;  %v1043_v33 = vsel %vm78_vm0, %v5215_v29, 0.0 }
 0x7ef   :  { %4464 = vmatpush.xpose.msk.msra.mxu0 %vm210_vm9, %v939_v26 }
 0x7f6   :  { %v731_v27 = vpop.f32.mrf.mxu2 }
 0x7f7   :  { %v734_v28 = vmul.f32 0.35355338, %v731_v27 }
 0x7f9   :  { %v735_v30 = vsel %vm654_vm5, -1e+09, %v734_v28 }
 0x7fa   :  { %v736_v32 = vsel %vm210_vm9, %v735_v30, -inf }
 0x7fb   :  { %737 = vmax.xlane.f32.xlu1 %v736_v32 }
 0x7fe   :  { %v857_v37 = vpop.f32.mrf.mxu2 }
 0x7ff   :  { %v860_v38 = vmul.f32 0.35355338, %v857_v37 }
 0x801   :  { %v861_v42 = vsel %vm654_vm5, -1e+09, %v860_v38 }
 0x802   :  { %v862_v41 = vsel %vm210_vm9, %v861_v42, -inf }
 0x803   :  { %863 = vmax.xlane.f32.xlu2 %v862_v41 }
 0x80b   :  { %1044 = vadd.xlane.f32.xlu2 %v1043_v33 }
 0x814   :  { %760 = vrot.lane.b32.xlu1 %v5133_v56, %s6140_s29 }
 0x86b   :  { %v703_v44 = vpop.f32.mrf.mxu0 }
 0x86c   :  { %4459 = vmatmul.msk.f32.vlgmr.msrb.gmra.mxu0 %vm210_vm9, %v703_v44 }
 0x86e   :  { %v738_v47 = vpop.xlane.xlu1 %737 }
 0x86f   :  { %v739_v48 = vsub.f32 %v735_v30, %v738_v47 }
 0x871   :  { %v740_v50 = vmul.f32 1.442695, %v739_v48 }
 0x873   :  { %4687 = vpow2.f32 %v740_v50  ;;  %v4630_v50 = vpack.i.bf16 %v5019_v22, %v5013_v21 }
 0x874   :  { %4465 = vmatmul.msk.f32.vlgmr.msra.gmra.mxu0 %vm210_vm9, %v937_v45 }
 0x876   :  { %v864_v51 = vpop.xlane.xlu2 %863 }
 0x877   :  { %v865_v0 = vsub.f32 %v861_v42, %v864_v51 }
 0x879   :  { %v4688_v52 = vpop.eup %4687  ;;  %v866_v53 = vmul.f32 1.442695, %v865_v0 }
 0x87a   :  { %v742_v54 = vsel %vm210_vm9, %v4688_v52, 0.0 }
 0x87b   :  { %4689 = vpow2.f32 %v866_v53  ;;  %743 = vadd.xlane.f32.xlu0 %v742_v54 }
 0x87e   :  { %v1045_v59 = vpop.xlane.xlu2 %1044 }
 0x87f   :  { %v1049_v62 = vmul.f32 %v1045_v59, %v4994_v8 }
 0x881   :  { %v4690_v63 = vpop.eup %4689  ;;  %v5226_v1 = vsub.f32 %v5215_v29, %v1049_v62 }
 0x882   :  { %v868_v3 = vsel %vm210_vm9, %v4690_v63, 0.0 }
 0x883   :  { %869 = vadd.xlane.f32.xlu0 %v868_v3  ;;  %v1053_v4 = vmul.f32 %v5226_v1, %v5226_v1 }
 0x885   :  { %v1055_v5 = vsel %vm78_vm0, %v1053_v4, 0.0 }
 0x886   :  { %1056 = vadd.xlane.f32.xlu1 %v1055_v5  ;;  %v761_v6 = vpop.permute.xlu1 %760 }
 0x887   :  { %781 = vmatpush.msrb.mxu1 %v761_v6 }
 0x897   :  { %886 = vrot.lane.b32.xlu0 %v5133_v56, %s4896_s18 }
 0x89f   :  { %4626 = vrot.lane.b32.xlu0 %v4625_v7, %s4888_s25 }
 0x8e9   :  { %v5237_v9 = vpop.f32.mrf.mxu0 }
 0x8ee   :  { %v744_v10 = vpop.xlane.xlu0 %743 }
 0x8ef   :  { %4691 = vrcp.f32 %v744_v10  ;;  %v756_v25 = vand.u32 2147483648, %v744_v10  ;;  %v754_v27 = vand.u32 2147483647, %v744_v10  ;;  %vm750_vm13 = vweird.f32 %v744_v10 }
 0x8f1   :  { %v961_v11 = vpop.f32.mrf.mxu0  ;;  %v757_v31 = vor.u32 1.1754944e-38, %v756_v25  ;;  %vm755_vm15 = vcmp.eq.f32.partialorder %v754_v27, 8.507059e+37  ;;  %v57_v27 = vld [vmem:[%s6121_s1] sm:$0xff] }
 0x8f2   :  { %v964_v12 = vmul.f32 0.35355338, %v961_v11 }
 0x8f4   :  { %v5241_v13 = vsel %vm654_vm5, -1e+09, %v964_v12 }
 0x8f5   :  { %v4692_v14 = vpop.eup %4691  ;;  %v966_v15 = vsel %vm210_vm9, %v5241_v13, -inf }
 0x8f6   :  { %v746_v16 = vmul.f32 %v4692_v14, %v744_v10  ;;  %967 = vmax.xlane.f32.xlu2 %v966_v15  ;;  %v870_v17 = vpop.xlane.xlu0 %869  ;;  %vm751_vm12 = vweird.f32 %v4692_v14 }
 0x8f7   :  { %4693 = vrcp.f32 %v870_v17  ;;  %vm752_vm14 = vmor %vm750_vm13, %vm751_vm12  ;;  %v882_v38 = vand.u32 2147483648, %v870_v17  ;;  %v880_v43 = vand.u32 2147483647, %v870_v17  ;;  %vm876_vm2 = vweird.f32 %v870_v17 }
 0x8f8   :  { %v747_v23 = vsub.f32 1.0, %v746_v16 }
 0x8f9   :  { %v883_v33 = vor.u32 1.1754944e-38, %v882_v38  ;;  %vm881_vm4 = vcmp.eq.f32.partialorder %v880_v43, 8.507059e+37  ;;  %v1057_v51 = vpop.xlane.xlu1 %1056  ;;  %v1087_v38 = vperm.slane %v5029_v40, 1  ;;  %v4843_v40 = vld [vmem:[%s6126_s6] sm:$0xff] }
 0x8fa   :  { %v748_v26 = vmul.f32 %v4692_v14, %v747_v23  ;;  %v1061_v0 = vmul.f32 %v1057_v51, %v5023_v24 }
 0x8fc   :  { %v749_v28 = vadd.f32 %v4692_v14, %v748_v26  ;;  %4695 = vrsqrt.f32 %v1061_v0  ;;  %vm1070_vm6 = vcmp.eq.f32.partialorder %v1061_v0, inf  ;;  %v1073_v7 = vand.u32 2147483648, %v1061_v0 }
 0x8fd   :  { %v4694_v30 = vpop.eup %4693  ;;  %vm1072_vm7 = vcmp.eq.f32.partialorder %v1061_v0, 0.0 }
 0x8fe   :  { %v753_v32 = vsel %vm752_vm14, %v4692_v14, %v749_v28  ;;  %v872_v57 = vmul.f32 %v4694_v30, %v870_v17  ;;  %vm877_vm1 = vweird.f32 %v4694_v30 }
 0x8ff   :  { %v758_v34 = vsel %vm755_vm15, %v757_v31, %v753_v32  ;;  %vm878_vm3 = vmor %vm876_vm2, %vm877_vm1  ;;  %v4431_v32 = vld [vmem:[%s6121_s1 + $0x8] sm:$0xff] }
 0x900   :  { %v873_v35 = vsub.f32 1.0, %v872_v57  ;;  %v759_v37 = vmul.f32 %v4688_v52, %v758_v34 }
 0x902   :  { %v874_v42 = vmul.f32 %v4694_v30, %v873_v35  ;;  %4457 = vmatmul.msk.f32.vlgmr.msrb.gmra.mxu1 %vm210_vm9, %v759_v37  ;;  %v4696_v52 = vpop.eup %4695 }
 0x903   :  { %v1064_v53 = vmul.f32 %v4696_v52, %v1061_v0 }
 0x904   :  { %v875_v41 = vadd.f32 %v4694_v30, %v874_v42 }
 0x905   :  { %v1065_v54 = vmul.f32 %v4696_v52, %v1064_v53 }
 0x906   :  { %v879_v44 = vsel %vm878_vm3, %v4694_v30, %v875_v41 }
 0x907   :  { %v884_v45 = vsel %vm881_vm4, %v883_v33, %v879_v44  ;;  %v1066_v59 = vmul.f32 0.5, %v1065_v54 }
 0x908   :  { %v885_v47 = vmul.f32 %v4690_v63, %v884_v45 }
 0x909   :  { %v887_v48 = vpop.permute.xlu0 %886  ;;  %v1067_v4 = vsub.f32 1.5, %v1066_v59 }
 0x90a   :  { %907 = vmatpush.msra.mxu1 %v887_v48 }
 0x90b   :  { %4462 = vmatmul.msk.f32.vlgmr.msra.gmra.mxu1 %vm210_vm9, %v885_v47  ;;  %v1068_v5 = vmul.f32 %v4696_v52, %v1067_v4 }
 0x90c   :  { %1034 = vmatpush.msrb.mxu1 %v5190_v60 }
 0x90d   :  { %v1069_v6 = vmul.f32 %v1068_v5, %v1061_v0 }
 0x90e   :  { %4631 = vrot.lane.b32.xlu2 %v4630_v50, %s4888_s25 }
 0x911   :  { %v4627_v62 = vpop.permute.xlu0 %4626 }
 0x912   :  { %v4629_v63 = vunpack.i.h.bf16 %v4627_v62  ;;  %v4628_v3 = vunpack.i.l.bf16 %v4627_v62 }
 0x914   :  { %1191 = vmatpush.msrb.mxu0 %v4628_v3 }
 0x916   :  { %990 = vrot.lane.b32.xlu2 %v5133_v56, %s6138_s20  ;;  %1192 = vmatpush.msrb.mxu0 %v4629_v63  ;;  %v1071_v56 = vsel %vm1070_vm6, %v1061_v0, %v1069_v6 }
 0x917   :  { %v1074_v10 = vsel %vm1072_vm7, %v1073_v7, %v1071_v56 }
 0x918   :  { %v1090_v11 = vadd.f32 1e-06, %v1074_v10 }
 0x91a   :  { %4697 = vrcp.f32 %v1090_v11  ;;  %v1103_v37 = vand.u32 2147483648, %v1090_v11  ;;  %vm1097_vm11 = vweird.f32 %v1090_v11 }
 0x91c   :  { %v1104_v43 = vor.u32 1.1754944e-38, %v1103_v37 }
 0x91e   :  { %1170 = vrot.lane.b32.xlu2 %v5046_v55, %s4888_s25 }
 0x920   :  { %v4698_v17 = vpop.eup %4697 }
 0x921   :  { %v1093_v30 = vmul.f32 %v4698_v17, %v1090_v11  ;;  %vm1098_vm8 = vweird.f32 %v4698_v17 }
 0x922   :  { %vm1099_vm12 = vmor %vm1097_vm11, %vm1098_vm8 }
 0x923   :  { %v1094_v31 = vsub.f32 1.0, %v1093_v30 }
 0x925   :  { %v1095_v57 = vmul.f32 %v4698_v17, %v1094_v31 }
 0x927   :  { %v1096_v35 = vadd.f32 %v4698_v17, %v1095_v57 }
 0x929   :  { %v1100_v42 = vsel %vm1099_vm12, %v4698_v17, %v1096_v35 }
 0x969   :  { %v968_v12 = vpop.xlane.xlu2 %967 }
 0x96a   :  { %v969_v14 = vsub.f32 %v5241_v13, %v968_v12 }
 0x96c   :  { %v970_v15 = vmul.f32 1.442695, %v969_v14  ;;  %v4898_v14 = vmov 0  }
 0x96e   :  { %4699 = vpow2.f32 %v970_v15 }
 0x971   :  { %v4632_v16 = vpop.permute.xlu2 %4631 }
 0x972   :  { %v4634_v23 = vunpack.i.h.bf16 %v4632_v16  ;;  %v4633_v25 = vunpack.i.l.bf16 %v4632_v16 }
 0x974   :  { %v5257_v26 = vpop.eup %4699  ;;  %1193 = vmatpush.msrb.mxu0 %v4633_v25 }
 0x975   :  { %v972_v28 = vsel %vm210_vm9, %v5257_v26, 0.0 }
 0x976   :  { %973 = vadd.xlane.f32.xlu0 %v972_v28  ;;  %1194 = vmatpush.msrb.mxu0 %v4634_v23 }
 0x977   :  { %4470 = vmatmul.msk.f32.vlgmr.msrb.gmra.mxu0 %vm78_vm0, %v57_v27 }
 0x978   :  { %1405 = vmatpush.msra.mxu0 %v5108_v2  ;;  %v1101_v2 = vand.u32 2147483647, %v1090_v11 }
 0x979   :  { %v991_v13 = vpop.permute.xlu2 %990 }
 0x97a   :  { %1011 = vmatpush.msrb.mxu2 %v991_v13  ;;  %vm1102_vm13 = vcmp.eq.f32.partialorder %v1101_v2, 8.507059e+37 }
 0x97b   :  { %v1105_v33 = vsel %vm1102_vm13, %v1104_v43, %v1100_v42 }
 0x97f   :  { %v783_v34 = vpop.f32.mrf.mxu1  ;;  %4471 = vmatmul.msk.f32.gmra.mxu0 %vm78_vm0, %v4431_v32 }
 0x980   :  { %4458 = vmatmul.msk.f32.vlgmr.msra.gmra.mxu3 %vm210_vm9, %v783_v34 }
 0x981   :  { %1143 = vmatpush.msra.mxu3 %v5002_v18  ;;  %v1088_v18 = vmul.f32 %v1087_v38, %v5226_v1  ;;  %v5286_v48 = vpop.permute.xlu2 %1170 }
 0x983   :  { %1144 = vmatpush.msra.mxu3 %v5007_v19  ;;  %v1122_v19 = vperm.slane %v5035_v46, 1  ;;  %v1106_v44 = vmul.f32 %v1105_v33, %v1088_v18 }
 0x985   :  { %1145 = vmatpush.msra.mxu3 %v5013_v21  ;;  %v1123_v21 = vadd.f32 %v1122_v19, %v1106_v44 }
 0x987   :  { %1146 = vmatpush.msra.mxu3 %v5019_v22 }
 0x988   :  { %v909_v41 = vpop.f32.mrf.mxu1 }
 0x989   :  { %4463 = vmatmul.msk.f32.vlgmr.msrb.gmra.mxu3 %vm210_vm9, %v909_v41 }
 0x98a   :  { %1382 = vmatpush.msrb.mxu3 %v5094_v49 }
 0x991   :  { %4468 = vmatmul.msk.f32.vlgmr.msra.gmra.mxu3 %vm78_vm0, %v1123_v21 }
 0x992   :  { %1508 = vmatpush.msra.mxu3 %v5140_v58 }
 0x9e9   :  { %v974_v22 = vpop.xlane.xlu0 %973 }
 0x9ea   :  { %4701 = vrcp.f32 %v974_v22  ;;  %v986_v50 = vand.u32 2147483648, %v974_v22  ;;  %v984_v0 = vand.u32 2147483647, %v974_v22  ;;  %vm980_vm15 = vweird.f32 %v974_v22 }
 0x9ec   :  { %v987_v58 = vor.u32 1.1754944e-38, %v986_v50  ;;  %vm985_vm2 = vcmp.eq.f32.partialorder %v984_v0, 8.507059e+37 }
 0x9f0   :  { %v4702_v45 = vpop.eup %4701 }
 0x9f1   :  { %v976_v47 = vmul.f32 %v4702_v45, %v974_v22  ;;  %vm981_vm14 = vweird.f32 %v4702_v45 }
 0x9f2   :  { %vm982_vm1 = vmor %vm980_vm15, %vm981_vm14 }
 0x9f3   :  { %v977_v1 = vsub.f32 1.0, %v976_v47 }
 0x9f4   :  { %v1196_v51 = vpop.f32.mrf.mxu0 }
 0x9f5   :  { %v978_v49 = vmul.f32 %v4702_v45, %v977_v1  ;;  %v5289_v52 = vadd.f32 %v1196_v51, %v5286_v48 }
 0x9f7   :  { %v979_v53 = vadd.f32 %v4702_v45, %v978_v49  ;;  %1286 = vrot.lane.b32.xlu1 %v5289_v52, %s4887_s24  ;;  %1412 = vrot.lane.b32.xlu0 %v5289_v52, %s4891_s30 }
 0x9f8   :  { %4472 = vmatpush.xpose.msk.msra.mxu2 %vm210_vm9, %v5289_v52 }
 0x9f9   :  { %v983_v54 = vsel %vm982_vm1, %v4702_v45, %v979_v53 }
 0x9fa   :  { %v988_v59 = vsel %vm985_vm2, %v987_v58, %v983_v54 }
 0x9fb   :  { %v989_v62 = vmul.f32 %v5257_v26, %v988_v59 }
 0x9fd   :  { %4466 = vmatmul.msk.f32.vlgmr.msrb.gmra.mxu2 %vm210_vm9, %v989_v62 }
 0xa03   :  { %v806_v63 = vpop.f32.mrf.mxu3 }
 0xa04   :  { %v830_v3 = vadd.f32 %v5237_v9, %v806_v63 }
 0xa0c   :  { %v932_v4 = vpop.f32.mrf.mxu3 }
 0xa0d   :  { %v935_v5 = vadd.f32 %v932_v4, %v830_v3 }
 0xa14   :  { %v1148_v6 = vpop.f32.mrf.mxu3 }
 0xa15   :  { %v1149_v56 = vadd.f32 %v5046_v55, %v1148_v6  ;;  %v63_v55 = vld [vmem:[%s6122_s2] sm:$0x1] }
 0xa16   :  { %vm1229_vm3 = vcmp.eq.f32.partialorder %v63_v55, 0.0 }
 0xa17   :  { %1284 = vrot.lane.b32.xlu2 %v1149_v56, %s4887_s24  ;;  %4473 = vmatmul.msk.f32.vlgmr.msra.gmra.mxu2 %vm210_vm9, %v1149_v56  ;;  %v1230_v15 = vsel %vm1229_vm3, 1, %v4898_v14 }
 0xa18   :  { %v1231_v16 = vperm.slane %v1230_v15, 0 }
 0xa1a   :  { %vm5313_vm4 = vcmp.eq.s32.totalorder %v1231_v16, 1 }
 0xa1f   :  { %1410 = vrot.lane.b32.xlu2 %v1149_v56, %s4891_s30 }
 0xa69   :  { %v1287_v7 = vpop.permute.xlu1 %1286  ;;  %v1413_v10 = vpop.permute.xlu0 %1412 }
 0xa6a   :  { %4475 = vmatpush.xpose.msk.msrb.mxu2 %vm210_vm9, %v1287_v7 }
 0xa6e   :  { %4480 = vmatpush.xpose.msk.msra.mxu2 %vm210_vm9, %v1413_v10 }
 0xa71   :  { %v1285_v11 = vpop.permute.xlu2 %1284 }
 0xa72   :  { %4476 = vmatmul.msk.f32.vlgmr.msrb.gmra.mxu2 %vm210_vm9, %v1285_v11 }
 0xa79   :  { %v1411_v9 = vpop.permute.xlu2 %1410 }
 0xa7a   :  { %4481 = vmatmul.msk.f32.vlgmr.msra.gmra.mxu2 %vm210_vm9, %v1411_v9 }
 0xa80   :  { %v1013_v12 = vpop.f32.mrf.mxu2 }
 0xa81   :  { %4467 = vmatmul.msk.f32.vlgmr.msrb.gmra.mxu1 %vm210_vm9, %v1013_v12 }
 0xa9a   :  { %v1225_v17 = vpop.f32.mrf.mxu2 }
 0xa9b   :  { %v1228_v25 = vmul.f32 0.35355338, %v1225_v17 }
 0xa9d   :  { %v1233_v26 = vsel %vm5313_vm4, -1e+09, %v1228_v25 }
 0xa9e   :  { %v1234_v27 = vsel %vm210_vm9, %v1233_v26, -inf }
 0xa9f   :  { %1235 = vmax.xlane.f32.xlu1 %v1234_v27 }
 0xaf5   :  { %v1309_v28 = vpop.f32.mrf.mxu2 }
 0xaf6   :  { %v1312_v30 = vmul.f32 0.35355338, %v1309_v28 }
 0xaf8   :  { %v1313_v13 = vsel %vm5313_vm4, -1e+09, %v1312_v30 }
 0xaf9   :  { %v1314_v31 = vsel %vm210_vm9, %v1313_v13, -inf }
 0xafa   :  { %1315 = vmax.xlane.f32.xlu0 %v1314_v31 }
 0xafd   :  { %v1435_v35 = vpop.f32.mrf.mxu2 }
 0xafe   :  { %v1036_v32 = vpop.f32.mrf.mxu1  ;;  %v1438_v42 = vmul.f32 0.35355338, %v1435_v35 }
 0xaff   :  { %v1039_v57 = vadd.f32 %v1036_v32, %v935_v5 }
 0xb00   :  { %v1439_v43 = vsel %vm5313_vm4, -1e+09, %v1438_v42 }
 0xb01   :  { %v1040_v34 = vadd.f32 %v5208_v36, %v1039_v57  ;;  %v1440_v41 = vsel %vm210_vm9, %v1439_v43, -inf }
 0xb03   :  { %v5325_v37 = vadd.f32 %v5087_v20, %v1040_v34  ;;  %v1199_v20 = vpop.f32.mrf.mxu0 }
 0xb04   :  { %v5337_v45 = vadd.f32 %v1199_v20, %v5286_v48 }
 0xb05   :  { %v1046_v2 = vsel %vm78_vm0, %v5325_v37, 0.0 }
 0xb06   :  { %1047 = vadd.xlane.f32.xlu2 %v1046_v2 }
 0xb0e   :  { %1441 = vmax.xlane.f32.xlu2 %v1440_v41 }
 0xb12   :  { %v1236_v33 = vpop.xlane.xlu1 %1235 }
 0xb13   :  { %v1237_v18 = vsub.f32 %v1233_v26, %v1236_v33 }
 0xb15   :  { %v1238_v44 = vmul.f32 1.442695, %v1237_v18 }
 0xb17   :  { %4703 = vpow2.f32 %v1238_v44 }
 0xb1d   :  { %v4704_v21 = vpop.eup %4703 }
 0xb1e   :  { %v1240_v22 = vsel %vm210_vm9, %v4704_v21, 0.0 }
 0xb1f   :  { %1241 = vadd.xlane.f32.xlu2 %v1240_v22 }
 0xb37   :  { %1258 = vrot.lane.b32.xlu2 %v5289_v52, %s4888_s25 }
 0xb3f   :  { %1514 = vrot.lane.b32.xlu2 %v1149_v56, %s4895_s28 }
 0xb47   :  { %1675 = vrot.lane.b32.xlu2 %v5337_v45, %s4888_s25 }
 0xb6d   :  { %v1316_v47 = vpop.xlane.xlu0 %1315 }
 0xb6e   :  { %v1317_v1 = vsub.f32 %v1313_v13, %v1316_v47 }
 0xb70   :  { %v1318_v50 = vmul.f32 1.442695, %v1317_v1 }
 0xb72   :  { %4705 = vpow2.f32 %v1318_v50 }
 0xb78   :  { %v4706_v51 = vpop.eup %4705 }
 0xb79   :  { %v1048_v49 = vpop.xlane.xlu2 %1047  ;;  %v1320_v0 = vsel %vm210_vm9, %v4706_v51, 0.0 }
 0xb7a   :  { %v1050_v53 = vmul.f32 %v1048_v49, %v4994_v8  ;;  %1321 = vadd.xlane.f32.xlu0 %v1320_v0 }
 0xb7c   :  { %v5344_v58 = vsub.f32 %v5325_v37, %v1050_v53 }
 0xb7e   :  { %v1054_v48 = vmul.f32 %v5344_v58, %v5344_v58 }
 0xb80   :  { %v1058_v54 = vsel %vm78_vm0, %v1054_v48, 0.0 }
 0xb81   :  { %1059 = vadd.xlane.f32.xlu1 %v1058_v54  ;;  %v1442_v59 = vpop.xlane.xlu2 %1441 }
 0xb82   :  { %v1443_v62 = vsub.f32 %v1439_v43, %v1442_v59 }
 0xb84   :  { %v1444_v63 = vmul.f32 1.442695, %v1443_v62 }
 0xb86   :  { %4707 = vpow2.f32 %v1444_v63 }
 0xb8c   :  { %v5349_v3 = vpop.eup %4707 }
 0xb8d   :  { %v1446_v4 = vsel %vm210_vm9, %v5349_v3, 0.0 }
 0xb8e   :  { %1447 = vadd.xlane.f32.xlu1 %v1446_v4  ;;  %1338 = vrot.lane.b32.xlu0 %v5289_v52, %s4889_s26 }
 0xb92   :  { %v1242_v5 = vpop.xlane.xlu2 %1241 }
 0xb93   :  { %4709 = vrcp.f32 %v1242_v5  ;;  %v1254_v11 = vand.u32 2147483648, %v1242_v5  ;;  %v1252_v12 = vand.u32 2147483647, %v1242_v5  ;;  %vm1248_vm7 = vweird.f32 %v1242_v5 }
 0xb95   :  { %v1255_v15 = vor.u32 1.1754944e-38, %v1254_v11  ;;  %vm1253_vm11 = vcmp.eq.f32.partialorder %v1252_v12, 8.507059e+37 }
 0xb96   :  { %1516 = vrot.lane.b32.xlu0 %v5289_v52, %s4895_s28 }
 0xb99   :  { %v4710_v6 = vpop.eup %4709 }
 0xb9a   :  { %v1244_v56 = vmul.f32 %v4710_v6, %v1242_v5  ;;  %v1259_v7 = vpop.permute.xlu2 %1258  ;;  %vm1249_vm6 = vweird.f32 %v4710_v6 }
 0xb9b   :  { %1279 = vmatpush.msra.mxu1 %v1259_v7  ;;  %vm1250_vm8 = vmor %vm1248_vm7, %vm1249_vm6 }
 0xb9c   :  { %v1245_v10 = vsub.f32 1.0, %v1244_v56 }
 0xb9e   :  { %v1246_v9 = vmul.f32 %v4710_v6, %v1245_v10 }
 0xba0   :  { %v1247_v55 = vadd.f32 %v4710_v6, %v1246_v9 }
 0xba2   :  { %v1251_v16 = vsel %vm1250_vm8, %v4710_v6, %v1247_v55 }
 0xba3   :  { %v1256_v17 = vsel %vm1253_vm11, %v1255_v15, %v1251_v16 }
 0xba4   :  { %v1257_v25 = vmul.f32 %v4704_v21, %v1256_v17 }
 0xba6   :  { %4474 = vmatmul.msk.f32.vlgmr.msra.gmra.mxu1 %vm210_vm9, %v1257_v25 }
 0xba7   :  { %1464 = vrot.lane.b32.xlu1 %v5289_v52, %s4893_s17 }
 0xbed   :  { %v1322_v26 = vpop.xlane.xlu0 %1321 }
 0xbee   :  { %4711 = vrcp.f32 %v1322_v26  ;;  %v1334_v32 = vand.u32 2147483648, %v1322_v26  ;;  %v1332_v34 = vand.u32 2147483647, %v1322_v26  ;;  %vm1328_vm13 = vweird.f32 %v1322_v26 }
 0xbf0   :  { %v1335_v2 = vor.u32 1.1754944e-38, %v1334_v32  ;;  %vm1333_vm15 = vcmp.eq.f32.partialorder %v1332_v34, 8.507059e+37 }
 0xbf4   :  { %v4712_v27 = vpop.eup %4711  ;;  %v1060_v28 = vpop.xlane.xlu1 %1059 }
 0xbf5   :  { %v1324_v30 = vmul.f32 %v4712_v27, %v1322_v26  ;;  %v1062_v13 = vmul.f32 %v1060_v28, %v5023_v24  ;;  %vm1329_vm12 = vweird.f32 %v4712_v27  ;;  %v1515_v26 = vpop.permute.xlu2 %1514 }
 0xbf6   :  { %vm1330_vm14 = vmor %vm1328_vm13, %vm1329_vm12 }
 0xbf7   :  { %v1325_v31 = vsub.f32 1.0, %v1324_v30  ;;  %4713 = vrsqrt.f32 %v1062_v13  ;;  %vm1082_vm1 = vcmp.eq.f32.partialorder %v1062_v13, inf  ;;  %v1085_v53 = vand.u32 2147483648, %v1062_v13 }
 0xbf8   :  { %vm1084_vm2 = vcmp.eq.f32.partialorder %v1062_v13, 0.0  ;;  %v1089_v30 = vmul.f32 %v1087_v38, %v5344_v58  ;;  %v4844_v38 = vld [vmem:[%s6126_s6 + $0x8] sm:$0xff] }
 0xbf9   :  { %v1326_v57 = vmul.f32 %v4712_v27, %v1325_v31 }
 0xbfb   :  { %v1327_v35 = vadd.f32 %v4712_v27, %v1326_v57 }
 0xbfd   :  { %v4714_v42 = vpop.eup %4713  ;;  %v1331_v43 = vsel %vm1330_vm14, %v4712_v27, %v1327_v35  ;;  %v1676_v34 = vpop.permute.xlu2 %1675  ;;  %v4845_v35 = vld [vmem:[%s6125_s5] ss:$0 sm:$0xff] }
 0xbfe   :  { %v1076_v41 = vmul.f32 %v4714_v42, %v1062_v13  ;;  %v1336_v33 = vsel %vm1333_vm15, %v1335_v2, %v1331_v43 }
 0xbff   :  { %v1337_v18 = vmul.f32 %v4706_v51, %v1336_v33 }
 0xc00   :  { %v1077_v44 = vmul.f32 %v4714_v42, %v1076_v41  ;;  %v1339_v21 = vpop.permute.xlu0 %1338  ;;  %v4846_v41 = vld [vmem:[%s6126_s6 + $0x10] sm:$0xff] }
 0xc01   :  { %1359 = vmatpush.msrb.mxu1 %v1339_v21  ;;  %v1448_v22 = vpop.xlane.xlu1 %1447 }
 0xc02   :  { %v1078_v20 = vmul.f32 0.5, %v1077_v44  ;;  %4715 = vrcp.f32 %v1448_v22  ;;  %4477 = vmatmul.msk.f32.vlgmr.msrb.gmra.mxu1 %vm210_vm9, %v1337_v18  ;;  %v1460_v5 = vand.u32 2147483648, %v1448_v22  ;;  %vm1454_vm6 = vweird.f32 %v1448_v22 }
 0xc03   :  { %v1458_v6 = vand.u32 2147483647, %v1448_v22 }
 0xc04   :  { %v1079_v47 = vsub.f32 1.5, %v1078_v20  ;;  %v1461_v10 = vor.u32 1.1754944e-38, %v1460_v5 }
 0xc05   :  { %vm1459_vm8 = vcmp.eq.f32.partialorder %v1458_v6, 8.507059e+37 }
 0xc06   :  { %v1080_v1 = vmul.f32 %v4714_v42, %v1079_v47  ;;  %v4433_v47 = vld [vmem:[%s6122_s2 + $0x1] sm:$0x1] }
 0xc07   :  { %vm1646_vm15 = vcmp.eq.f32.partialorder %v4433_v47, 0.0 }
 0xc08   :  { %v4716_v50 = vpop.eup %4715  ;;  %v1081_v49 = vmul.f32 %v1080_v1, %v1062_v13  ;;  %v1517_v0 = vpop.permute.xlu0 %1516 }
 0xc09   :  { %v1450_v48 = vmul.f32 %v4716_v50, %v1448_v22  ;;  %4484 = vmatpush.xpose.msk.msrb.mxu0 %vm210_vm9, %v1517_v0  ;;  %vm1455_vm3 = vweird.f32 %v4716_v50 }
 0xc0a   :  { %v1083_v54 = vsel %vm1082_vm1, %v1062_v13, %v1081_v49  ;;  %vm1456_vm7 = vmor %vm1454_vm6, %vm1455_vm3 }
 0xc0b   :  { %v1451_v51 = vsub.f32 1.0, %v1450_v48  ;;  %v1086_v59 = vsel %vm1084_vm2, %v1085_v53, %v1083_v54 }
 0xc0c   :  { %v1091_v62 = vadd.f32 1e-06, %v1086_v59 }
 0xc0d   :  { %v1452_v63 = vmul.f32 %v4716_v50, %v1451_v51 }
 0xc0e   :  { %4717 = vrcp.f32 %v1091_v62  ;;  %v1118_v55 = vand.u32 2147483648, %v1091_v62  ;;  %v1116_v25 = vand.u32 2147483647, %v1091_v62  ;;  %vm1112_vm12 = vweird.f32 %v1091_v62 }
 0xc0f   :  { %v1453_v4 = vadd.f32 %v4716_v50, %v1452_v63 }
 0xc10   :  { %v1119_v28 = vor.u32 1.1754944e-38, %v1118_v55  ;;  %vm1117_vm14 = vcmp.eq.f32.partialorder %v1116_v25, 8.507059e+37 }
 0xc11   :  { %v1457_v56 = vsel %vm1456_vm7, %v4716_v50, %v1453_v4  ;;  %v1647_v50 = vsel %vm1646_vm15, 1, %v4898_v14 }
 0xc12   :  { %v1462_v9 = vsel %vm1459_vm8, %v1461_v10, %v1457_v56  ;;  %v1648_v0 = vperm.slane %v1647_v50, 0 }
 0xc13   :  { %v1463_v16 = vmul.f32 %v5349_v3, %v1462_v9 }
 0xc14   :  { %v4718_v7 = vpop.eup %4717  ;;  %vm5402_vm1 = vcmp.eq.s32.totalorder %v1648_v0, 1 }
 0xc15   :  { %v1108_v11 = vmul.f32 %v4718_v7, %v1091_v62  ;;  %vm1113_vm11 = vweird.f32 %v4718_v7 }
 0xc16   :  { %vm1114_vm13 = vmor %vm1112_vm12, %vm1113_vm11 }
 0xc17   :  { %v1109_v12 = vsub.f32 1.0, %v1108_v11 }
 0xc19   :  { %v1465_v15 = vpop.permute.xlu1 %1464  ;;  %v1110_v17 = vmul.f32 %v4718_v7, %v1109_v12 }
 0xc1a   :  { %1485 = vmatpush.msra.mxu1 %v1465_v15 }
 0xc1b   :  { %4482 = vmatmul.msk.f32.vlgmr.msra.gmra.mxu1 %vm210_vm9, %v1463_v16  ;;  %v1111_v27 = vadd.f32 %v4718_v7, %v1110_v17 }
 0xc1c   :  { %1612 = vmatpush.msrb.mxu1 %v5190_v60 }
 0xc1d   :  { %v1115_v13 = vsel %vm1114_vm13, %v4718_v7, %v1111_v27 }
 0xc1e   :  { %v1120_v3 = vsel %vm1117_vm14, %v1119_v28, %v1115_v13 }
 0xc1f   :  { %v1121_v31 = vmul.f32 %v1120_v3, %v1089_v30 }
 0xc21   :  { %v1124_v32 = vadd.f32 %v1122_v19, %v1121_v31 }
 0xc23   :  { %4469 = vmatmul.msk.f32.gmra.mxu3 %vm78_vm0, %v1124_v32  ;;  %v1281_v57 = vpop.f32.mrf.mxu1 }
 0xc24   :  { %4479 = vmatmul.msk.f32.vlgmr.msra.gmra.mxu0 %vm210_vm9, %v1281_v57 }
 0xc25   :  { %1696 = vmatpush.msra.mxu0 %v1676_v34 }
 0xc2c   :  { %4485 = vmatmul.msk.f32.vlgmr.msrb.gmra.mxu0 %vm210_vm9, %v1515_v26 }
 0xc2d   :  { %1822 = vmatpush.msrb.mxu0 %v4843_v40 }
 0xc7f   :  { %v1361_v60 = vpop.f32.mrf.mxu1 }
 0xc80   :  { %4478 = vmatmul.msk.f32.vlgmr.msrb.gmra.mxu3 %vm210_vm9, %v1361_v60 }
 0xc81   :  { %4488 = vmatpush.xpose.msk.msrb.mxu3 %vm210_vm9, %v5337_v45 }
 0xc98   :  { %v1487_v46 = vpop.f32.mrf.mxu1 }
 0xc99   :  { %4483 = vmatmul.msk.f32.vlgmr.msra.gmra.mxu3 %vm210_vm9, %v1487_v46 }
 0xc9a   :  { %1799 = vmatpush.msra.mxu3 %v4844_v38 }
 0xca1   :  { %v1407_v19 = vpop.f32.mrf.mxu0 }
 0xca6   :  { %v1151_v58 = vpop.f32.mrf.mxu3 }
 0xca7   :  { %v1152_v2 = vadd.f32 %v4845_v35, %v1151_v58 }
 0xca9   :  { %v1539_v42 = vpop.f32.mrf.mxu0  ;;  %4489 = vmatmul.msk.f32.vlgmr.msrb.gmra.mxu3 %vm210_vm9, %v1152_v2 }
 0xcaa   :  { %v1542_v43 = vmul.f32 0.35355338, %v1539_v42  ;;  %1925 = vmatpush.msrb.mxu3 %v4846_v41 }
 0xcac   :  { %v1543_v33 = vsel %vm5313_vm4, -1e+09, %v1542_v43 }
 0xcad   :  { %v1544_v18 = vsel %vm210_vm9, %v1543_v33, -inf }
 0xcae   :  { %1545 = vmax.xlane.f32.xlu2 %v1544_v18 }
 0xcc6   :  { %1701 = vrot.lane.b32.xlu2 %v1152_v2, %s4887_s24 }
 0xcce   :  { %1931 = vrot.lane.b32.xlu2 %v1152_v2, %s4895_s28 }
 0xd03   :  { %v1384_v44 = vpop.f32.mrf.mxu3 }
 0xd04   :  { %v1408_v21 = vadd.f32 %v1407_v19, %v1384_v44 }
 0xd1c   :  { %v1510_v22 = vpop.f32.mrf.mxu3 }
 0xd1d   :  { %v5396_v20 = vadd.f32 %v1510_v22, %v1408_v21 }
 0xd21   :  { %v1546_v1 = vpop.xlane.xlu2 %1545 }
 0xd22   :  { %v1547_v49 = vsub.f32 %v1543_v33, %v1546_v1 }
 0xd24   :  { %v1548_v53 = vmul.f32 1.442695, %v1547_v49 }
 0xd26   :  { %4719 = vpow2.f32 %v1548_v53 }
 0xd2c   :  { %v1642_v48 = vpop.f32.mrf.mxu3  ;;  %v4720_v63 = vpop.eup %4719 }
 0xd2d   :  { %v1645_v51 = vmul.f32 0.35355338, %v1642_v48  ;;  %v1550_v4 = vsel %vm210_vm9, %v4720_v63, 0.0 }
 0xd2f   :  { %v1650_v59 = vsel %vm5402_vm1, -1e+09, %v1645_v51 }
 0xd30   :  { %v1651_v62 = vsel %vm210_vm9, %v1650_v59, -inf }
 0xd31   :  { %1652 = vmax.xlane.f32.xlu0 %v1651_v62 }
 0xd39   :  { %1551 = vadd.xlane.f32.xlu0 %v1550_v4 }
 0xd4d   :  { %1703 = vrot.lane.b32.xlu0 %v5337_v45, %s4887_s24 }
 0xd55   :  { %1827 = vrot.lane.b32.xlu0 %v1152_v2, %s4891_s30  ;;  %v1702_v2 = vpop.permute.xlu2 %1701 }
 0xd5d   :  { %v1932_v33 = vpop.permute.xlu2 %1931 }
 0xda4   :  { %v1653_v14 = vpop.xlane.xlu0 %1652 }
 0xda5   :  { %v1654_v5 = vsub.f32 %v1650_v59, %v1653_v14 }
 0xda7   :  { %v1655_v6 = vmul.f32 1.442695, %v1654_v5 }
 0xda9   :  { %4721 = vpow2.f32 %v1655_v6 }
 0xdac   :  { %v1552_v10 = vpop.xlane.xlu0 %1551 }
 0xdad   :  { %4723 = vrcp.f32 %v1552_v10  ;;  %v1564_v13 = vand.u32 2147483648, %v1552_v10  ;;  %vm1558_vm8 = vweird.f32 %v1552_v10  ;;  %v1562_v31 = vand.u32 2147483647, %v1552_v10 }
 0xdaf   :  { %v4722_v56 = vpop.eup %4721  ;;  %v1565_v60 = vor.u32 1.1754944e-38, %v1564_v13  ;;  %vm1563_vm13 = vcmp.eq.f32.partialorder %v1562_v31, 8.507059e+37 }
 0xdb0   :  { %v1657_v7 = vsel %vm210_vm9, %v4722_v56, 0.0 }
 0xdb1   :  { %1658 = vadd.xlane.f32.xlu1 %v1657_v7 }
 0xdb3   :  { %v4724_v11 = vpop.eup %4723 }
 0xdb4   :  { %v1554_v12 = vmul.f32 %v4724_v11, %v1552_v10  ;;  %vm1559_vm3 = vweird.f32 %v4724_v11 }
 0xdb5   :  { %vm1560_vm12 = vmor %vm1558_vm8, %vm1559_vm3 }
 0xdb6   :  { %v1555_v55 = vsub.f32 1.0, %v1554_v12 }
 0xdb8   :  { %v1556_v17 = vmul.f32 %v4724_v11, %v1555_v55 }
 0xdba   :  { %v1557_v28 = vadd.f32 %v4724_v11, %v1556_v17 }
 0xdbc   :  { %v1561_v34 = vsel %vm1560_vm12, %v4724_v11, %v1557_v28 }
 0xdbd   :  { %v1566_v46 = vsel %vm1563_vm13, %v1565_v60, %v1561_v34 }
 0xdbe   :  { %v1567_v19 = vmul.f32 %v4720_v63, %v1566_v46 }
 0xdbf   :  { %v1704_v58 = vpop.permute.xlu0 %1703 }
 0xdc7   :  { %v1828_v43 = vpop.permute.xlu0 %1827 }
 0xdca   :  { %1568 = vrot.lane.b32.xlu1 %v5289_v52, %s4894_s21 }
 0xdd2   :  { %1829 = vrot.lane.b32.xlu1 %v5337_v45, %s4891_s30 }
 0xdda   :  { %1933 = vrot.lane.b32.xlu1 %v5337_v45, %s4895_s28 }
 0xe24   :  { %v1659_v9 = vpop.xlane.xlu1 %1658 }
 0xe25   :  { %4725 = vrcp.f32 %v1659_v9  ;;  %v1671_v26 = vand.u32 2147483648, %v1659_v9  ;;  %v1669_v52 = vand.u32 2147483647, %v1659_v9  ;;  %vm1665_vm6 = vweird.f32 %v1659_v9 }
 0xe27   :  { %v1672_v3 = vor.u32 1.1754944e-38, %v1671_v26  ;;  %vm1670_vm11 = vcmp.eq.f32.partialorder %v1669_v52, 8.507059e+37 }
 0xe2b   :  { %v4726_v15 = vpop.eup %4725 }
 0xe2c   :  { %v1661_v16 = vmul.f32 %v4726_v15, %v1659_v9  ;;  %vm1666_vm2 = vweird.f32 %v4726_v15 }
 0xe2d   :  { %vm1667_vm7 = vmor %vm1665_vm6, %vm1666_vm2 }
 0xe2e   :  { %v1662_v25 = vsub.f32 1.0, %v1661_v16 }
 0xe30   :  { %v1663_v27 = vmul.f32 %v4726_v15, %v1662_v25 }
 0xe32   :  { %v1664_v30 = vadd.f32 %v4726_v15, %v1663_v27 }
 0xe34   :  { %v1668_v32 = vsel %vm1667_vm7, %v4726_v15, %v1664_v30 }
 0xe35   :  { %v1673_v57 = vsel %vm1670_vm11, %v1672_v3, %v1668_v32 }
 0xe36   :  { %v1674_v40 = vmul.f32 %v4722_v56, %v1673_v57 }
 0xe38   :  { %4490 = vmatmul.msk.f32.vlgmr.msra.gmra.mxu0 %vm210_vm9, %v1674_v40 }
 0xe3c   :  { %v1569_v38 = vpop.permute.xlu1 %1568 }
 0xe3d   :  { %1589 = vmatpush.msrb.mxu2 %v1569_v38 }
 0xe3e   :  { %4486 = vmatmul.msk.f32.vlgmr.msrb.gmra.mxu2 %vm210_vm9, %v1567_v19 }
 0xe3f   :  { %4491 = vmatpush.xpose.msk.msra.mxu2 %vm210_vm9, %v1704_v58 }
 0xe44   :  { %v1830_v35 = vpop.permute.xlu1 %1829 }
 0xe45   :  { %4496 = vmatpush.xpose.msk.msrb.mxu2 %vm210_vm9, %v1830_v35 }
 0xe46   :  { %4492 = vmatmul.msk.f32.vlgmr.msra.gmra.mxu2 %vm210_vm9, %v1702_v2 }
 0xe4c   :  { %v1934_v42 = vpop.permute.xlu1 %1933 }
 0xe4d   :  { %4500 = vmatpush.xpose.msk.msra.mxu0 %vm210_vm9, %v1934_v42 }
 0xe4e   :  { %4497 = vmatmul.msk.f32.vlgmr.msrb.gmra.mxu2 %vm210_vm9, %v1828_v43 }
 0xeb5   :  { %v1698_v41 = vpop.f32.mrf.mxu0 }
 0xeb6   :  { %4495 = vmatmul.msk.f32.vlgmr.msrb.gmra.mxu0 %vm210_vm9, %v1698_v41 }
 0xebe   :  { %4501 = vmatmul.msk.f32.vlgmr.msra.gmra.mxu0 %vm210_vm9, %v1932_v33 }
 0xec1   :  { %v1591_v18 = vpop.f32.mrf.mxu2 }
 0xec2   :  { %4487 = vmatmul.msk.f32.vlgmr.msrb.gmra.mxu1 %vm210_vm9, %v1591_v18 }
 0xec9   :  { %v1726_v44 = vpop.f32.mrf.mxu2 }
 0xeca   :  { %v1729_v21 = vmul.f32 0.35355338, %v1726_v44 }
 0xecc   :  { %v1730_v22 = vsel %vm5402_vm1, -1e+09, %v1729_v21 }
 0xecd   :  { %v1731_v47 = vsel %vm210_vm9, %v1730_v22, -inf }
 0xece   :  { %1732 = vmax.xlane.f32.xlu0 %v1731_v47  ;;  %v4847_v47 = vld [vmem:[%s6126_s6 + $0x18] sm:$0xff] }
 0xed1   :  { %v1852_v1 = vpop.f32.mrf.mxu2 }
 0xed2   :  { %v1855_v50 = vmul.f32 0.35355338, %v1852_v1 }
 0xed4   :  { %v1856_v49 = vsel %vm5402_vm1, -1e+09, %v1855_v50 }
 0xed5   :  { %v1857_v0 = vsel %vm210_vm9, %v1856_v49, -inf }
 0xed6   :  { %1858 = vmax.xlane.f32.xlu1 %v1857_v0 }
 0xf33   :  { %v5436_v53 = vpop.f32.mrf.mxu0 }
 0xf3b   :  { %v1956_v48 = vpop.f32.mrf.mxu0 }
 0xf3c   :  { %v1959_v51 = vmul.f32 0.35355338, %v1956_v48 }
 0xf3e   :  { %v1960_v59 = vsel %vm5402_vm1, -1e+09, %v1959_v51 }
 0xf3f   :  { %v1961_v62 = vsel %vm210_vm9, %v1960_v59, -inf  ;;  %v1614_v12 = vpop.f32.mrf.mxu1 }
 0xf40   :  { %1962 = vmax.xlane.f32.xlu2 %v1961_v62  ;;  %v1617_v55 = vadd.f32 %v1614_v12, %v5396_v20 }
 0xf41   :  { %v1733_v63 = vpop.xlane.xlu0 %1732 }
 0xf42   :  { %v1734_v4 = vsub.f32 %v1730_v22, %v1733_v63  ;;  %v1618_v15 = vadd.f32 %v5208_v36, %v1617_v55  ;;  %v2123_v55 = vld [vmem:[%s6130_s10 + $0x18] sm:$0xff] }
 0xf43   :  { %2146 = vmatpush.msrb.mxu0 %v2123_v55 }
 0xf44   :  { %v1735_v14 = vmul.f32 1.442695, %v1734_v4  ;;  %v5450_v16 = vadd.f32 %v1618_v15, %v5215_v29  ;;  %v2122_v15 = vld [vmem:[%s6130_s10 + $0x10] sm:$0xff] }
 0xf45   :  { %2147 = vmatpush.msrb.mxu0 %v2122_v15 }
 0xf46   :  { %4727 = vpow2.f32 %v1735_v14  ;;  %v2038_v17 = vsel %vm78_vm0, %v5450_v16, 0.0 }
 0xf49   :  { %v1859_v5 = vpop.xlane.xlu1 %1858 }
 0xf4a   :  { %v1860_v6 = vsub.f32 %v1856_v49, %v1859_v5 }
 0xf4c   :  { %v4728_v56 = vpop.eup %4727  ;;  %v1861_v7 = vmul.f32 1.442695, %v1860_v6 }
 0xf4d   :  { %v1737_v10 = vsel %vm210_vm9, %v4728_v56, 0.0 }
 0xf4e   :  { %4729 = vpow2.f32 %v1861_v7  ;;  %1738 = vadd.xlane.f32.xlu0 %v1737_v10 }
 0xf54   :  { %v4730_v11 = vpop.eup %4729 }
 0xf55   :  { %v1863_v9 = vsel %vm210_vm9, %v4730_v11, 0.0 }
 0xf56   :  { %1864 = vadd.xlane.f32.xlu1 %v1863_v9 }
 0xf62   :  { %1755 = vrot.lane.b32.xlu0 %v5337_v45, %s4889_s26 }
 0xf6f   :  { %1881 = vrot.lane.b32.xlu1 %v5337_v45, %s4893_s17 }
 0xf8c   :  { %2039 = vadd.xlane.f32.xlu0 %v2038_v17  ;;  %v2121_v17 = vld [vmem:[%s6130_s10 + $0x8] sm:$0xff] }
 0xf8d   :  { %2148 = vmatpush.msrb.mxu0 %v2121_v17 }
 0xfb3   :  { %v1963_v25 = vpop.xlane.xlu2 %1962 }
 0xfb4   :  { %v1964_v26 = vsub.f32 %v1960_v59, %v1963_v25  ;;  %v2120_v25 = vld [vmem:[%s6130_s10] sm:$0xff] }
 0xfb5   :  { %2149 = vmatpush.msrb.mxu0 %v2120_v25  ;;  %v2162_v25 = vld [vmem:[%s6132_s12 + $0x18] sm:$0xff] }
 0xfb6   :  { %v1965_v27 = vmul.f32 1.442695, %v1964_v26 }
 0xfb8   :  { %4731 = vpow2.f32 %v1965_v27 }
 0xfbe   :  { %v5454_v52 = vpop.eup %4731 }
 0xfbf   :  { %v1967_v28 = vsel %vm210_vm9, %v5454_v52, 0.0 }
 0xfc0   :  { %1968 = vadd.xlane.f32.xlu2 %v1967_v28 }
 0xfc1   :  { %v1739_v20 = vpop.xlane.xlu0 %1738 }
 0xfc2   :  { %4733 = vrcp.f32 %v1739_v20  ;;  %v1751_v3 = vand.u32 2147483648, %v1739_v20  ;;  %v1749_v32 = vand.u32 2147483647, %v1739_v20  ;;  %vm1745_vm15 = vweird.f32 %v1739_v20 }
 0xfc4   :  { %v1752_v40 = vor.u32 1.1754944e-38, %v1751_v3  ;;  %vm1750_vm3 = vcmp.eq.f32.partialorder %v1749_v32, 8.507059e+37 }
 0xfc8   :  { %v4734_v36 = vpop.eup %4733 }
 0xfc9   :  { %v1741_v30 = vmul.f32 %v4734_v36, %v1739_v20  ;;  %v1865_v29 = vpop.xlane.xlu1 %1864  ;;  %vm1746_vm14 = vweird.f32 %v4734_v36 }
 0xfca   :  { %4735 = vrcp.f32 %v1865_v29  ;;  %vm1747_vm2 = vmor %vm1745_vm15, %vm1746_vm14  ;;  %v1877_v43 = vand.u32 2147483648, %v1865_v29  ;;  %vm1871_vm7 = vweird.f32 %v1865_v29  ;;  %v1875_v41 = vand.u32 2147483647, %v1865_v29 }
 0xfcb   :  { %v1742_v13 = vsub.f32 1.0, %v1741_v30 }
 0xfcc   :  { %v1878_v18 = vor.u32 1.1754944e-38, %v1877_v43  ;;  %vm1876_vm11 = vcmp.eq.f32.partialorder %v1875_v41, 8.507059e+37  ;;  %v5498_v43 = vld [vmem:[%s6129_s9] sm:$0x7] }
 0xfcd   :  { %v1743_v31 = vmul.f32 %v4734_v36, %v1742_v13  ;;  %v2117_v41 = vperm.slane %v5498_v43, 2 }
 0xfcf   :  { %v1744_v57 = vadd.f32 %v4734_v36, %v1743_v31 }
 0xfd0   :  { %v4736_v34 = vpop.eup %4735 }
 0xfd1   :  { %v1748_v60 = vsel %vm1747_vm2, %v4734_v36, %v1744_v57  ;;  %v1867_v46 = vmul.f32 %v4736_v34, %v1865_v29  ;;  %vm1872_vm6 = vweird.f32 %v4736_v34 }
 0xfd2   :  { %v1753_v38 = vsel %vm1750_vm3, %v1752_v40, %v1748_v60  ;;  %vm1873_vm8 = vmor %vm1871_vm7, %vm1872_vm6 }
 0xfd3   :  { %v1868_v19 = vsub.f32 1.0, %v1867_v46  ;;  %v1754_v58 = vmul.f32 %v4728_v56, %v1753_v38  ;;  %v5492_v38 = vld [vmem:[%s6128_s8] sm:$0x7] }
 0xfd4   :  { %v1756_v35 = vpop.permute.xlu0 %1755 }
 0xfd5   :  { %v1869_v2 = vmul.f32 %v4736_v34, %v1868_v19  ;;  %1776 = vmatpush.msra.mxu1 %v1756_v35  ;;  %v2082_v19 = vperm.slane %v5492_v38, 2 }
 0xfd6   :  { %4493 = vmatmul.msk.f32.vlgmr.msra.gmra.mxu1 %vm210_vm9, %v1754_v58 }
 0xfd7   :  { %v1870_v42 = vadd.f32 %v4736_v34, %v1869_v2 }
 0xfd8   :  { %1985 = vrot.lane.b32.xlu2 %v5337_v45, %s4894_s21 }
 0xfd9   :  { %v1874_v33 = vsel %vm1873_vm8, %v4736_v34, %v1870_v42 }
 0xfda   :  { %v1879_v44 = vsel %vm1876_vm11, %v1878_v18, %v1874_v33 }
 0xfdb   :  { %v1880_v22 = vmul.f32 %v4730_v11, %v1879_v44 }
 0xfe1   :  { %v1882_v21 = vpop.permute.xlu1 %1881 }
 0xfe2   :  { %1902 = vmatpush.msrb.mxu1 %v1882_v21 }
 0xfe3   :  { %4498 = vmatmul.msk.f32.vlgmr.msrb.gmra.mxu1 %vm210_vm9, %v1880_v22 }
 0xfe4   :  { %2029 = vmatpush.msra.mxu1 %v4847_v47 }
 0xfff   :  { %v2040_v1 = vpop.xlane.xlu0 %2039 }
0x1000   :  { %v2044_v45 = vmul.f32 %v2040_v1, %v4994_v8 }
0x1002   :  { %v5467_v50 = vsub.f32 %v5450_v16, %v2044_v45 }
0x1004   :  { %v2048_v49 = vmul.f32 %v5467_v50, %v5467_v50  ;;  %v2083_v33 = vmul.f32 %v2082_v19, %v5467_v50  ;;  %v4850_v50 = vld [vmem:[%s6127_s7] ss:$0 sm:$0xff] }
0x1006   :  { %v2050_v0 = vsel %vm78_vm0, %v2048_v49, 0.0 }
0x1007   :  { %2051 = vadd.xlane.f32.xlu2 %v2050_v0 }
0x1033   :  { %v1969_v48 = vpop.xlane.xlu2 %1968 }
0x1034   :  { %4737 = vrcp.f32 %v1969_v48  ;;  %v1981_v4 = vand.u32 2147483648, %v1969_v48  ;;  %v1979_v5 = vand.u32 2147483647, %v1969_v48  ;;  %vm1975_vm13 = vweird.f32 %v1969_v48 }
0x1036   :  { %v1982_v56 = vor.u32 1.1754944e-38, %v1981_v4  ;;  %vm1980_vm15 = vcmp.eq.f32.partialorder %v1979_v5, 8.507059e+37 }
0x103a   :  { %v4738_v51 = vpop.eup %4737 }
0x103b   :  { %v1971_v59 = vmul.f32 %v4738_v51, %v1969_v48  ;;  %v1986_v62 = vpop.permute.xlu2 %1985  ;;  %vm1976_vm12 = vweird.f32 %v4738_v51 }
0x103c   :  { %2006 = vmatpush.msra.mxu2 %v1986_v62  ;;  %vm1977_vm14 = vmor %vm1975_vm13, %vm1976_vm12 }
0x103d   :  { %v1972_v63 = vsub.f32 1.0, %v1971_v59 }
0x103f   :  { %v1973_v14 = vmul.f32 %v4738_v51, %v1972_v63 }
0x1041   :  { %v1974_v6 = vadd.f32 %v4738_v51, %v1973_v14 }
0x1043   :  { %v1978_v7 = vsel %vm1977_vm14, %v4738_v51, %v1974_v6 }
0x1044   :  { %v1983_v10 = vsel %vm1980_vm15, %v1982_v56, %v1978_v7  ;;  %v2166_v56 = vld [vmem:[%s6132_s12 + $0x38] sm:$0xff]  ;;  %v2164_v7 = vld [vmem:[%s6132_s12 + $0x28] sm:$0xff] }
0x1045   :  { %v1984_v11 = vmul.f32 %v5454_v52, %v1983_v10  ;;  %2182 = vmatpush.msra.mxu0 %v2166_v56  ;;  %v2163_v10 = vld [vmem:[%s6132_s12 + $0x20] sm:$0xff] }
0x1047   :  { %4502 = vmatmul.msk.f32.vlgmr.msra.gmra.mxu2 %vm210_vm9, %v1984_v11 }
0x1053   :  { %v1778_v9 = vpop.f32.mrf.mxu1 }
0x1054   :  { %4494 = vmatmul.msk.f32.vlgmr.msra.gmra.mxu3 %vm210_vm9, %v1778_v9 }
0x1060   :  { %v1904_v12 = vpop.f32.mrf.mxu1 }
0x1061   :  { %4499 = vmatmul.msk.f32.vlgmr.msrb.gmra.mxu3 %vm210_vm9, %v1904_v12 }
0x107a   :  { %v2052_v26 = vpop.xlane.xlu2 %2051 }
0x107b   :  { %v2056_v27 = vmul.f32 %v2052_v26, %v5023_v24  ;;  %v2161_v26 = vld [vmem:[%s6132_s12 + $0x10] sm:$0xff] }
0x107d   :  { %4739 = vrsqrt.f32 %v2056_v27  ;;  %vm2065_vm2 = vcmp.eq.f32.partialorder %v2056_v27, inf  ;;  %v2068_v3 = vand.u32 2147483648, %v2056_v27  ;;  %vm2067_vm3 = vcmp.eq.f32.partialorder %v2056_v27, 0.0 }
0x1083   :  { %v4740_v52 = vpop.eup %4739 }
0x1084   :  { %v2059_v28 = vmul.f32 %v4740_v52, %v2056_v27 }
0x1086   :  { %v2060_v20 = vmul.f32 %v4740_v52, %v2059_v28 }
0x1088   :  { %v2061_v36 = vmul.f32 0.5, %v2060_v20  ;;  %v2159_v20 = vld [vmem:[%s6132_s12] sm:$0xff] }
0x108a   :  { %v2062_v30 = vsub.f32 1.5, %v2061_v36 }
0x108c   :  { %v2063_v29 = vmul.f32 %v4740_v52, %v2062_v30  ;;  %v2160_v52 = vld [vmem:[%s6132_s12 + $0x8] sm:$0xff] }
0x108e   :  { %v2064_v13 = vmul.f32 %v2063_v29, %v2056_v27 }
0x1090   :  { %v2066_v31 = vsel %vm2065_vm2, %v2056_v27, %v2064_v13 }
0x1091   :  { %v2069_v32 = vsel %vm2067_vm3, %v2068_v3, %v2066_v31 }
0x1092   :  { %v2085_v57 = vadd.f32 1e-06, %v2069_v32 }
0x1094   :  { %4741 = vrcp.f32 %v2085_v57  ;;  %v2098_v46 = vand.u32 2147483648, %v2085_v57  ;;  %v2096_v35 = vand.u32 2147483647, %v2085_v57  ;;  %vm2092_vm7 = vweird.f32 %v2085_v57 }
0x1096   :  { %v2099_v42 = vor.u32 1.1754944e-38, %v2098_v46  ;;  %vm2097_vm11 = vcmp.eq.f32.partialorder %v2096_v35, 8.507059e+37 }
0x109a   :  { %v4742_v34 = vpop.eup %4741 }
0x109b   :  { %v2088_v40 = vmul.f32 %v4742_v34, %v2085_v57  ;;  %vm2093_vm6 = vweird.f32 %v4742_v34 }
0x109c   :  { %vm2094_vm8 = vmor %vm2092_vm7, %vm2093_vm6  ;;  %vm2167_vm6 = vcmask 523264  }
0x109d   :  { %v2089_v60 = vsub.f32 1.0, %v2088_v40 }
0x109f   :  { %v2090_v58 = vmul.f32 %v4742_v34, %v2089_v60 }
0x10a1   :  { %v2091_v2 = vadd.f32 %v4742_v34, %v2090_v58 }
0x10a3   :  { %v2095_v18 = vsel %vm2094_vm8, %v4742_v34, %v2091_v2 }
0x10a4   :  { %v2100_v44 = vsel %vm2097_vm11, %v2099_v42, %v2095_v18  ;;  %v4647_v18 = vld [vmem:[%s6131_s11] ss:$0 sm:$0xff] }
0x10a5   :  { %v2101_v21 = vmul.f32 %v2100_v44, %v2083_v33 }
0x10a7   :  { %v2118_v22 = vadd.f32 %v2117_v41, %v2101_v21 }
0x10a9   :  { %4504 = vmatmul.msk.f32.vlgmr.msrb.gmra.mxu0 %vm78_vm0, %v2118_v22 }
0x10ca   :  { %v2008_v47 = vpop.f32.mrf.mxu2 }
0x10cb   :  { %4503 = vmatmul.msk.f32.vlgmr.msra.gmra.mxu1 %vm210_vm9, %v2008_v47 }
0x10d7   :  { %v1801_v1 = vpop.f32.mrf.mxu3 }
0x10d8   :  { %v1825_v49 = vadd.f32 %v5436_v53, %v1801_v1 }
0x10e4   :  { %v1927_v45 = vpop.f32.mrf.mxu3 }
0x10e5   :  { %v1930_v0 = vadd.f32 %v1927_v45, %v1825_v49  ;;  %v5558_v45 = vld [vmem:[%s6133_s13] ss:$0 sm:$0xff] }
0x1126   :  { %v2151_v21 = vpop.f32.mrf.mxu0 }
0x1127   :  { %v2152_v22 = vadd.f32 %v4647_v18, %v2151_v21 }
0x1129   :  { %v2157_v47 = vmax.f32 %v2152_v22, 0.0 }
0x1148   :  { %v2031_v48 = vpop.f32.mrf.mxu1 }
0x1149   :  { %v2034_v51 = vadd.f32 %v2031_v48, %v1930_v0 }
0x114b   :  { %v2035_v59 = vadd.f32 %v4850_v50, %v2034_v51 }
0x114d   :  { %v5513_v62 = vadd.f32 %v2035_v59, %v5325_v37  ;;  %v2165_v37 = vld [vmem:[%s6132_s12 + $0x30] sm:$0xff] }
0x114e   :  { %2183 = vmatpush.msra.mxu0 %v2165_v37 }
0x114f   :  { %v2041_v63 = vsel %vm78_vm0, %v5513_v62, 0.0 }
0x1150   :  { %2042 = vadd.xlane.f32.xlu1 %v2041_v63  ;;  %2184 = vmatpush.msra.mxu0 %v2164_v7 }
0x1152   :  { %2185 = vmatpush.msra.mxu0 %v2163_v10 }
0x1154   :  { %2186 = vmatpush.msra.mxu0 %v2162_v25 }
0x1156   :  { %2187 = vmatpush.msra.mxu0 %v2161_v26 }
0x1158   :  { %2188 = vmatpush.msra.mxu0 %v2160_v52  ;;  %v5597_v52 = vld [vmem:[%s6128_s8 + $0x4] sm:$0x7] }
0x115a   :  { %2189 = vmatpush.msra.mxu0 %v2159_v20 }
0x11c3   :  { %v2043_v4 = vpop.xlane.xlu1 %2042 }
0x11c4   :  { %v2045_v14 = vmul.f32 %v2043_v4, %v4994_v8  ;;  %v5577_v4 = vld [vmem:[%s6124_s4 + $0x30] sm:$0xff] }
0x11c6   :  { %v2047_v53 = vsub.f32 %v5513_v62, %v2045_v14  ;;  %v5583_v14 = vld [vmem:[%s6124_s4 + $0x28] sm:$0xff] }
0x11c8   :  { %v2049_v5 = vmul.f32 %v2047_v53, %v2047_v53  ;;  %v2084_v35 = vmul.f32 %v2082_v19, %v2047_v53  ;;  %v5589_v53 = vld [vmem:[%s6124_s4 + $0x20] sm:$0xff] }
0x11ca   :  { %v2053_v6 = vsel %vm78_vm0, %v2049_v5, 0.0 }
0x11cb   :  { %2054 = vadd.xlane.f32.xlu0 %v2053_v6 }
0x123e   :  { %v2055_v11 = vpop.xlane.xlu0 %2054 }
0x123f   :  { %v2057_v9 = vmul.f32 %v2055_v11, %v5023_v24 }
0x1241   :  { %4743 = vrsqrt.f32 %v2057_v9  ;;  %vm2077_vm12 = vcmp.eq.f32.partialorder %v2057_v9, inf  ;;  %v2080_v30 = vand.u32 2147483648, %v2057_v9  ;;  %vm2079_vm13 = vcmp.eq.f32.partialorder %v2057_v9, 0.0 }
0x1247   :  { %v4744_v12 = vpop.eup %4743 }
0x1248   :  { %v2071_v55 = vmul.f32 %v4744_v12, %v2057_v9 }
0x124a   :  { %v2072_v15 = vmul.f32 %v4744_v12, %v2071_v55 }
0x124c   :  { %v2073_v17 = vmul.f32 0.5, %v2072_v15 }
0x124e   :  { %v2074_v27 = vsub.f32 1.5, %v2073_v17 }
0x1250   :  { %v2075_v28 = vmul.f32 %v4744_v12, %v2074_v27 }
0x1252   :  { %v2076_v36 = vmul.f32 %v2075_v28, %v2057_v9 }
0x1254   :  { %v2078_v29 = vsel %vm2077_vm12, %v2057_v9, %v2076_v36  ;;  %v2267_v36 = vperm.slane %v5597_v52, 0 }
0x1255   :  { %v2081_v13 = vsel %vm2079_vm13, %v2080_v30, %v2078_v29 }
0x1256   :  { %v2086_v3 = vadd.f32 1e-06, %v2081_v13  ;;  %v5603_v13 = vld [vmem:[%s6129_s9 + $0x4] sm:$0x7] }
0x1258   :  { %4745 = vrcp.f32 %v2086_v3  ;;  %v2113_v34 = vand.u32 2147483648, %v2086_v3  ;;  %v2111_v60 = vand.u32 2147483647, %v2086_v3  ;;  %vm2107_vm15 = vweird.f32 %v2086_v3 }
0x125a   :  { %v2114_v58 = vor.u32 1.1754944e-38, %v2113_v34  ;;  %vm2112_vm3 = vcmp.eq.f32.partialorder %v2111_v60, 8.507059e+37  ;;  %v2302_v34 = vperm.slane %v5603_v13, 0 }
0x125e   :  { %v4746_v31 = vpop.eup %4745 }
0x125f   :  { %v2103_v32 = vmul.f32 %v4746_v31, %v2086_v3  ;;  %vm2108_vm14 = vweird.f32 %v4746_v31 }
0x1260   :  { %vm2109_vm2 = vmor %vm2107_vm15, %vm2108_vm14 }
0x1261   :  { %v2104_v57 = vsub.f32 1.0, %v2103_v32 }
0x1263   :  { %v2105_v40 = vmul.f32 %v4746_v31, %v2104_v57 }
0x1265   :  { %v2106_v46 = vadd.f32 %v4746_v31, %v2105_v40 }
0x1267   :  { %v2110_v2 = vsel %vm2109_vm2, %v4746_v31, %v2106_v46 }
0x1268   :  { %v2115_v42 = vsel %vm2112_vm3, %v2114_v58, %v2110_v2  ;;  %v5614_v58 = vld [vmem:[%s6125_s5 + $0x1] ss:$0 sm:$0xff] }
0x1269   :  { %v2116_v33 = vmul.f32 %v2115_v42, %v2084_v35 }
0x126b   :  { %v2119_v44 = vadd.f32 %v2117_v41, %v2116_v33 }
0x126d   :  { %4505 = vmatmul.msk.f32.gmra.mxu0 %vm78_vm0, %v2119_v44 }
0x1275   :  { %4506 = vmatmul.msk.f32.vlgmr.msra.gmra.mxu0 %vm2167_vm6, %v2157_v47 }
0x12ea   :  { %v2154_v38 = vpop.f32.mrf.mxu0 }
0x12eb   :  { %v2155_v19 = vadd.f32 %v4647_v18, %v2154_v38 }
0x12ed   :  { %v2158_v1 = vmax.f32 %v2155_v19, 0.0 }
0x12ef   :  { %4507 = vmatmul.msk.f32.gmra.mxu0 %vm2167_vm6, %v2158_v1 }
0x12f2   :  { %v2191_v43 = vpop.f32.mrf.mxu0 }
0x12f3   :  { %v2197_v41 = vadd.f32 %v2191_v43, %v5450_v16  ;;  %v5572_v16 = vld [vmem:[%s6124_s4 + $0x38] sm:$0xff] }
0x12f4   :  { %2326 = vmatpush.msrb.mxu2 %v5572_v16 }
0x12f5   :  { %v5562_v49 = vadd.f32 %v5558_v45, %v2197_v41 }
0x12f6   :  { %2327 = vmatpush.msrb.mxu2 %v5577_v4 }
0x12f7   :  { %v2223_v0 = vsel %vm78_vm0, %v5562_v49, 0.0 }
0x12f8   :  { %2224 = vadd.xlane.f32.xlu0 %v2223_v0  ;;  %2328 = vmatpush.msrb.mxu2 %v5583_v14 }
0x12fa   :  { %2329 = vmatpush.msrb.mxu2 %v5589_v53 }
0x136b   :  { %v2225_v48 = vpop.xlane.xlu0 %2224 }
0x136c   :  { %v2229_v51 = vmul.f32 %v2225_v48, %v4994_v8  ;;  %v2194_v42 = vpop.f32.mrf.mxu0 }
0x136d   :  { %v2198_v33 = vadd.f32 %v2194_v42, %v5513_v62 }
0x136e   :  { %v2231_v50 = vsub.f32 %v5562_v49, %v2229_v51 }
0x136f   :  { %v5631_v18 = vadd.f32 %v5558_v45, %v2198_v33 }
0x1370   :  { %v2233_v59 = vmul.f32 %v2231_v50, %v2231_v50  ;;  %v2268_v32 = vmul.f32 %v2267_v36, %v2231_v50 }
0x1371   :  { %v2226_v44 = vsel %vm78_vm0, %v5631_v18, 0.0 }
0x1372   :  { %v2235_v63 = vsel %vm78_vm0, %v2233_v59, 0.0 }
0x1373   :  { %2236 = vadd.xlane.f32.xlu2 %v2235_v63 }
0x13e6   :  { %v2237_v5 = vpop.xlane.xlu2 %2236 }
0x13e7   :  { %v2241_v6 = vmul.f32 %v2237_v5, %v5023_v24 }
0x13e9   :  { %4747 = vrsqrt.f32 %v2241_v6  ;;  %vm2250_vm7 = vcmp.eq.f32.partialorder %v2241_v6, inf  ;;  %v2253_v55 = vand.u32 2147483648, %v2241_v6  ;;  %vm2252_vm8 = vcmp.eq.f32.partialorder %v2241_v6, 0.0 }
0x13ef   :  { %v4748_v56 = vpop.eup %4747 }
0x13f0   :  { %v2244_v37 = vmul.f32 %v4748_v56, %v2241_v6 }
0x13f2   :  { %v2245_v7 = vmul.f32 %v4748_v56, %v2244_v37 }
0x13f4   :  { %v2246_v10 = vmul.f32 0.5, %v2245_v7 }
0x13f6   :  { %v2247_v11 = vsub.f32 1.5, %v2246_v10 }
0x13f8   :  { %v2248_v9 = vmul.f32 %v4748_v56, %v2247_v11 }
0x13fa   :  { %v2249_v12 = vmul.f32 %v2248_v9, %v2241_v6 }
0x13fc   :  { %v2251_v15 = vsel %vm2250_vm7, %v2241_v6, %v2249_v12 }
0x13fd   :  { %v2254_v17 = vsel %vm2252_vm8, %v2253_v55, %v2251_v15 }
0x13fe   :  { %v2270_v25 = vadd.f32 1e-06, %v2254_v17 }
0x1400   :  { %4749 = vrcp.f32 %v2270_v25  ;;  %v2283_v20 = vand.u32 2147483648, %v2270_v25  ;;  %v2281_v29 = vand.u32 2147483647, %v2270_v25  ;;  %vm2277_vm12 = vweird.f32 %v2270_v25 }
0x1402   :  { %v2284_v31 = vor.u32 1.1754944e-38, %v2283_v20  ;;  %vm2282_vm14 = vcmp.eq.f32.partialorder %v2281_v29, 8.507059e+37 }
0x1406   :  { %v4750_v26 = vpop.eup %4749 }
0x1407   :  { %v2273_v27 = vmul.f32 %v4750_v26, %v2270_v25  ;;  %vm2278_vm11 = vweird.f32 %v4750_v26 }
0x1408   :  { %vm2279_vm13 = vmor %vm2277_vm12, %vm2278_vm11 }
0x1409   :  { %v2274_v28 = vsub.f32 1.0, %v2273_v27 }
0x140b   :  { %v2275_v30 = vmul.f32 %v4750_v26, %v2274_v28 }
0x140d   :  { %v2276_v3 = vadd.f32 %v4750_v26, %v2275_v30 }
0x140f   :  { %v2280_v57 = vsel %vm2279_vm13, %v4750_v26, %v2276_v3 }
0x1410   :  { %v2285_v40 = vsel %vm2282_vm14, %v2284_v31, %v2280_v57 }
0x1411   :  { %v2286_v60 = vmul.f32 %v2285_v40, %v2268_v32 }
0x1413   :  { %v2303_v46 = vadd.f32 %v2302_v34, %v2286_v60 }
0x1415   :  { %4520 = vmatmul.msk.f32.vlgmr.msrb.gmra.mxu2 %vm78_vm0, %v2303_v46 }
0x1498   :  { %v2331_v35 = vpop.f32.mrf.mxu2 }
0x1499   :  { %v5617_v2 = vadd.f32 %v5614_v58, %v2331_v35 }
0x149b   :  { %2416 = vrot.lane.b32.xlu2 %v5617_v2, %s4887_s24  ;;  %2418 = vrot.lane.b32.xlu0 %v5617_v2, %s4889_s26 }
0x149c   :  { %2338 = vrot.lane.b32.xlu1 %v5617_v2, %s4888_s25 }
0x14a3   :  { %2542 = vrot.lane.b32.xlu0 %v5617_v2, %s4891_s30 }
0x14a4   :  { %2544 = vrot.lane.b32.xlu1 %v5617_v2, %s4893_s17 }
0x14c4   :  { %2227 = vadd.xlane.f32.xlu2 %v2226_v44 }
0x14f5   :  { %v2417_v47 = vpop.permute.xlu2 %2416 }
0x150d   :  { %v2419_v21 = vpop.permute.xlu0 %2418 }
0x150e   :  { %v2339_v22 = vpop.permute.xlu1 %2338  ;;  %4525 = vmatpush.xpose.msk.msra.mxu3 %vm210_vm9, %v2419_v21 }
0x150f   :  { %4522 = vmatpush.xpose.msk.msrb.mxu1 %vm210_vm9, %v2339_v22 }
0x1511   :  { %4526 = vmatmul.msk.f32.vlgmr.msra.gmra.mxu3 %vm210_vm9, %v2417_v47  ;;  %v5669_v47 = vld [vmem:[%s6126_s6 + $0x20] sm:$0xff] }
0x1512   :  { %4523 = vmatmul.msk.f32.vlgmr.msrb.gmra.mxu1 %vm210_vm9, %v5617_v2  ;;  %2537 = vmatpush.msrb.mxu3 %v5669_v47 }
0x1515   :  { %v2543_v38 = vpop.permute.xlu0 %2542 }
0x1516   :  { %v2545_v62 = vpop.permute.xlu1 %2544 }
0x1517   :  { %4530 = vmatpush.xpose.msk.msrb.mxu0 %vm210_vm9, %v2545_v62 }
0x151a   :  { %4531 = vmatmul.msk.f32.vlgmr.msrb.gmra.mxu0 %vm210_vm9, %v2543_v38 }
0x1537   :  { %v2228_v19 = vpop.xlane.xlu2 %2227 }
0x1538   :  { %v2230_v1 = vmul.f32 %v2228_v19, %v4994_v8 }
0x153a   :  { %v2232_v45 = vsub.f32 %v5631_v18, %v2230_v1 }
0x153c   :  { %v2234_v43 = vmul.f32 %v2232_v45, %v2232_v45  ;;  %v2269_v42 = vmul.f32 %v2267_v36, %v2232_v45 }
0x153e   :  { %v2238_v41 = vsel %vm78_vm0, %v2234_v43, 0.0 }
0x153f   :  { %2239 = vadd.xlane.f32.xlu0 %v2238_v41 }
0x158f   :  { %v2361_v0 = vpop.f32.mrf.mxu1 }
0x1590   :  { %v2364_v48 = vmul.f32 0.35355338, %v2361_v0 }
0x1592   :  { %v2365_v51 = vsel %vm236_vm10, -1e+09, %v2364_v48 }
0x1593   :  { %v2366_v50 = vsel %vm210_vm9, %v2365_v51, -inf }
0x1594   :  { %2367 = vmax.xlane.f32.xlu1 %v2366_v50  ;;  %v2441_v59 = vpop.f32.mrf.mxu3 }
0x1595   :  { %v2444_v63 = vmul.f32 0.35355338, %v2441_v59 }
0x1597   :  { %v2567_v5 = vpop.f32.mrf.mxu0  ;;  %v2445_v6 = vsel %vm236_vm10, -1e+09, %v2444_v63 }
0x1598   :  { %v2570_v56 = vmul.f32 0.35355338, %v2567_v5  ;;  %v2446_v37 = vsel %vm210_vm9, %v2445_v6, -inf }
0x1599   :  { %2447 = vmax.xlane.f32.xlu2 %v2446_v37 }
0x159a   :  { %v2571_v7 = vsel %vm236_vm10, -1e+09, %v2570_v56 }
0x159b   :  { %v2572_v10 = vsel %vm210_vm9, %v2571_v7, -inf }
0x159c   :  { %2573 = vmax.xlane.f32.xlu1 %v2572_v10 }
0x15b1   :  { %2390 = vrot.lane.b32.xlu2 %v5617_v2, %s4892_s0 }
0x15b2   :  { %v2240_v11 = vpop.xlane.xlu0 %2239 }
0x15b3   :  { %v2242_v9 = vmul.f32 %v2240_v11, %v5023_v24 }
0x15b5   :  { %4751 = vrsqrt.f32 %v2242_v9  ;;  %vm2262_vm15 = vcmp.eq.f32.partialorder %v2242_v9, inf  ;;  %v2265_v28 = vand.u32 2147483648, %v2242_v9  ;;  %vm2264_vm2 = vcmp.eq.f32.partialorder %v2242_v9, 0.0 }
0x15b9   :  { %2648 = vrot.lane.b32.xlu2 %v5617_v2, %s4894_s21 }
0x15bb   :  { %v4752_v12 = vpop.eup %4751 }
0x15bc   :  { %v2256_v55 = vmul.f32 %v4752_v12, %v2242_v9 }
0x15be   :  { %v2257_v15 = vmul.f32 %v4752_v12, %v2256_v55 }
0x15c0   :  { %v2258_v17 = vmul.f32 0.5, %v2257_v15 }
0x15c1   :  { %2646 = vrot.lane.b32.xlu2 %v5617_v2, %s4895_s28 }
0x15c2   :  { %v2259_v25 = vsub.f32 1.5, %v2258_v17 }
0x15c4   :  { %v2260_v26 = vmul.f32 %v4752_v12, %v2259_v25 }
0x15c6   :  { %v2261_v27 = vmul.f32 %v2260_v26, %v2242_v9 }
0x15c8   :  { %v2263_v20 = vsel %vm2262_vm15, %v2242_v9, %v2261_v27 }
0x15c9   :  { %v2266_v30 = vsel %vm2264_vm2, %v2265_v28, %v2263_v20 }
0x15ca   :  { %v2271_v29 = vadd.f32 1e-06, %v2266_v30 }
0x15cc   :  { %4753 = vrcp.f32 %v2271_v29  ;;  %v2298_v57 = vand.u32 2147483648, %v2271_v29  ;;  %v2296_v60 = vand.u32 2147483647, %v2271_v29  ;;  %vm2292_vm7 = vweird.f32 %v2271_v29 }
0x15ce   :  { %v2299_v35 = vor.u32 1.1754944e-38, %v2298_v57  ;;  %vm2297_vm11 = vcmp.eq.f32.partialorder %v2296_v60, 8.507059e+37 }
0x15d2   :  { %v4754_v3 = vpop.eup %4753 }
0x15d3   :  { %v2288_v31 = vmul.f32 %v4754_v3, %v2271_v29  ;;  %vm2293_vm3 = vweird.f32 %v4754_v3 }
0x15d4   :  { %vm2294_vm8 = vmor %vm2292_vm7, %vm2293_vm3 }
0x15d5   :  { %v2289_v32 = vsub.f32 1.0, %v2288_v31 }
0x15d7   :  { %v2290_v40 = vmul.f32 %v4754_v3, %v2289_v32 }
0x15d9   :  { %v2291_v46 = vadd.f32 %v4754_v3, %v2290_v40 }
0x15db   :  { %v2295_v33 = vsel %vm2294_vm8, %v4754_v3, %v2291_v46 }
0x15dc   :  { %v2300_v44 = vsel %vm2297_vm11, %v2299_v35, %v2295_v33 }
0x15dd   :  { %v2301_v21 = vmul.f32 %v2300_v44, %v2269_v42 }
0x15df   :  { %v2304_v22 = vadd.f32 %v2302_v34, %v2301_v21 }
0x15e1   :  { %4521 = vmatmul.msk.f32.gmra.mxu2 %vm78_vm0, %v2304_v22 }
0x1607   :  { %v2368_v62 = vpop.xlane.xlu1 %2367 }
0x1608   :  { %v2369_v38 = vsub.f32 %v2365_v51, %v2368_v62 }
0x160a   :  { %v2370_v19 = vmul.f32 1.442695, %v2369_v38 }
0x160c   :  { %4755 = vpow2.f32 %v2370_v19  ;;  %v2448_v36 = vpop.xlane.xlu2 %2447 }
0x160d   :  { %v2449_v1 = vsub.f32 %v2445_v6, %v2448_v36 }
0x160f   :  { %v2450_v45 = vmul.f32 1.442695, %v2449_v1  ;;  %v2574_v43 = vpop.xlane.xlu1 %2573 }
0x1610   :  { %v2575_v41 = vsub.f32 %v2571_v7, %v2574_v43 }
0x1611   :  { %4757 = vpow2.f32 %v2450_v45 }
0x1612   :  { %v4756_v34 = vpop.eup %4755  ;;  %v2576_v0 = vmul.f32 1.442695, %v2575_v41 }
0x1613   :  { %v2372_v48 = vsel %vm210_vm9, %v4756_v34, 0.0 }
0x1614   :  { %4759 = vpow2.f32 %v2576_v0  ;;  %2373 = vadd.xlane.f32.xlu0 %v2372_v48  ;;  %v2391_v50 = vpop.permute.xlu2 %2390  ;;  %v5697_v48 = vld [vmem:[%s6126_s6 + $0x28] sm:$0xff] }
0x1615   :  { %2411 = vmatpush.msra.mxu1 %v2391_v50  ;;  %v5703_v50 = vld [vmem:[%s6126_s6 + $0x30] sm:$0xff] }
0x1617   :  { %v4758_v59 = vpop.eup %4757  ;;  %2514 = vmatpush.msrb.mxu1 %v5697_v48 }
0x1618   :  { %v2452_v63 = vsel %vm210_vm9, %v4758_v59, 0.0 }
0x1619   :  { %2453 = vadd.xlane.f32.xlu1 %v2452_v63 }
0x161a   :  { %v5674_v51 = vpop.eup %4759 }
0x161b   :  { %v2578_v5 = vsel %vm210_vm9, %v5674_v51, 0.0 }
0x161c   :  { %2579 = vadd.xlane.f32.xlu0 %v2578_v5  ;;  %v2649_v6 = vpop.permute.xlu2 %2648 }
0x161d   :  { %4534 = vmatpush.xpose.msk.msra.mxu3 %vm210_vm9, %v2649_v6 }
0x1624   :  { %v2647_v63 = vpop.permute.xlu2 %2646 }
0x1630   :  { %2596 = vrot.lane.b32.xlu0 %v5617_v2, %s4896_s18 }
0x1632   :  { %2470 = vrot.lane.b32.xlu1 %v5617_v2, %s6148_s27 }
0x1664   :  { %v2334_v56 = vpop.f32.mrf.mxu2 }
0x1665   :  { %v5684_v37 = vadd.f32 %v5614_v58, %v2334_v56 }
0x1667   :  { %2755 = vrot.lane.b32.xlu0 %v5684_v37, %s4888_s25 }
0x166f   :  { %2833 = vrot.lane.b32.xlu0 %v5684_v37, %s4887_s24 }
0x1687   :  { %v2374_v7 = vpop.xlane.xlu0 %2373 }
0x1688   :  { %4761 = vrcp.f32 %v2374_v7  ;;  %v2386_v15 = vand.u32 2147483648, %v2374_v7  ;;  %v2384_v26 = vand.u32 2147483647, %v2374_v7  ;;  %vm2380_vm13 = vweird.f32 %v2374_v7 }
0x168a   :  { %v2387_v30 = vor.u32 1.1754944e-38, %v2386_v15  ;;  %vm2385_vm15 = vcmp.eq.f32.partialorder %v2384_v26, 8.507059e+37 }
0x168c   :  { %v2454_v10 = vpop.xlane.xlu1 %2453 }
0x168d   :  { %4763 = vrcp.f32 %v2454_v10  ;;  %v2466_v35 = vand.u32 2147483648, %v2454_v10  ;;  %vm2460_vm3 = vweird.f32 %v2454_v10  ;;  %v2464_v42 = vand.u32 2147483647, %v2454_v10 }
0x168e   :  { %v4762_v11 = vpop.eup %4761 }
0x168f   :  { %v2376_v9 = vmul.f32 %v4762_v11, %v2374_v7  ;;  %v2580_v12 = vpop.xlane.xlu0 %2579  ;;  %vm2381_vm12 = vweird.f32 %v4762_v11  ;;  %v2467_v21 = vor.u32 1.1754944e-38, %v2466_v35  ;;  %vm2465_vm8 = vcmp.eq.f32.partialorder %v2464_v42, 8.507059e+37 }
0x1690   :  { %4765 = vrcp.f32 %v2580_v12  ;;  %vm2382_vm14 = vmor %vm2380_vm13, %vm2381_vm12  ;;  %v2592_v38 = vand.u32 2147483648, %v2580_v12  ;;  %vm2586_vm12 = vweird.f32 %v2580_v12  ;;  %v2590_v19 = vand.u32 2147483647, %v2580_v12 }
0x1691   :  { %v2377_v55 = vsub.f32 1.0, %v2376_v9 }
0x1692   :  { %v2593_v41 = vor.u32 1.1754944e-38, %v2592_v38 }
0x1693   :  { %v4764_v17 = vpop.eup %4763  ;;  %v2378_v25 = vmul.f32 %v4762_v11, %v2377_v55 }
0x1694   :  { %v2456_v27 = vmul.f32 %v4764_v17, %v2454_v10  ;;  %vm2461_vm2 = vweird.f32 %v4764_v17 }
0x1695   :  { %v2379_v28 = vadd.f32 %v4762_v11, %v2378_v25  ;;  %vm2462_vm7 = vmor %vm2460_vm3, %vm2461_vm2 }
0x1696   :  { %v4766_v20 = vpop.eup %4765  ;;  %v2457_v29 = vsub.f32 1.0, %v2456_v27 }
0x1697   :  { %v2383_v3 = vsel %vm2382_vm14, %v4762_v11, %v2379_v28  ;;  %v2582_v31 = vmul.f32 %v4766_v20, %v2580_v12  ;;  %vm2587_vm11 = vweird.f32 %v4766_v20  ;;  %vm2591_vm14 = vcmp.eq.f32.partialorder %v2590_v19, 8.507059e+37 }
0x1698   :  { %v2388_v32 = vsel %vm2385_vm15, %v2387_v30, %v2383_v3  ;;  %v2458_v57 = vmul.f32 %v4764_v17, %v2457_v29  ;;  %vm2588_vm13 = vmor %vm2586_vm12, %vm2587_vm11 }
0x1699   :  { %v2389_v40 = vmul.f32 %v4756_v34, %v2388_v32  ;;  %v2583_v46 = vsub.f32 1.0, %v2582_v31 }
0x169a   :  { %v2459_v60 = vadd.f32 %v4764_v17, %v2458_v57 }
0x169b   :  { %4524 = vmatmul.msk.f32.vlgmr.msra.gmra.mxu1 %vm210_vm9, %v2389_v40  ;;  %v2584_v44 = vmul.f32 %v4766_v20, %v2583_v46 }
0x169c   :  { %v2463_v33 = vsel %vm2462_vm7, %v4764_v17, %v2459_v60  ;;  %2640 = vmatpush.msra.mxu1 %v5703_v50 }
0x169d   :  { %v2468_v22 = vsel %vm2465_vm8, %v2467_v21, %v2463_v33  ;;  %v2585_v62 = vadd.f32 %v4766_v20, %v2584_v44 }
0x169e   :  { %v2469_v1 = vmul.f32 %v4758_v59, %v2468_v22 }
0x169f   :  { %v2589_v45 = vsel %vm2588_vm13, %v4766_v20, %v2585_v62 }
0x16a0   :  { %v2594_v34 = vsel %vm2591_vm14, %v2593_v41, %v2589_v45 }
0x16a1   :  { %v2595_v0 = vmul.f32 %v5674_v51, %v2594_v34 }
0x16a2   :  { %v2597_v43 = vpop.permute.xlu0 %2596 }
0x16a4   :  { %v2471_v36 = vpop.permute.xlu1 %2470 }
0x16a5   :  { %2491 = vmatpush.msra.mxu2 %v2471_v36 }
0x16a6   :  { %4527 = vmatmul.msk.f32.vlgmr.msra.gmra.mxu2 %vm210_vm9, %v2469_v1 }
0x16a7   :  { %2617 = vmatpush.msrb.mxu2 %v2597_v43 }
0x16ae   :  { %4532 = vmatmul.msk.f32.vlgmr.msrb.gmra.mxu2 %vm210_vm9, %v2595_v0 }
0x16d9   :  { %v2756_v5 = vpop.permute.xlu0 %2755 }
0x16e1   :  { %v2834_v35 = vpop.permute.xlu0 %2833 }
0x1718   :  { %v2413_v59 = vpop.f32.mrf.mxu1 }
0x1719   :  { %4529 = vmatmul.msk.f32.vlgmr.msrb.gmra.mxu3 %vm210_vm9, %v2413_v59 }
0x1721   :  { %4535 = vmatmul.msk.f32.vlgmr.msra.gmra.mxu3 %vm210_vm9, %v2647_v63 }
0x1729   :  { %v2493_v51 = vpop.f32.mrf.mxu2 }
0x172a   :  { %4528 = vmatmul.msk.f32.vlgmr.msrb.gmra.mxu1 %vm210_vm9, %v2493_v51 }
0x172b   :  { %4538 = vmatpush.xpose.msk.msrb.mxu1 %vm210_vm9, %v2756_v5 }
0x1731   :  { %v2619_v6 = vpop.f32.mrf.mxu2 }
0x1732   :  { %4533 = vmatmul.msk.f32.vlgmr.msra.gmra.mxu1 %vm210_vm9, %v2619_v6 }
0x1733   :  { %2931 = vmatpush.msra.mxu1 %v5697_v48 }
0x173a   :  { %4539 = vmatmul.msk.f32.vlgmr.msrb.gmra.mxu1 %vm210_vm9, %v5684_v37 }
0x173b   :  { %3057 = vmatpush.msrb.mxu1 %v5703_v50 }
0x179c   :  { %v2539_v56 = vpop.f32.mrf.mxu3 }
0x17a4   :  { %v2671_v7 = vpop.f32.mrf.mxu3 }
0x17a5   :  { %v2674_v10 = vmul.f32 0.35355338, %v2671_v7 }
0x17a7   :  { %v2516_v11 = vpop.f32.mrf.mxu1  ;;  %v2675_v9 = vsel %vm236_vm10, -1e+09, %v2674_v10 }
0x17a8   :  { %v2540_v12 = vadd.f32 %v2539_v56, %v2516_v11  ;;  %v2676_v55 = vsel %vm210_vm9, %v2675_v9, -inf }
0x17a9   :  { %2677 = vmax.xlane.f32.xlu1 %v2676_v55 }
0x17af   :  { %v2642_v15 = vpop.f32.mrf.mxu1 }
0x17b0   :  { %v5718_v17 = vadd.f32 %v2642_v15, %v2540_v12 }
0x17b7   :  { %v2778_v25 = vpop.f32.mrf.mxu1 }
0x17b8   :  { %v2781_v26 = vmul.f32 0.35355338, %v2778_v25  ;;  %v5750_v25 = vld [vmem:[%s6126_s6 + $0x38] sm:$0xff] }
0x17b9   :  { %2744 = vmatpush.msra.mxu2 %v5750_v25 }
0x17ba   :  { %v2782_v27 = vsel %vm654_vm5, -1e+09, %v2781_v26 }
0x17bb   :  { %v2783_v28 = vsel %vm210_vm9, %v2782_v27, -inf }
0x17bc   :  { %2784 = vmax.xlane.f32.xlu2 %v2783_v28 }
0x17c2   :  { %2700 = vrot.lane.b32.xlu1 %v5617_v2, %s6149_s22 }
0x17ca   :  { %2959 = vrot.lane.b32.xlu1 %v5684_v37, %s4891_s30 }
0x17d4   :  { %2835 = vrot.lane.b32.xlu2 %v5684_v37, %s4889_s26 }
0x181c   :  { %v2678_v61 = vpop.xlane.xlu1 %2677 }
0x181d   :  { %v2679_v20 = vsub.f32 %v2675_v9, %v2678_v61 }
0x181f   :  { %v2680_v30 = vmul.f32 1.442695, %v2679_v20 }
0x1821   :  { %4767 = vpow2.f32 %v2680_v30 }
0x1827   :  { %v4768_v29 = vpop.eup %4767 }
0x1828   :  { %v2682_v3 = vsel %vm210_vm9, %v4768_v29, 0.0 }
0x1829   :  { %2683 = vadd.xlane.f32.xlu0 %v2682_v3 }
0x182f   :  { %v2785_v31 = vpop.xlane.xlu2 %2784 }
0x1830   :  { %v2786_v32 = vsub.f32 %v2782_v27, %v2785_v31 }
0x1832   :  { %v2787_v57 = vmul.f32 1.442695, %v2786_v32 }
0x1834   :  { %4769 = vpow2.f32 %v2787_v57  ;;  %v2701_v40 = vpop.permute.xlu1 %2700 }
0x1835   :  { %2721 = vmatpush.msra.mxu0 %v2701_v40 }
0x1837   :  { %v2836_v2 = vpop.permute.xlu2 %2835 }
0x1838   :  { %4541 = vmatpush.xpose.msk.msrb.mxu0 %vm210_vm9, %v2836_v2 }
0x183a   :  { %v4770_v60 = vpop.eup %4769 }
0x183b   :  { %v2789_v46 = vsel %vm210_vm9, %v4770_v60, 0.0 }
0x183c   :  { %2790 = vadd.xlane.f32.xlu2 %v2789_v46  ;;  %v2960_v11 = vpop.permute.xlu1 %2959  ;;  %v5765_v46 = vld [vmem:[%s6127_s7 + $0x1] ss:$0 sm:$0xff] }
0x183d   :  { %2961 = vrot.lane.b32.xlu0 %v5684_v37, %s4893_s17 }
0x1845   :  { %2807 = vrot.lane.b32.xlu0 %v5684_v37, %s4892_s0 }
0x184d   :  { %3065 = vrot.lane.b32.xlu0 %v5684_v37, %s4894_s21 }
0x1855   :  { %3063 = vrot.lane.b32.xlu0 %v5684_v37, %s4895_s28 }
0x189c   :  { %v2684_v42 = vpop.xlane.xlu0 %2683 }
0x189d   :  { %4771 = vrcp.f32 %v2684_v42  ;;  %v2696_v22 = vand.u32 2147483648, %v2684_v42  ;;  %v2694_v38 = vand.u32 2147483647, %v2684_v42  ;;  %vm2690_vm15 = vweird.f32 %v2684_v42 }
0x189f   :  { %v2697_v36 = vor.u32 1.1754944e-38, %v2696_v22  ;;  %vm2695_vm3 = vcmp.eq.f32.partialorder %v2694_v38, 8.507059e+37 }
0x18a3   :  { %v4772_v33 = vpop.eup %4771 }
0x18a4   :  { %v2686_v44 = vmul.f32 %v4772_v33, %v2684_v42  ;;  %vm2691_vm10 = vweird.f32 %v4772_v33 }
0x18a5   :  { %vm2692_vm2 = vmor %vm2690_vm15, %vm2691_vm10 }
0x18a6   :  { %v2687_v21 = vsub.f32 1.0, %v2686_v44 }
0x18a8   :  { %v2688_v62 = vmul.f32 %v4772_v33, %v2687_v21 }
0x18aa   :  { %v2689_v19 = vadd.f32 %v4772_v33, %v2688_v62 }
0x18ac   :  { %v2693_v1 = vsel %vm2692_vm2, %v4772_v33, %v2689_v19 }
0x18ad   :  { %v2698_v45 = vsel %vm2695_vm3, %v2697_v36, %v2693_v1 }
0x18ae   :  { %v2699_v43 = vmul.f32 %v4768_v29, %v2698_v45 }
0x18af   :  { %v2962_v41 = vpop.permute.xlu0 %2961  ;;  %v2791_v34 = vpop.xlane.xlu2 %2790 }
0x18b0   :  { %4536 = vmatmul.msk.f32.vlgmr.msra.gmra.mxu0 %vm210_vm9, %v2699_v43  ;;  %4773 = vrcp.f32 %v2791_v34  ;;  %v2803_v5 = vand.u32 2147483648, %v2791_v34  ;;  %v2801_v56 = vand.u32 2147483647, %v2791_v34  ;;  %vm2797_vm8 = vweird.f32 %v2791_v34 }
0x18b1   :  { %4546 = vmatpush.xpose.msk.msra.mxu0 %vm210_vm9, %v2962_v41 }
0x18b2   :  { %v2804_v10 = vor.u32 1.1754944e-38, %v2803_v5  ;;  %vm2802_vm12 = vcmp.eq.f32.partialorder %v2801_v56, 8.507059e+37 }
0x18b6   :  { %v4774_v0 = vpop.eup %4773 }
0x18b7   :  { %v2793_v59 = vmul.f32 %v4774_v0, %v2791_v34  ;;  %v2808_v63 = vpop.permute.xlu0 %2807  ;;  %vm2798_vm7 = vweird.f32 %v4774_v0 }
0x18b8   :  { %2828 = vmatpush.msrb.mxu3 %v2808_v63  ;;  %4542 = vmatmul.msk.f32.vlgmr.msrb.gmra.mxu0 %vm210_vm9, %v2834_v35  ;;  %vm2799_vm11 = vmor %vm2797_vm8, %vm2798_vm7 }
0x18b9   :  { %v2794_v51 = vsub.f32 1.0, %v2793_v59  ;;  %v4635_v59 = vpack.i.bf16 %v5577_v4, %v5572_v16 }
0x18ba   :  { %2954 = vmatpush.msra.mxu3 %v5669_v47 }
0x18bb   :  { %v2795_v6 = vmul.f32 %v4774_v0, %v2794_v51 }
0x18bd   :  { %v2796_v7 = vadd.f32 %v4774_v0, %v2795_v6 }
0x18bf   :  { %v2800_v9 = vsel %vm2799_vm11, %v4774_v0, %v2796_v7  ;;  %v3066_v15 = vpop.permute.xlu0 %3065  ;;  %v4640_v0 = vpack.i.bf16 %v5589_v53, %v5583_v14 }
0x18c0   :  { %v2805_v12 = vsel %vm2802_vm12, %v2804_v10, %v2800_v9  ;;  %4547 = vmatmul.msk.f32.vlgmr.msra.gmra.mxu0 %vm210_vm9, %v2960_v11 }
0x18c1   :  { %v2806_v55 = vmul.f32 %v4770_v60, %v2805_v12 }
0x18c3   :  { %4540 = vmatmul.msk.f32.vlgmr.msrb.gmra.mxu3 %vm210_vm9, %v2806_v55 }
0x18c4   :  { %4550 = vmatpush.xpose.msk.msrb.mxu3 %vm210_vm9, %v3066_v15 }
0x18c7   :  { %v3064_v57 = vpop.permute.xlu0 %3063 }
0x192d   :  { %v2723_v26 = vpop.f32.mrf.mxu0 }
0x192e   :  { %4537 = vmatmul.msk.f32.vlgmr.msra.gmra.mxu2 %vm210_vm9, %v2723_v26 }
0x1935   :  { %v2858_v27 = vpop.f32.mrf.mxu0 }
0x1936   :  { %v2861_v28 = vmul.f32 0.35355338, %v2858_v27 }
0x1938   :  { %v2862_v61 = vsel %vm654_vm5, -1e+09, %v2861_v28 }
0x1939   :  { %v2863_v20 = vsel %vm210_vm9, %v2862_v61, -inf }
0x193a   :  { %2864 = vmax.xlane.f32.xlu1 %v2863_v20 }
0x193d   :  { %v2984_v30 = vpop.f32.mrf.mxu0 }
0x193e   :  { %v2987_v29 = vmul.f32 0.35355338, %v2984_v30 }
0x1940   :  { %v2988_v3 = vsel %vm654_vm5, -1e+09, %v2987_v29 }
0x1941   :  { %v2989_v31 = vsel %vm210_vm9, %v2988_v3, -inf }
0x1942   :  { %2990 = vmax.xlane.f32.xlu0 %v2989_v31 }
0x1946   :  { %v2830_v32 = vpop.f32.mrf.mxu3 }
0x1947   :  { %4545 = vmatmul.msk.f32.vlgmr.msra.gmra.mxu3 %vm210_vm9, %v2830_v32 }
0x194f   :  { %4551 = vmatmul.msk.f32.vlgmr.msrb.gmra.mxu3 %vm210_vm9, %v3064_v57 }
0x19ad   :  { %v2865_v40 = vpop.xlane.xlu1 %2864 }
0x19ae   :  { %v2866_v2 = vsub.f32 %v2862_v61, %v2865_v40 }
0x19b0   :  { %v2867_v60 = vmul.f32 1.442695, %v2866_v2 }
0x19b1   :  { %v2746_v35 = vpop.f32.mrf.mxu2 }
0x19b2   :  { %4775 = vpow2.f32 %v2867_v60  ;;  %v2749_v42 = vadd.f32 %v2746_v35, %v5718_v17 }
0x19b4   :  { %v2753_v33 = vadd.f32 %v5765_v46, %v2749_v42 }
0x19b5   :  { %v2991_v44 = vpop.xlane.xlu0 %2990 }
0x19b6   :  { %v5770_v21 = vadd.f32 %v2753_v33, %v5562_v49  ;;  %v2992_v22 = vsub.f32 %v2988_v3, %v2991_v44 }
0x19b8   :  { %v4776_v62 = vpop.eup %4775  ;;  %v2993_v38 = vmul.f32 1.442695, %v2992_v22  ;;  %v3170_v19 = vsel %vm78_vm0, %v5770_v21, 0.0 }
0x19b9   :  { %3171 = vadd.xlane.f32.xlu0 %v3170_v19  ;;  %v2869_v36 = vsel %vm210_vm9, %v4776_v62, 0.0 }
0x19ba   :  { %4777 = vpow2.f32 %v2993_v38  ;;  %2870 = vadd.xlane.f32.xlu2 %v2869_v36 }
0x19c0   :  { %v5775_v1 = vpop.eup %4777 }
0x19c1   :  { %v2995_v17 = vsel %vm210_vm9, %v5775_v1, 0.0 }
0x19c2   :  { %2996 = vadd.xlane.f32.xlu1 %v2995_v17 }
0x19ca   :  { %v5779_v45 = vpop.f32.mrf.mxu3 }
0x19d2   :  { %2887 = vrot.lane.b32.xlu2 %v5684_v37, %s6148_s27  ;;  %v3088_v49 = vpop.f32.mrf.mxu3 }
0x19d3   :  { %v3091_v43 = vmul.f32 0.35355338, %v3088_v49 }
0x19d5   :  { %v3092_v41 = vsel %vm654_vm5, -1e+09, %v3091_v43 }
0x19d6   :  { %v3093_v34 = vsel %vm210_vm9, %v3092_v41, -inf }
0x19d7   :  { %3094 = vmax.xlane.f32.xlu0 %v3093_v34 }
0x19db   :  { %3013 = vrot.lane.b32.xlu1 %v5684_v37, %s4896_s18  ;;  %s4900_s18 = smov 128  }
0x19e3   :  { %4636 = vrot.lane.b32.xlu1 %v4635_v59, %s4888_s25 }
0x19eb   :  { %4641 = vrot.lane.b32.xlu0 %v4640_v0, %s4888_s25  ;;  %v4851_v0 = vld [vmem:[%s6121_s1] sm:$0xff] }
0x19f3   :  { %3117 = vrot.lane.b32.xlu0 %v5684_v37, %s6149_s22 }
0x1a2c   :  { %v3172_v39 = vpop.xlane.xlu0 %3171 }
0x1a2d   :  { %v3176_v63 = vmul.f32 %v3172_v39, %v4994_v8  ;;  %v2871_v51 = vpop.xlane.xlu2 %2870 }
0x1a2e   :  { %4779 = vrcp.f32 %v2871_v51  ;;  %v2883_v12 = vand.u32 2147483648, %v2871_v51  ;;  %v2881_v15 = vand.u32 2147483647, %v2871_v51  ;;  %vm2877_vm13 = vweird.f32 %v2871_v51 }
0x1a2f   :  { %v5798_v5 = vsub.f32 %v5770_v21, %v3176_v63  ;;  %v4852_v63 = vld [vmem:[%s6121_s1 + $0x8] sm:$0xff] }
0x1a30   :  { %v2884_v28 = vor.u32 1.1754944e-38, %v2883_v12  ;;  %vm2882_vm10 = vcmp.eq.f32.partialorder %v2881_v15, 8.507059e+37 }
0x1a31   :  { %v3180_v6 = vmul.f32 %v5798_v5, %v5798_v5 }
0x1a33   :  { %v3182_v56 = vsel %vm78_vm0, %v3180_v6, 0.0 }
0x1a34   :  { %v4780_v7 = vpop.eup %4779  ;;  %3183 = vadd.xlane.f32.xlu2 %v3182_v56 }
0x1a35   :  { %v2873_v37 = vmul.f32 %v4780_v7, %v2871_v51  ;;  %v2997_v10 = vpop.xlane.xlu1 %2996  ;;  %v2888_v11 = vpop.permute.xlu2 %2887  ;;  %vm2878_vm5 = vweird.f32 %v4780_v7 }
0x1a36   :  { %4781 = vrcp.f32 %v2997_v10  ;;  %2908 = vmatpush.msrb.mxu2 %v2888_v11  ;;  %vm2879_vm14 = vmor %vm2877_vm13, %vm2878_vm5  ;;  %v3009_v57 = vand.u32 2147483648, %v2997_v10  ;;  %vm3003_vm2 = vweird.f32 %v2997_v10  ;;  %v3007_v40 = vand.u32 2147483647, %v2997_v10 }
0x1a37   :  { %v2874_v9 = vsub.f32 1.0, %v2873_v37 }
0x1a38   :  { %v3010_v60 = vor.u32 1.1754944e-38, %v3009_v57  ;;  %vm3008_vm7 = vcmp.eq.f32.partialorder %v3007_v40, 8.507059e+37 }
0x1a39   :  { %v2875_v55 = vmul.f32 %v4780_v7, %v2874_v9 }
0x1a3b   :  { %v2876_v26 = vadd.f32 %v4780_v7, %v2875_v55 }
0x1a3c   :  { %v4782_v27 = vpop.eup %4781 }
0x1a3d   :  { %v2880_v61 = vsel %vm2879_vm14, %v4780_v7, %v2876_v26  ;;  %v2999_v20 = vmul.f32 %v4782_v27, %v2997_v10  ;;  %vm3004_vm15 = vweird.f32 %v4782_v27 }
0x1a3e   :  { %v2885_v30 = vsel %vm2882_vm10, %v2884_v28, %v2880_v61  ;;  %vm3005_vm3 = vmor %vm3003_vm2, %vm3004_vm15 }
0x1a3f   :  { %v3000_v29 = vsub.f32 1.0, %v2999_v20  ;;  %v2886_v3 = vmul.f32 %v4776_v62, %v2885_v30 }
0x1a41   :  { %v3001_v31 = vmul.f32 %v4782_v27, %v3000_v29  ;;  %4543 = vmatmul.msk.f32.vlgmr.msrb.gmra.mxu2 %vm210_vm9, %v2886_v3 }
0x1a43   :  { %v3002_v32 = vadd.f32 %v4782_v27, %v3001_v31  ;;  %v3214_v31 = vperm.slane %v5597_v52, 1 }
0x1a45   :  { %v3006_v2 = vsel %vm3005_vm3, %v4782_v27, %v3002_v32 }
0x1a46   :  { %v3011_v35 = vsel %vm3008_vm7, %v3010_v60, %v3006_v2 }
0x1a47   :  { %v3012_v62 = vmul.f32 %v5775_v1, %v3011_v35 }
0x1a4a   :  { %v3095_v42 = vpop.xlane.xlu0 %3094 }
0x1a4b   :  { %v3096_v33 = vsub.f32 %v3092_v41, %v3095_v42  ;;  %v3249_v42 = vperm.slane %v5603_v13, 1 }
0x1a4c   :  { %3297 = vrot.lane.b32.xlu2 %v5614_v58, %s4888_s25 }
0x1a4d   :  { %v3097_v44 = vmul.f32 1.442695, %v3096_v33  ;;  %v3014_v22 = vpop.permute.xlu1 %3013 }
0x1a4e   :  { %3034 = vmatpush.msra.mxu2 %v3014_v22 }
0x1a4f   :  { %4783 = vpow2.f32 %v3097_v44  ;;  %4548 = vmatmul.msk.f32.vlgmr.msra.gmra.mxu2 %vm210_vm9, %v3012_v62 }
0x1a50   :  { %3161 = vmatpush.msrb.mxu2 %v5750_v25 }
0x1a55   :  { %v5809_v38 = vpop.eup %4783  ;;  %v4637_v49 = vpop.permute.xlu1 %4636 }
0x1a56   :  { %v3099_v19 = vsel %vm210_vm9, %v5809_v38, 0.0  ;;  %v4638_v43 = vunpack.i.l.bf16 %v4637_v49  ;;  %v4639_v34 = vunpack.i.h.bf16 %v4637_v49 }
0x1a57   :  { %3100 = vadd.xlane.f32.xlu1 %v3099_v19 }
0x1a58   :  { %3312 = vmatpush.msra.mxu3 %v4638_v43 }
0x1a5a   :  { %3313 = vmatpush.msra.mxu3 %v4639_v34 }
0x1a5d   :  { %v4642_v36 = vpop.permute.xlu0 %4641 }
0x1a5e   :  { %v4643_v41 = vunpack.i.l.bf16 %v4642_v36  ;;  %v4644_v1 = vunpack.i.h.bf16 %v4642_v36 }
0x1a60   :  { %3314 = vmatpush.msra.mxu3 %v4643_v41 }
0x1a62   :  { %3315 = vmatpush.msra.mxu3 %v4644_v1 }
0x1a63   :  { %4556 = vmatmul.msk.f32.vlgmr.msra.gmra.mxu3 %vm78_vm0, %v4851_v0 }
0x1a64   :  { %3522 = vmatpush.msrb.mxu3 %v5669_v47 }
0x1a65   :  { %v3118_v17 = vpop.permute.xlu0 %3117 }
0x1a66   :  { %3138 = vmatpush.msrb.mxu0 %v3118_v17 }
0x1a6b   :  { %4557 = vmatmul.msk.f32.gmra.mxu3 %vm78_vm0, %v4852_v63 }
0x1aa7   :  { %v3184_v59 = vpop.xlane.xlu2 %3183 }
0x1aa8   :  { %v3188_v39 = vmul.f32 %v3184_v59, %v5023_v24 }
0x1aaa   :  { %4785 = vrsqrt.f32 %v3188_v39  ;;  %vm3197_vm8 = vcmp.eq.f32.partialorder %v3188_v39, inf  ;;  %v3200_v9 = vand.u32 2147483648, %v3188_v39  ;;  %vm3199_vm11 = vcmp.eq.f32.partialorder %v3188_v39, 0.0 }
0x1aaf   :  { %v3298_v43 = vpop.permute.xlu2 %3297 }
0x1ab0   :  { %v4786_v51 = vpop.eup %4785 }
0x1ab1   :  { %v3191_v6 = vmul.f32 %v4786_v51, %v3188_v39 }
0x1ab3   :  { %v3192_v56 = vmul.f32 %v4786_v51, %v3191_v6 }
0x1ab5   :  { %v3193_v7 = vmul.f32 0.5, %v3192_v56 }
0x1ab7   :  { %v3194_v37 = vsub.f32 1.5, %v3193_v7 }
0x1ab9   :  { %v3195_v10 = vmul.f32 %v4786_v51, %v3194_v37 }
0x1abb   :  { %v3196_v11 = vmul.f32 %v3195_v10, %v3188_v39 }
0x1abd   :  { %v3198_v12 = vsel %vm3197_vm8, %v3188_v39, %v3196_v11 }
0x1abe   :  { %v3201_v47 = vsel %vm3199_vm11, %v3200_v9, %v3198_v12 }
0x1abf   :  { %v3217_v55 = vadd.f32 1e-06, %v3201_v47 }
0x1ac1   :  { %4787 = vrcp.f32 %v3217_v55  ;;  %v3230_v30 = vand.u32 2147483648, %v3217_v55  ;;  %v3228_v29 = vand.u32 2147483647, %v3217_v55  ;;  %vm3224_vm5 = vweird.f32 %v3217_v55 }
0x1ac3   :  { %v3231_v32 = vor.u32 1.1754944e-38, %v3230_v30  ;;  %vm3229_vm14 = vcmp.eq.f32.partialorder %v3228_v29, 8.507059e+37 }
0x1ac4   :  { %v2910_v15 = vpop.f32.mrf.mxu2 }
0x1ac5   :  { %4544 = vmatmul.msk.f32.vlgmr.msra.gmra.mxu1 %vm210_vm9, %v2910_v15 }
0x1ac6   :  { %3270 = vmatpush.msra.mxu1 %v5572_v16 }
0x1ac7   :  { %v4788_v26 = vpop.eup %4787 }
0x1ac8   :  { %3271 = vmatpush.msra.mxu1 %v5577_v4  ;;  %v3220_v27 = vmul.f32 %v4788_v26, %v3217_v55  ;;  %vm3225_vm12 = vweird.f32 %v4788_v26 }
0x1ac9   :  { %vm3226_vm13 = vmor %vm3224_vm5, %vm3225_vm12 }
0x1aca   :  { %v3101_v28 = vpop.xlane.xlu1 %3100  ;;  %3272 = vmatpush.msra.mxu1 %v5583_v14  ;;  %v3221_v61 = vsub.f32 1.0, %v3220_v27 }
0x1acb   :  { %4789 = vrcp.f32 %v3101_v28  ;;  %v3113_v60 = vand.u32 2147483648, %v3101_v28  ;;  %v3111_v44 = vand.u32 2147483647, %v3101_v28  ;;  %vm3107_vm15 = vweird.f32 %v3101_v28 }
0x1acc   :  { %3273 = vmatpush.msra.mxu1 %v5589_v53  ;;  %v3222_v20 = vmul.f32 %v4788_v26, %v3221_v61  ;;  %v3215_v53 = vmul.f32 %v3214_v31, %v5798_v5 }
0x1acd   :  { %v3114_v62 = vor.u32 1.1754944e-38, %v3113_v60  ;;  %vm3112_vm3 = vcmp.eq.f32.partialorder %v3111_v44, 8.507059e+37 }
0x1ace   :  { %v3223_v3 = vadd.f32 %v4788_v26, %v3222_v20 }
0x1ad0   :  { %v3227_v16 = vsel %vm3226_vm13, %v4788_v26, %v3223_v3 }
0x1ad1   :  { %v4790_v4 = vpop.eup %4789  ;;  %v3232_v14 = vsel %vm3229_vm14, %v3231_v32, %v3227_v16 }
0x1ad2   :  { %v3103_v57 = vmul.f32 %v4790_v4, %v3101_v28  ;;  %v3036_v40 = vpop.f32.mrf.mxu2  ;;  %v3233_v35 = vmul.f32 %v3232_v14, %v3215_v53  ;;  %vm3108_vm10 = vweird.f32 %v4790_v4 }
0x1ad3   :  { %4549 = vmatmul.msk.f32.vlgmr.msrb.gmra.mxu1 %vm210_vm9, %v3036_v40  ;;  %vm3109_vm2 = vmor %vm3107_vm15, %vm3108_vm10 }
0x1ad4   :  { %v3104_v2 = vsub.f32 1.0, %v3103_v57  ;;  %3499 = vmatpush.msrb.mxu1 %v5697_v48  ;;  %v3250_v19 = vadd.f32 %v3249_v42, %v3233_v35 }
0x1ad6   :  { %v3105_v33 = vmul.f32 %v4790_v4, %v3104_v2 }
0x1ad8   :  { %v3106_v22 = vadd.f32 %v4790_v4, %v3105_v33 }
0x1ada   :  { %v3110_v5 = vsel %vm3109_vm2, %v4790_v4, %v3106_v22 }
0x1adb   :  { %v3115_v36 = vsel %vm3112_vm3, %v3114_v62, %v3110_v5  ;;  %4554 = vmatmul.msk.f32.vlgmr.msra.gmra.mxu1 %vm78_vm0, %v3250_v19 }
0x1adc   :  { %v3116_v17 = vmul.f32 %v5809_v38, %v3115_v36  ;;  %3625 = vmatpush.msra.mxu1 %v5703_v50 }
0x1ade   :  { %4552 = vmatmul.msk.f32.vlgmr.msrb.gmra.mxu0 %vm210_vm9, %v3116_v17 }
0x1ae6   :  { %v3317_v49 = vpop.f32.mrf.mxu3 }
0x1ae7   :  { %v5841_v41 = vadd.f32 %v3317_v49, %v3298_v43 }
0x1ae9   :  { %3403 = vrot.lane.b32.xlu0 %v5841_v41, %s4887_s24  ;;  %4558 = vmatpush.xpose.msk.msra.mxu0 %vm210_vm9, %v5841_v41 }
0x1aee   :  { %v3320_v60 = vpop.f32.mrf.mxu3 }
0x1aef   :  { %v5884_v35 = vadd.f32 %v3320_v60, %v3298_v43 }
0x1b42   :  { %v2933_v34 = vpop.f32.mrf.mxu1 }
0x1b43   :  { %v2957_v1 = vadd.f32 %v5779_v45, %v2933_v34 }
0x1b50   :  { %v3059_v0 = vpop.f32.mrf.mxu1 }
0x1b51   :  { %v3062_v59 = vadd.f32 %v3059_v0, %v2957_v1 }
0x1b58   :  { %v3275_v38 = vpop.f32.mrf.mxu1 }
0x1b59   :  { %v3276_v39 = vadd.f32 %v5614_v58, %v3275_v38 }
0x1b5b   :  { %3527 = vrot.lane.b32.xlu1 %v3276_v39, %s4891_s30  ;;  %3401 = vrot.lane.b32.xlu0 %v3276_v39, %s4887_s24  ;;  %v3140_v63 = vpop.f32.mrf.mxu0  ;;  %v3404_v51 = vpop.permute.xlu0 %3403 }
0x1b5c   :  { %4559 = vmatmul.msk.f32.vlgmr.msra.gmra.mxu0 %vm210_vm9, %v3276_v39  ;;  %4553 = vmatmul.msk.f32.vlgmr.msrb.gmra.mxu2 %vm210_vm9, %v3140_v63 }
0x1b5d   :  { %4561 = vmatpush.xpose.msk.msrb.mxu0 %vm210_vm9, %v3404_v51 }
0x1b63   :  { %3529 = vrot.lane.b32.xlu0 %v5841_v41, %s4891_s30 }
0x1bcd   :  { %v3402_v45 = vpop.permute.xlu0 %3401  ;;  %v3528_v58 = vpop.permute.xlu1 %3527 }
0x1bce   :  { %4562 = vmatmul.msk.f32.vlgmr.msrb.gmra.mxu0 %vm210_vm9, %v3402_v45 }
0x1bd5   :  { %v3530_v6 = vpop.permute.xlu0 %3529 }
0x1bd6   :  { %4566 = vmatpush.xpose.msk.msra.mxu0 %vm210_vm9, %v3530_v6 }
0x1bd9   :  { %v3346_v56 = vpop.f32.mrf.mxu0  ;;  %4567 = vmatmul.msk.f32.vlgmr.msra.gmra.mxu0 %vm210_vm9, %v3528_v58 }
0x1bda   :  { %v3349_v7 = vmul.f32 0.35355338, %v3346_v56 }
0x1bdc   :  { %v3350_v37 = vsel %vm5313_vm4, -1e+09, %v3349_v7 }
0x1bdd   :  { %v3351_v10 = vsel %vm210_vm9, %v3350_v37, -inf }
0x1bde   :  { %3352 = vmax.xlane.f32.xlu2 %v3351_v10 }
0x1bdf   :  { %v3163_v11 = vpop.f32.mrf.mxu2 }
0x1be0   :  { %v3166_v9 = vadd.f32 %v3163_v11, %v3062_v59 }
0x1be2   :  { %v3167_v12 = vadd.f32 %v5765_v46, %v3166_v9 }
0x1be4   :  { %v5864_v47 = vadd.f32 %v3167_v12, %v5631_v18 }
0x1be6   :  { %v3173_v55 = vsel %vm78_vm0, %v5864_v47, 0.0 }
0x1be7   :  { %3174 = vadd.xlane.f32.xlu0 %v3173_v55 }
0x1c4b   :  { %v3426_v15 = vpop.f32.mrf.mxu0 }
0x1c4c   :  { %v3429_v26 = vmul.f32 0.35355338, %v3426_v15 }
0x1c4e   :  { %v3430_v27 = vsel %vm5313_vm4, -1e+09, %v3429_v26 }
0x1c4f   :  { %v3431_v28 = vsel %vm210_vm9, %v3430_v27, -inf }
0x1c50   :  { %3432 = vmax.xlane.f32.xlu1 %v3431_v28 }
0x1c51   :  { %v3353_v61 = vpop.xlane.xlu2 %3352 }
0x1c52   :  { %v3354_v20 = vsub.f32 %v3350_v37, %v3353_v61 }
0x1c54   :  { %v3355_v30 = vmul.f32 1.442695, %v3354_v20 }
0x1c56   :  { %4791 = vpow2.f32 %v3355_v30  ;;  %v3552_v29 = vpop.f32.mrf.mxu0 }
0x1c57   :  { %v3555_v3 = vmul.f32 0.35355338, %v3552_v29 }
0x1c59   :  { %v3556_v18 = vsel %vm5313_vm4, -1e+09, %v3555_v3 }
0x1c5a   :  { %v3175_v16 = vpop.xlane.xlu0 %3174  ;;  %v3557_v32 = vsel %vm210_vm9, %v3556_v18, -inf }
0x1c5b   :  { %v3177_v4 = vmul.f32 %v3175_v16, %v4994_v8  ;;  %3558 = vmax.xlane.f32.xlu2 %v3557_v32 }
0x1c5c   :  { %v5875_v57 = vpop.eup %4791 }
0x1c5d   :  { %v3179_v40 = vsub.f32 %v5864_v47, %v3177_v4  ;;  %v3357_v14 = vsel %vm210_vm9, %v5875_v57, 0.0 }
0x1c5e   :  { %3358 = vadd.xlane.f32.xlu0 %v3357_v14 }
0x1c5f   :  { %v3181_v53 = vmul.f32 %v3179_v40, %v3179_v40 }
0x1c61   :  { %v3185_v2 = vsel %vm78_vm0, %v3181_v53, 0.0 }
0x1c63   :  { %3186 = vadd.xlane.f32.xlu2 %v3185_v2 }
0x1c69   :  { %3455 = vrot.lane.b32.xlu1 %v5841_v41, %s4889_s26 }
0x1c71   :  { %3631 = vrot.lane.b32.xlu1 %v3276_v39, %s4895_s28 }
0x1c79   :  { %3788 = vrot.lane.b32.xlu1 %v5884_v35, %s4888_s25 }
0x1cc3   :  { %v3433_v33 = vpop.xlane.xlu1 %3432 }
0x1cc4   :  { %v3434_v44 = vsub.f32 %v3430_v27, %v3433_v33  ;;  %v3216_v27 = vmul.f32 %v3214_v31, %v3179_v40 }
0x1cc6   :  { %v3435_v22 = vmul.f32 1.442695, %v3434_v44 }
0x1cc8   :  { %4793 = vpow2.f32 %v3435_v22 }
0x1cce   :  { %v5888_v62 = vpop.eup %4793  ;;  %v3559_v19 = vpop.xlane.xlu2 %3558 }
0x1ccf   :  { %v3560_v5 = vsub.f32 %v3556_v18, %v3559_v19  ;;  %v3437_v36 = vsel %vm210_vm9, %v5888_v62, 0.0 }
0x1cd0   :  { %3438 = vadd.xlane.f32.xlu0 %v3437_v36 }
0x1cd1   :  { %v3561_v17 = vmul.f32 1.442695, %v3560_v5  ;;  %v3359_v29 = vpop.xlane.xlu0 %3358 }
0x1cd2   :  { %v3371_v40 = vand.u32 2147483648, %v3359_v29  ;;  %vm3365_vm10 = vweird.f32 %v3359_v29  ;;  %v3369_v2 = vand.u32 2147483647, %v3359_v29 }
0x1cd3   :  { %4795 = vpow2.f32 %v3561_v17 }
0x1cd4   :  { %v3372_v33 = vor.u32 1.1754944e-38, %v3371_v40  ;;  %vm3370_vm2 = vcmp.eq.f32.partialorder %v3369_v2, 8.507059e+37 }
0x1cd6   :  { %v3187_v49 = vpop.xlane.xlu2 %3186 }
0x1cd7   :  { %v3189_v43 = vmul.f32 %v3187_v49, %v5023_v24 }
0x1cd9   :  { %v5893_v34 = vpop.eup %4795  ;;  %4797 = vrsqrt.f32 %v3189_v43  ;;  %vm3209_vm7 = vcmp.eq.f32.partialorder %v3189_v43, inf  ;;  %v3212_v6 = vand.u32 2147483648, %v3189_v43  ;;  %vm3211_vm8 = vcmp.eq.f32.partialorder %v3189_v43, 0.0 }
0x1cda   :  { %v3563_v1 = vsel %vm210_vm9, %v5893_v34, 0.0 }
0x1cdb   :  { %3564 = vadd.xlane.f32.xlu2 %v3563_v1  ;;  %v3456_v1 = vpop.permute.xlu1 %3455 }
0x1cdf   :  { %v4798_v0 = vpop.eup %4797 }
0x1ce0   :  { %v3203_v59 = vmul.f32 %v4798_v0, %v3189_v43 }
0x1ce2   :  { %v3204_v38 = vmul.f32 %v4798_v0, %v3203_v59 }
0x1ce4   :  { %v3205_v39 = vmul.f32 0.5, %v3204_v38  ;;  %3375 = vrot.lane.b32.xlu0 %v5841_v41, %s4888_s25 }
0x1ce6   :  { %v3206_v63 = vsub.f32 1.5, %v3205_v39 }
0x1ce8   :  { %v3207_v51 = vmul.f32 %v4798_v0, %v3206_v63 }
0x1cea   :  { %v3208_v45 = vmul.f32 %v3207_v51, %v3189_v43 }
0x1cec   :  { %3633 = vrot.lane.b32.xlu0 %v5841_v41, %s4895_s28  ;;  %v3210_v58 = vsel %vm3209_vm7, %v3189_v43, %v3208_v45 }
0x1ced   :  { %v3213_v56 = vsel %vm3211_vm8, %v3212_v6, %v3210_v58 }
0x1cee   :  { %v3218_v7 = vadd.f32 1e-06, %v3213_v56 }
0x1cf0   :  { %4799 = vrcp.f32 %v3218_v7  ;;  %v3245_v9 = vand.u32 2147483648, %v3218_v7  ;;  %v3243_v55 = vand.u32 2147483647, %v3218_v7  ;;  %vm3239_vm12 = vweird.f32 %v3218_v7 }
0x1cf1   :  { %4801 = vrcp.f32 %v3359_v29 }
0x1cf2   :  { %v3246_v26 = vor.u32 1.1754944e-38, %v3245_v9  ;;  %vm3244_vm13 = vcmp.eq.f32.partialorder %v3243_v55, 8.507059e+37  ;;  %v3632_v9 = vpop.permute.xlu1 %3631 }
0x1cf3   :  { %3581 = vrot.lane.b32.xlu2 %v5841_v41, %s4893_s17 }
0x1cf6   :  { %v4800_v37 = vpop.eup %4799 }
0x1cf7   :  { %v3235_v10 = vmul.f32 %v4800_v37, %v3218_v7  ;;  %vm3240_vm11 = vweird.f32 %v4800_v37  ;;  %v4802_v3 = vpop.eup %4801 }
0x1cf8   :  { %vm3241_vm5 = vmor %vm3239_vm12, %vm3240_vm11  ;;  %v3361_v18 = vmul.f32 %v4802_v3, %v3359_v29  ;;  %vm3366_vm14 = vweird.f32 %v4802_v3 }
0x1cf9   :  { %v3236_v11 = vsub.f32 1.0, %v3235_v10  ;;  %vm3367_vm15 = vmor %vm3365_vm10, %vm3366_vm14 }
0x1cfa   :  { %v3362_v32 = vsub.f32 1.0, %v3361_v18 }
0x1cfb   :  { %v3237_v12 = vmul.f32 %v4800_v37, %v3236_v11 }
0x1cfc   :  { %v3363_v4 = vmul.f32 %v4802_v3, %v3362_v32 }
0x1cfd   :  { %v3238_v15 = vadd.f32 %v4800_v37, %v3237_v12  ;;  %v3789_v12 = vpop.permute.xlu1 %3788 }
0x1cfe   :  { %v3364_v31 = vadd.f32 %v4802_v3, %v3363_v4 }
0x1cff   :  { %v3242_v28 = vsel %vm3241_vm5, %v4800_v37, %v3238_v15 }
0x1d00   :  { %v3247_v61 = vsel %vm3244_vm13, %v3246_v26, %v3242_v28  ;;  %v4854_v26 = vld [vmem:[%s6125_s5 + $0x1] ss:$0 sm:$0xff] }
0x1d01   :  { %v3248_v20 = vmul.f32 %v3247_v61, %v3216_v27 }
0x1d03   :  { %v3251_v30 = vadd.f32 %v3249_v42, %v3248_v20  ;;  %v3368_v42 = vsel %vm3367_vm15, %v4802_v3, %v3364_v31 }
0x1d04   :  { %v3373_v44 = vsel %vm3370_vm2, %v3372_v33, %v3368_v42 }
0x1d05   :  { %4555 = vmatmul.msk.f32.gmra.mxu1 %vm78_vm0, %v3251_v30  ;;  %v3374_v43 = vmul.f32 %v5875_v57, %v3373_v44 }
0x1d43   :  { %v3439_v16 = vpop.xlane.xlu0 %3438 }
0x1d44   :  { %4803 = vrcp.f32 %v3439_v16  ;;  %v3451_v5 = vand.u32 2147483648, %v3439_v16  ;;  %vm3445_vm7 = vweird.f32 %v3439_v16  ;;  %v3449_v36 = vand.u32 2147483647, %v3439_v16 }
0x1d46   :  { %v3452_v38 = vor.u32 1.1754944e-38, %v3451_v5  ;;  %vm3450_vm11 = vcmp.eq.f32.partialorder %v3449_v36, 8.507059e+37 }
0x1d4a   :  { %v4804_v14 = vpop.eup %4803 }
0x1d4b   :  { %v3441_v52 = vmul.f32 %v4804_v14, %v3439_v16  ;;  %vm3446_vm3 = vweird.f32 %v4804_v14 }
0x1d4c   :  { %vm3447_vm8 = vmor %vm3445_vm7, %vm3446_vm3 }
0x1d4d   :  { %v3442_v53 = vsub.f32 1.0, %v3441_v52 }
0x1d4e   :  { %v3565_v13 = vpop.xlane.xlu2 %3564 }
0x1d4f   :  { %4805 = vrcp.f32 %v3565_v13  ;;  %v3443_v60 = vmul.f32 %v4804_v14, %v3442_v53  ;;  %v3577_v6 = vand.u32 2147483648, %v3565_v13  ;;  %vm3571_vm5 = vweird.f32 %v3565_v13 }
0x1d50   :  { %v3575_v57 = vand.u32 2147483647, %v3565_v13 }
0x1d51   :  { %v3444_v22 = vadd.f32 %v4804_v14, %v3443_v60  ;;  %v3578_v37 = vor.u32 1.1754944e-38, %v3577_v6 }
0x1d52   :  { %vm3576_vm14 = vcmp.eq.f32.partialorder %v3575_v57, 8.507059e+37 }
0x1d53   :  { %v3448_v0 = vsel %vm3447_vm8, %v4804_v14, %v3444_v22 }
0x1d54   :  { %v3453_v51 = vsel %vm3450_vm11, %v3452_v38, %v3448_v0 }
0x1d55   :  { %v4806_v19 = vpop.eup %4805  ;;  %v3454_v58 = vmul.f32 %v5888_v62, %v3453_v51 }
0x1d56   :  { %v3567_v17 = vmul.f32 %v4806_v19, %v3565_v13  ;;  %v3376_v49 = vpop.permute.xlu0 %3375  ;;  %v3582_v39 = vpop.permute.xlu2 %3581  ;;  %vm3572_vm12 = vweird.f32 %v4806_v19 }
0x1d57   :  { %3396 = vmatpush.msra.mxu2 %v3376_v49  ;;  %vm3573_vm13 = vmor %vm3571_vm5, %vm3572_vm12 }
0x1d58   :  { %v3568_v59 = vsub.f32 1.0, %v3567_v17  ;;  %4560 = vmatmul.msk.f32.vlgmr.msra.gmra.mxu2 %vm210_vm9, %v3374_v43 }
0x1d59   :  { %3476 = vmatpush.msrb.mxu2 %v3456_v1 }
0x1d5a   :  { %v3569_v63 = vmul.f32 %v4806_v19, %v3568_v59 }
0x1d5b   :  { %3602 = vmatpush.msra.mxu2 %v3582_v39 }
0x1d5c   :  { %v3570_v45 = vadd.f32 %v4806_v19, %v3569_v63 }
0x1d5e   :  { %v3634_v56 = vpop.permute.xlu0 %3633  ;;  %v3574_v7 = vsel %vm3573_vm13, %v4806_v19, %v3570_v45 }
0x1d5f   :  { %4570 = vmatpush.xpose.msk.msra.mxu3 %vm210_vm9, %v3634_v56  ;;  %v3579_v10 = vsel %vm3576_vm14, %v3578_v37, %v3574_v7 }
0x1d60   :  { %4563 = vmatmul.msk.f32.vlgmr.msrb.gmra.mxu2 %vm210_vm9, %v3454_v58  ;;  %v3580_v11 = vmul.f32 %v5893_v34, %v3579_v10 }
0x1d61   :  { %3729 = vmatpush.msrb.mxu2 %v5750_v25  ;;  %v4853_v25 = vld [vmem:[%s6126_s6 + $0x20] sm:$0xff] }
0x1d68   :  { %4568 = vmatmul.msk.f32.vlgmr.msra.gmra.mxu2 %vm210_vm9, %v3580_v11 }
0x1d82   :  { %v3278_v15 = vpop.f32.mrf.mxu1 }
0x1d83   :  { %v3279_v27 = vadd.f32 %v4854_v26, %v3278_v15 }
0x1ddb   :  { %v3398_v62 = vpop.f32.mrf.mxu2 }
0x1ddc   :  { %4565 = vmatmul.msk.f32.vlgmr.msrb.gmra.mxu3 %vm210_vm9, %v3398_v62 }
0x1ddd   :  { %3809 = vmatpush.msrb.mxu3 %v3789_v12 }
0x1de3   :  { %v3478_v55 = vpop.f32.mrf.mxu2 }
0x1de4   :  { %4564 = vmatmul.msk.f32.vlgmr.msrb.gmra.mxu1 %vm210_vm9, %v3478_v55  ;;  %4571 = vmatmul.msk.f32.vlgmr.msra.gmra.mxu3 %vm210_vm9, %v3632_v9 }
0x1de5   :  { %4574 = vmatpush.xpose.msk.msrb.mxu1 %vm210_vm9, %v5884_v35  ;;  %3935 = vmatpush.msra.mxu3 %v4853_v25 }
0x1deb   :  { %v3604_v34 = vpop.f32.mrf.mxu2 }
0x1dec   :  { %4569 = vmatmul.msk.f32.vlgmr.msra.gmra.mxu1 %vm210_vm9, %v3604_v34 }
0x1ded   :  { %3912 = vmatpush.msra.mxu1 %v5697_v48 }
0x1df4   :  { %4575 = vmatmul.msk.f32.vlgmr.msrb.gmra.mxu1 %vm210_vm9, %v3279_v27 }
0x1df5   :  { %4038 = vmatpush.msrb.mxu1 %v5703_v50 }
0x1e5f   :  { %v3524_v28 = vpop.f32.mrf.mxu3 }
0x1e61   :  { %v3501_v61 = vpop.f32.mrf.mxu1 }
0x1e62   :  { %v3525_v20 = vadd.f32 %v3524_v28, %v3501_v61 }
0x1e67   :  { %v3656_v30 = vpop.f32.mrf.mxu3 }
0x1e68   :  { %v3659_v29 = vmul.f32 0.35355338, %v3656_v30 }
0x1e69   :  { %v3627_v3 = vpop.f32.mrf.mxu1 }
0x1e6a   :  { %v5931_v18 = vadd.f32 %v3627_v3, %v3525_v20  ;;  %v3660_v48 = vsel %vm5313_vm4, -1e+09, %v3659_v29 }
0x1e6b   :  { %v3661_v16 = vsel %vm210_vm9, %v3660_v48, -inf }
0x1e6c   :  { %3662 = vmax.xlane.f32.xlu1 %v3661_v16 }
0x1e71   :  { %v3759_v32 = vpop.f32.mrf.mxu1 }
0x1e72   :  { %v3762_v4 = vmul.f32 0.35355338, %v3759_v32 }
0x1e74   :  { %v3763_v14 = vsel %vm5402_vm1, -1e+09, %v3762_v4 }
0x1e75   :  { %v3764_v50 = vsel %vm210_vm9, %v3763_v14, -inf }
0x1e76   :  { %3765 = vmax.xlane.f32.xlu0 %v3764_v50 }
0x1e85   :  { %3814 = vrot.lane.b32.xlu1 %v3279_v27, %s4887_s24 }
0x1edf   :  { %v3663_v52 = vpop.xlane.xlu1 %3662 }
0x1ee0   :  { %v3664_v31 = vsub.f32 %v3660_v48, %v3663_v52 }
0x1ee2   :  { %v3665_v40 = vmul.f32 1.442695, %v3664_v31 }
0x1ee4   :  { %4807 = vpow2.f32 %v3665_v40 }
0x1ee9   :  { %v3766_v53 = vpop.xlane.xlu0 %3765 }
0x1eea   :  { %v4808_v23 = vpop.eup %4807  ;;  %v3767_v2 = vsub.f32 %v3763_v14, %v3766_v53 }
0x1eeb   :  { %v3667_v13 = vsel %vm210_vm9, %v4808_v23, 0.0 }
0x1eec   :  { %v3768_v42 = vmul.f32 1.442695, %v3767_v2  ;;  %3668 = vadd.xlane.f32.xlu0 %v3667_v13 }
0x1eee   :  { %4809 = vpow2.f32 %v3768_v42 }
0x1ef4   :  { %v4810_v60 = vpop.eup %4809 }
0x1ef5   :  { %v3770_v33 = vsel %vm210_vm9, %v4810_v60, 0.0 }
0x1ef6   :  { %3771 = vadd.xlane.f32.xlu2 %v3770_v33 }
0x1ef7   :  { %v3815_v9 = vpop.permute.xlu1 %3814 }
0x1f00   :  { %3816 = vrot.lane.b32.xlu0 %v5884_v35, %s4887_s24 }
0x1f08   :  { %4044 = vrot.lane.b32.xlu0 %v3279_v27, %s4895_s28 }
0x1f0e   :  { %3685 = vrot.lane.b32.xlu2 %v5841_v41, %s4894_s21 }
0x1f10   :  { %3940 = vrot.lane.b32.xlu0 %v3279_v27, %s4891_s30 }
0x1f16   :  { %4046 = vrot.lane.b32.xlu2 %v5884_v35, %s4895_s28 }
0x1f1e   :  { %3942 = vrot.lane.b32.xlu2 %v5884_v35, %s4891_s30 }
0x1f5f   :  { %v3669_v44 = vpop.xlane.xlu0 %3668 }
0x1f60   :  { %4811 = vrcp.f32 %v3669_v44  ;;  %v3681_v17 = vand.u32 2147483648, %v3669_v44  ;;  %v3679_v43 = vand.u32 2147483647, %v3669_v44  ;;  %vm3675_vm10 = vweird.f32 %v3669_v44 }
0x1f62   :  { %v3682_v1 = vor.u32 1.1754944e-38, %v3681_v17  ;;  %vm3680_vm2 = vcmp.eq.f32.partialorder %v3679_v43, 8.507059e+37 }
0x1f66   :  { %v4812_v22 = vpop.eup %4811 }
0x1f67   :  { %v3671_v19 = vmul.f32 %v4812_v22, %v3669_v44  ;;  %vm3676_vm4 = vweird.f32 %v4812_v22 }
0x1f68   :  { %vm3677_vm15 = vmor %vm3675_vm10, %vm3676_vm4 }
0x1f69   :  { %v3672_v5 = vsub.f32 1.0, %v3671_v19  ;;  %v3772_v36 = vpop.xlane.xlu2 %3771 }
0x1f6a   :  { %4813 = vrcp.f32 %v3772_v36  ;;  %v3784_v58 = vand.u32 2147483648, %v3772_v36  ;;  %v3782_v56 = vand.u32 2147483647, %v3772_v36  ;;  %vm3778_vm7 = vweird.f32 %v3772_v36 }
0x1f6b   :  { %v3673_v49 = vmul.f32 %v4812_v22, %v3672_v5 }
0x1f6c   :  { %v3785_v37 = vor.u32 1.1754944e-38, %v3784_v58  ;;  %vm3783_vm11 = vcmp.eq.f32.partialorder %v3782_v56, 8.507059e+37 }
0x1f6d   :  { %v3674_v41 = vadd.f32 %v4812_v22, %v3673_v49 }
0x1f6f   :  { %v3678_v0 = vsel %vm3677_vm15, %v4812_v22, %v3674_v41 }
0x1f70   :  { %v4814_v59 = vpop.eup %4813  ;;  %v3683_v38 = vsel %vm3680_vm2, %v3682_v1, %v3678_v0 }
0x1f71   :  { %v3684_v39 = vmul.f32 %v4808_v23, %v3683_v38  ;;  %v3774_v63 = vmul.f32 %v4814_v59, %v3772_v36  ;;  %v3686_v51 = vpop.permute.xlu2 %3685  ;;  %vm3779_vm3 = vweird.f32 %v4814_v59 }
0x1f72   :  { %3706 = vmatpush.msrb.mxu0 %v3686_v51  ;;  %v3817_v45 = vpop.permute.xlu0 %3816  ;;  %vm3780_vm8 = vmor %vm3778_vm7, %vm3779_vm3 }
0x1f73   :  { %v3775_v6 = vsub.f32 1.0, %v3774_v63  ;;  %4572 = vmatmul.msk.f32.vlgmr.msrb.gmra.mxu0 %vm210_vm9, %v3684_v39 }
0x1f74   :  { %4577 = vmatpush.xpose.msk.msra.mxu0 %vm210_vm9, %v3817_v45 }
0x1f75   :  { %v3776_v57 = vmul.f32 %v4814_v59, %v3775_v6 }
0x1f77   :  { %v3777_v7 = vadd.f32 %v4814_v59, %v3776_v57 }
0x1f79   :  { %v3781_v10 = vsel %vm3780_vm8, %v4814_v59, %v3777_v7  ;;  %v4047_v11 = vpop.permute.xlu2 %4046 }
0x1f7a   :  { %v3786_v62 = vsel %vm3783_vm11, %v3785_v37, %v3781_v10  ;;  %v4045_v12 = vpop.permute.xlu0 %4044 }
0x1f7b   :  { %4578 = vmatmul.msk.f32.vlgmr.msra.gmra.mxu0 %vm210_vm9, %v3815_v9  ;;  %v3787_v55 = vmul.f32 %v4810_v60, %v3786_v62 }
0x1f7d   :  { %4576 = vmatmul.msk.f32.vlgmr.msrb.gmra.mxu3 %vm210_vm9, %v3787_v55  ;;  %v4855_v55 = vld [vmem:[%s6126_s6 + $0x38] sm:$0xff] }
0x1f7e   :  { %4586 = vmatpush.xpose.msk.msrb.mxu3 %vm210_vm9, %v4047_v11 }
0x1f81   :  { %v3943_v25 = vpop.permute.xlu2 %3942 }
0x1f82   :  { %4582 = vmatpush.xpose.msk.msrb.mxu0 %vm210_vm9, %v3943_v25  ;;  %v3941_v34 = vpop.permute.xlu0 %3940 }
0x1f85   :  { %4583 = vmatmul.msk.f32.vlgmr.msrb.gmra.mxu0 %vm210_vm9, %v3941_v34 }
0x1ff0   :  { %v3708_v15 = vpop.f32.mrf.mxu0 }
0x1ff1   :  { %4573 = vmatmul.msk.f32.vlgmr.msrb.gmra.mxu2 %vm210_vm9, %v3708_v15 }
0x1ff8   :  { %v3839_v26 = vpop.f32.mrf.mxu0 }
0x1ff9   :  { %v3842_v27 = vmul.f32 0.35355338, %v3839_v26 }
0x1ffb   :  { %v3843_v28 = vsel %vm5402_vm1, -1e+09, %v3842_v27 }
0x1ffc   :  { %v3844_v61 = vsel %vm210_vm9, %v3843_v28, -inf }
0x1ffd   :  { %3845 = vmax.xlane.f32.xlu1 %v3844_v61 }
0x2000   :  { %v3811_v20 = vpop.f32.mrf.mxu3 }
0x2001   :  { %4581 = vmatmul.msk.f32.vlgmr.msra.gmra.mxu3 %vm210_vm9, %v3811_v20 }
0x2002   :  { %v3965_v30 = vpop.f32.mrf.mxu0 }
0x2003   :  { %v3968_v29 = vmul.f32 0.35355338, %v3965_v30 }
0x2005   :  { %v3969_v3 = vsel %vm5402_vm1, -1e+09, %v3968_v29 }
0x2006   :  { %v3970_v48 = vsel %vm210_vm9, %v3969_v3, -inf }
0x2007   :  { %3971 = vmax.xlane.f32.xlu2 %v3970_v48 }
0x2009   :  { %4587 = vmatmul.msk.f32.vlgmr.msrb.gmra.mxu3 %vm210_vm9, %v4045_v12 }
0x2070   :  { %v3846_v16 = vpop.xlane.xlu1 %3845 }
0x2071   :  { %v3847_v32 = vsub.f32 %v3843_v28, %v3846_v16 }
0x2073   :  { %v3848_v4 = vmul.f32 1.442695, %v3847_v32 }
0x2074   :  { %v3731_v44 = vpop.f32.mrf.mxu2 }
0x2075   :  { %4815 = vpow2.f32 %v3848_v4  ;;  %v3734_v22 = vadd.f32 %v3731_v44, %v5931_v18  ;;  %v4590_v44 = vld [vmem:[%s6130_s10 + $0x20] sm:$0xff] }
0x2077   :  { %v3735_v19 = vadd.f32 %v5765_v46, %v3734_v22 }
0x2079   :  { %v5982_v5 = vadd.f32 %v3735_v19, %v5770_v21 }
0x207a   :  { %v3972_v14 = vpop.xlane.xlu2 %3971 }
0x207b   :  { %v4816_v50 = vpop.eup %4815  ;;  %v3973_v52 = vsub.f32 %v3969_v3, %v3972_v14  ;;  %v4151_v54 = vsel %vm78_vm0, %v5982_v5, 0.0 }
0x207c   :  { %v3850_v31 = vsel %vm210_vm9, %v4816_v50, 0.0 }
0x207d   :  { %v3974_v40 = vmul.f32 1.442695, %v3973_v52  ;;  %3851 = vadd.xlane.f32.xlu1 %v3850_v31 }
0x207f   :  { %4817 = vpow2.f32 %v3974_v40 }
0x2084   :  { %v5969_v53 = vpop.f32.mrf.mxu3 }
0x2085   :  { %v4818_v23 = vpop.eup %4817 }
0x2086   :  { %v3976_v2 = vsel %vm210_vm9, %v4818_v23, 0.0 }
0x2087   :  { %3977 = vadd.xlane.f32.xlu2 %v3976_v2 }
0x208c   :  { %v4069_v13 = vpop.f32.mrf.mxu3 }
0x208d   :  { %v4072_v42 = vmul.f32 0.35355338, %v4069_v13 }
0x208f   :  { %v4073_v60 = vsel %vm5402_vm1, -1e+09, %v4072_v42  ;;  %v4593_v42 = vld [vmem:[%s6130_s10 + $0x38] sm:$0xff] }
0x2090   :  { %v4074_v33 = vsel %vm210_vm9, %v4073_v60, -inf }
0x2091   :  { %4075 = vmax.xlane.f32.xlu0 %v4074_v33  ;;  %v4591_v33 = vld [vmem:[%s6130_s10 + $0x28] sm:$0xff] }
0x2096   :  { %3868 = vrot.lane.b32.xlu1 %v5884_v35, %s4889_s26 }
0x209f   :  { %3994 = vrot.lane.b32.xlu2 %v5884_v35, %s4893_s17 }
0x20c8   :  { %4152 = vadd.xlane.f32.xlu2 %v4151_v54 }
0x20f0   :  { %v3852_v36 = vpop.xlane.xlu1 %3851 }
0x20f1   :  { %4819 = vrcp.f32 %v3852_v36  ;;  %v3864_v18 = vand.u32 2147483648, %v3852_v36  ;;  %vm3858_vm12 = vweird.f32 %v3852_v36  ;;  %v3862_v46 = vand.u32 2147483647, %v3852_v36 }
0x20f3   :  { %v3865_v39 = vor.u32 1.1754944e-38, %v3864_v18  ;;  %vm3863_vm13 = vcmp.eq.f32.partialorder %v3862_v46, 8.507059e+37 }
0x20f7   :  { %v4820_v17 = vpop.eup %4819 }
0x20f8   :  { %v3854_v49 = vmul.f32 %v4820_v17, %v3852_v36  ;;  %vm3859_vm1 = vweird.f32 %v4820_v17 }
0x20f9   :  { %vm3860_vm5 = vmor %vm3858_vm12, %vm3859_vm1 }
0x20fa   :  { %v3855_v43 = vsub.f32 1.0, %v3854_v49  ;;  %v3978_v41 = vpop.xlane.xlu2 %3977 }
0x20fb   :  { %4821 = vrcp.f32 %v3978_v41  ;;  %v3990_v57 = vand.u32 2147483648, %v3978_v41  ;;  %vm3984_vm4 = vweird.f32 %v3978_v41  ;;  %v3988_v10 = vand.u32 2147483647, %v3978_v41 }
0x20fc   :  { %v3856_v1 = vmul.f32 %v4820_v17, %v3855_v43 }
0x20fd   :  { %v3991_v12 = vor.u32 1.1754944e-38, %v3990_v57  ;;  %vm3989_vm15 = vcmp.eq.f32.partialorder %v3988_v10, 8.507059e+37 }
0x20fe   :  { %v3857_v0 = vadd.f32 %v4820_v17, %v3856_v1 }
0x2100   :  { %v3861_v21 = vsel %vm3860_vm5, %v4820_v17, %v3857_v0 }
0x2101   :  { %v4822_v59 = vpop.eup %4821  ;;  %v3866_v45 = vsel %vm3863_vm13, %v3865_v39, %v3861_v21 }
0x2102   :  { %v3980_v38 = vmul.f32 %v4822_v59, %v3978_v41  ;;  %vm3985_vm14 = vweird.f32 %v4822_v59  ;;  %v3867_v7 = vmul.f32 %v4816_v50, %v3866_v45  ;;  %v3995_v62 = vpop.permute.xlu2 %3994 }
0x2103   :  { %vm3986_vm10 = vmor %vm3984_vm4, %vm3985_vm14 }
0x2104   :  { %v3981_v63 = vsub.f32 1.0, %v3980_v38  ;;  %v4076_v51 = vpop.xlane.xlu0 %4075 }
0x2105   :  { %v4077_v6 = vsub.f32 %v4073_v60, %v4076_v51  ;;  %v4592_v60 = vld [vmem:[%s6130_s10 + $0x30] sm:$0xff]  ;;  %v6020_v51 = vld [vmem:[%s6128_s8 + $0x4] sm:$0x7]  ;;  %s4418_s8 = sshll.u32 %s6136_s16, 4  ;;  %s4419_s8 = int_to_ptr.hbm [resolvable:$true] %s4418_s8 }
0x2106   :  { %v3982_v58 = vmul.f32 %v4822_v59, %v3981_v63  ;;  %v4195_v45 = vperm.slane %v6020_v51, 2 }
0x2107   :  { %v4078_v56 = vmul.f32 1.442695, %v4077_v6 }
0x2108   :  { %v3983_v37 = vadd.f32 %v4822_v59, %v3982_v58  ;;  %v3869_v11 = vpop.permute.xlu1 %3868 }
0x2109   :  { %4823 = vpow2.f32 %v4078_v56  ;;  %3889 = vmatpush.msra.mxu2 %v3869_v11 }
0x210a   :  { %v3987_v9 = vsel %vm3986_vm10, %v4822_v59, %v3983_v37  ;;  %4579 = vmatmul.msk.f32.vlgmr.msra.gmra.mxu2 %vm210_vm9, %v3867_v7  ;;  %v6026_v7 = vld [vmem:[%s6129_s9 + $0x4] sm:$0x7]  ;;  %s4901_s9 = smov 8  }
0x210b   :  { %4015 = vmatpush.msrb.mxu2 %v3995_v62  ;;  %v3992_v25 = vsel %vm3989_vm15, %v3991_v12, %v3987_v9  ;;  %v4230_v37 = vperm.slane %v6026_v7, 2 }
0x210c   :  { %v3993_v15 = vmul.f32 %v4818_v23, %v3992_v25  ;;  %v4603_v25 = vld [vmem:[%s6132_s12 + $0x70] sm:$0xff] }
0x210d   :  { %4142 = vmatpush.msra.mxu2 %v4855_v55  ;;  %v4604_v55 = vld [vmem:[%s6132_s12 + $0x78] sm:$0xff] }
0x210e   :  { %4297 = vmatpush.msra.mxu3 %v4604_v55 }
0x210f   :  { %v4824_v34 = vpop.eup %4823 }
0x2110   :  { %v4080_v26 = vsel %vm210_vm9, %v4824_v34, 0.0  ;;  %4298 = vmatpush.msra.mxu3 %v4603_v25 }
0x2111   :  { %4081 = vadd.xlane.f32.xlu0 %v4080_v26  ;;  %v4600_v26 = vld [vmem:[%s6132_s12 + $0x58] sm:$0xff] }
0x2112   :  { %4584 = vmatmul.msk.f32.vlgmr.msrb.gmra.mxu2 %vm210_vm9, %v3993_v15  ;;  %v4601_v15 = vld [vmem:[%s6132_s12 + $0x60] sm:$0xff] }
0x2125   :  { %4098 = vrot.lane.b32.xlu0 %v5884_v35, %s4894_s21 }
0x213b   :  { %v4153_v27 = vpop.xlane.xlu2 %4152 }
0x213c   :  { %v4157_v28 = vmul.f32 %v4153_v27, %v4994_v8 }
0x213e   :  { %v5996_v61 = vsub.f32 %v5982_v5, %v4157_v28  ;;  %v4599_v28 = vld [vmem:[%s6132_s12 + $0x50] sm:$0xff] }
0x2140   :  { %v4161_v20 = vmul.f32 %v5996_v61, %v5996_v61  ;;  %v4196_v10 = vmul.f32 %v4195_v45, %v5996_v61  ;;  %v4598_v61 = vld [vmem:[%s6132_s12 + $0x48] sm:$0xff] }
0x2142   :  { %v4163_v30 = vsel %vm78_vm0, %v4161_v20, 0.0  ;;  %v4597_v20 = vld [vmem:[%s6132_s12 + $0x40] sm:$0xff] }
0x2143   :  { %4164 = vadd.xlane.f32.xlu1 %v4163_v30 }
0x2184   :  { %v4082_v29 = vpop.xlane.xlu0 %4081 }
0x2185   :  { %4825 = vrcp.f32 %v4082_v29  ;;  %v4094_v35 = vand.u32 2147483648, %v4082_v29  ;;  %v4092_v14 = vand.u32 2147483647, %v4082_v29  ;;  %vm4088_vm3 = vweird.f32 %v4082_v29 }
0x2187   :  { %v4095_v52 = vor.u32 1.1754944e-38, %v4094_v35  ;;  %vm4093_vm8 = vcmp.eq.f32.partialorder %v4092_v14, 8.507059e+37 }
0x218b   :  { %v4826_v3 = vpop.eup %4825 }
0x218c   :  { %v4084_v48 = vmul.f32 %v4826_v3, %v4082_v29  ;;  %vm4089_vm2 = vweird.f32 %v4826_v3 }
0x218d   :  { %v3891_v16 = vpop.f32.mrf.mxu2  ;;  %vm4090_vm7 = vmor %vm4088_vm3, %vm4089_vm2 }
0x218e   :  { %v4085_v32 = vsub.f32 1.0, %v4084_v48  ;;  %4580 = vmatmul.msk.f32.vlgmr.msra.gmra.mxu1 %vm210_vm9, %v3891_v16 }
0x218f   :  { %4261 = vmatpush.msra.mxu1 %v4593_v42 }
0x2190   :  { %v4086_v4 = vmul.f32 %v4826_v3, %v4085_v32 }
0x2191   :  { %4262 = vmatpush.msra.mxu1 %v4592_v60 }
0x2192   :  { %v4087_v50 = vadd.f32 %v4826_v3, %v4086_v4 }
0x2193   :  { %4263 = vmatpush.msra.mxu1 %v4591_v33 }
0x2194   :  { %v4091_v31 = vsel %vm4090_vm7, %v4826_v3, %v4087_v50  ;;  %v6063_v3 = vld [vmem:[%s6131_s11 + $0x1] ss:$0 sm:$0xff] }
0x2195   :  { %v4096_v40 = vsel %vm4093_vm8, %v4095_v52, %v4091_v31  ;;  %v4017_v23 = vpop.f32.mrf.mxu2  ;;  %4264 = vmatpush.msra.mxu1 %v4590_v44  ;;  %v4858_v52 = vld [vmem:[%s6127_s7 + $0x1] ss:$0 sm:$0xff] }
0x2196   :  { %v4097_v2 = vmul.f32 %v4824_v34, %v4096_v40  ;;  %4585 = vmatmul.msk.f32.vlgmr.msrb.gmra.mxu1 %vm210_vm9, %v4017_v23  ;;  %v4602_v34 = vld [vmem:[%s6132_s12 + $0x68] sm:$0xff] }
0x2197   :  { %v4099_v13 = vpop.permute.xlu0 %4098  ;;  %4299 = vmatpush.msra.mxu3 %v4602_v34 }
0x2198   :  { %4119 = vmatpush.msra.mxu0 %v4099_v13 }
0x2199   :  { %4588 = vmatmul.msk.f32.vlgmr.msra.gmra.mxu0 %vm210_vm9, %v4097_v2  ;;  %4300 = vmatpush.msra.mxu3 %v4601_v15  ;;  %v6079_v2 = vld [vmem:[%s6133_s13 + $0x1] ss:$0 sm:$0xff] }
0x219b   :  { %4301 = vmatpush.msra.mxu3 %v4600_v26 }
0x219d   :  { %4302 = vmatpush.msra.mxu3 %v4599_v28 }
0x219f   :  { %4303 = vmatpush.msra.mxu3 %v4598_v61 }
0x21a1   :  { %4304 = vmatpush.msra.mxu3 %v4597_v20 }
0x21b6   :  { %v4165_v22 = vpop.xlane.xlu1 %4164 }
0x21b7   :  { %v4169_v19 = vmul.f32 %v4165_v22, %v5023_v24 }
0x21b9   :  { %4827 = vrsqrt.f32 %v4169_v19  ;;  %vm4178_vm11 = vcmp.eq.f32.partialorder %v4169_v19, inf  ;;  %v4181_v0 = vand.u32 2147483648, %v4169_v19  ;;  %vm4180_vm1 = vcmp.eq.f32.partialorder %v4169_v19, 0.0 }
0x21bf   :  { %v4828_v54 = vpop.eup %4827 }
0x21c0   :  { %v4172_v36 = vmul.f32 %v4828_v54, %v4169_v19 }
0x21c2   :  { %v4173_v17 = vmul.f32 %v4828_v54, %v4172_v36 }
0x21c4   :  { %v4174_v49 = vmul.f32 0.5, %v4173_v17 }
0x21c6   :  { %v4175_v43 = vsub.f32 1.5, %v4174_v49 }
0x21c8   :  { %v4176_v41 = vmul.f32 %v4828_v54, %v4175_v43 }
0x21ca   :  { %v4177_v1 = vmul.f32 %v4176_v41, %v4169_v19 }
0x21cc   :  { %v4179_v18 = vsel %vm4178_vm11, %v4169_v19, %v4177_v1 }
0x21cd   :  { %v4182_v46 = vsel %vm4180_vm1, %v4181_v0, %v4179_v18 }
0x21ce   :  { %v4198_v59 = vadd.f32 1e-06, %v4182_v46 }
0x21d0   :  { %4829 = vrcp.f32 %v4198_v59  ;;  %v4211_v63 = vand.u32 2147483648, %v4198_v59  ;;  %v4209_v58 = vand.u32 2147483647, %v4198_v59  ;;  %vm4205_vm5 = vweird.f32 %v4198_v59 }
0x21d2   :  { %v4212_v56 = vor.u32 1.1754944e-38, %v4211_v63  ;;  %vm4210_vm14 = vcmp.eq.f32.partialorder %v4209_v58, 8.507059e+37 }
0x21d6   :  { %v4830_v21 = vpop.eup %4829 }
0x21d7   :  { %v4201_v38 = vmul.f32 %v4830_v21, %v4198_v59  ;;  %vm4206_vm12 = vweird.f32 %v4830_v21 }
0x21d8   :  { %vm4207_vm13 = vmor %vm4205_vm5, %vm4206_vm12 }
0x21d9   :  { %v4202_v39 = vsub.f32 1.0, %v4201_v38 }
0x21db   :  { %v4203_v6 = vmul.f32 %v4830_v21, %v4202_v39 }
0x21dd   :  { %v4204_v57 = vadd.f32 %v4830_v21, %v4203_v6 }
0x21df   :  { %v4208_v11 = vsel %vm4207_vm13, %v4830_v21, %v4204_v57 }
0x21e0   :  { %v4213_v9 = vsel %vm4210_vm14, %v4212_v56, %v4208_v11 }
0x21e1   :  { %v4214_v62 = vmul.f32 %v4213_v9, %v4196_v10 }
0x21e3   :  { %v4231_v12 = vadd.f32 %v4230_v37, %v4214_v62 }
0x21e5   :  { %4595 = vmatmul.msk.f32.vlgmr.msra.gmra.mxu1 %vm78_vm0, %v4231_v12 }
0x220b   :  { %v3914_v30 = vpop.f32.mrf.mxu1 }
0x220c   :  { %v3938_v35 = vadd.f32 %v5969_v53, %v3914_v30 }
0x2213   :  { %v4040_v29 = vpop.f32.mrf.mxu1 }
0x2214   :  { %v4043_v4 = vadd.f32 %v4040_v29, %v3938_v35 }
0x2216   :  { %v4121_v27 = vpop.f32.mrf.mxu0 }
0x2217   :  { %4589 = vmatmul.msk.f32.vlgmr.msra.gmra.mxu2 %vm210_vm9, %v4121_v27 }
0x2262   :  { %v4266_v48 = vpop.f32.mrf.mxu1 }
0x2263   :  { %v4267_v16 = vadd.f32 %v6063_v3, %v4266_v48 }
0x2265   :  { %v4272_v32 = vmax.f32 %v4267_v16, 0.0 }
0x2267   :  { %4605 = vmatmul.msk.f32.vlgmr.msra.gmra.mxu3 %vm2167_vm6, %v4272_v32 }
0x229a   :  { %v4144_v14 = vpop.f32.mrf.mxu2 }
0x229b   :  { %v4147_v50 = vadd.f32 %v4144_v14, %v4043_v4 }
0x229d   :  { %v4148_v31 = vadd.f32 %v4858_v52, %v4147_v50 }
0x229f   :  { %v6072_v40 = vadd.f32 %v4148_v31, %v5864_v47  ;;  %v4653_v31 = vld [vmem:[%s6134_s14] ss:$0 sm:$0xff]  ;;  %s4899_s14 = smov [#allocation2]  }
0x22a1   :  { %v4154_v23 = vsel %vm78_vm0, %v6072_v40, 0.0 }
0x22a2   :  { %4155 = vadd.xlane.f32.xlu0 %v4154_v23 }
0x22ea   :  { %v4306_v53 = vpop.f32.mrf.mxu3 }
0x22eb   :  { %v4312_v13 = vadd.f32 %v4306_v53, %v5982_v5 }
0x22ed   :  { %v4319_v42 = vadd.f32 %v6079_v2, %v4312_v13 }
0x22ef   :  { %v4323_v60 = vsel %vm78_vm0, %v4319_v42, 0.0 }
0x22f0   :  { %4324 = vadd.xlane.f32.xlu0 %v4323_v60 }
0x2315   :  { %v4156_v33 = vpop.xlane.xlu0 %4155 }
0x2316   :  { %v4158_v47 = vmul.f32 %v4156_v33, %v4994_v8 }
0x2318   :  { %v4160_v44 = vsub.f32 %v6072_v40, %v4158_v47  ;;  %v4654_v47 = vld [vmem:[%s6135_s15] ss:$0 sm:$0xff]  ;;  %s4416_s15 = sshll.u32 %s4899_s14, 4  ;;  %s4417_s15 = int_to_ptr.vmem [resolvable:$true] %s4416_s15 }
0x231a   :  { %v4162_v22 = vmul.f32 %v4160_v44, %v4160_v44  ;;  %v4197_v25 = vmul.f32 %v4195_v45, %v4160_v44 }
0x231c   :  { %v4166_v19 = vsel %vm78_vm0, %v4162_v22, 0.0 }
0x231d   :  { %4167 = vadd.xlane.f32.xlu2 %v4166_v19 }
0x2363   :  { %v4325_v54 = vpop.xlane.xlu0 %4324 }
0x2364   :  { %v4329_v36 = vmul.f32 %v4325_v54, %v4994_v8 }
0x2366   :  { %v6088_v17 = vsub.f32 %v4319_v42, %v4329_v36 }
0x2368   :  { %v4333_v5 = vmul.f32 %v6088_v17, %v6088_v17  ;;  %v4370_v60 = vmul.f32 %v4653_v31, %v6088_v17 }
0x236a   :  { %v4335_v49 = vsel %vm78_vm0, %v4333_v5, 0.0 }
0x236b   :  { %4336 = vadd.xlane.f32.xlu2 %v4335_v49 }
0x2390   :  { %v4168_v43 = vpop.xlane.xlu2 %4167 }
0x2391   :  { %v4170_v41 = vmul.f32 %v4168_v43, %v5023_v24 }
0x2393   :  { %4831 = vrsqrt.f32 %v4170_v41  ;;  %vm4190_vm9 = vcmp.eq.f32.partialorder %v4170_v41, inf  ;;  %v4193_v39 = vand.u32 2147483648, %v4170_v41  ;;  %vm4192_vm4 = vcmp.eq.f32.partialorder %v4170_v41, 0.0 }
0x2399   :  { %v4832_v1 = vpop.eup %4831 }
0x239a   :  { %v4184_v0 = vmul.f32 %v4832_v1, %v4170_v41 }
0x239c   :  { %v4185_v18 = vmul.f32 %v4832_v1, %v4184_v0 }
0x239e   :  { %v4186_v46 = vmul.f32 0.5, %v4185_v18 }
0x23a0   :  { %v4187_v59 = vsub.f32 1.5, %v4186_v46 }
0x23a2   :  { %v4188_v21 = vmul.f32 %v4832_v1, %v4187_v59 }
0x23a4   :  { %v4189_v38 = vmul.f32 %v4188_v21, %v4170_v41 }
0x23a6   :  { %v4191_v63 = vsel %vm4190_vm9, %v4170_v41, %v4189_v38 }
0x23a7   :  { %v4194_v6 = vsel %vm4192_vm4, %v4193_v39, %v4191_v63 }
0x23a8   :  { %v4199_v58 = vadd.f32 1e-06, %v4194_v6 }
0x23aa   :  { %4833 = vrcp.f32 %v4199_v58  ;;  %v4226_v11 = vand.u32 2147483648, %v4199_v58  ;;  %v4224_v62 = vand.u32 2147483647, %v4199_v58  ;;  %vm4220_vm15 = vweird.f32 %v4199_v58 }
0x23ac   :  { %v4227_v55 = vor.u32 1.1754944e-38, %v4226_v11  ;;  %vm4225_vm3 = vcmp.eq.f32.partialorder %v4224_v62, 8.507059e+37 }
0x23b0   :  { %v4834_v57 = vpop.eup %4833 }
0x23b1   :  { %v4216_v56 = vmul.f32 %v4834_v57, %v4199_v58  ;;  %vm4221_vm10 = vweird.f32 %v4834_v57 }
0x23b2   :  { %vm4222_vm2 = vmor %vm4220_vm15, %vm4221_vm10 }
0x23b3   :  { %v4217_v10 = vsub.f32 1.0, %v4216_v56 }
0x23b5   :  { %v4218_v9 = vmul.f32 %v4834_v57, %v4217_v10 }
0x23b7   :  { %v4219_v12 = vadd.f32 %v4834_v57, %v4218_v9 }
0x23b9   :  { %v4223_v34 = vsel %vm4222_vm2, %v4834_v57, %v4219_v12 }
0x23ba   :  { %v4228_v15 = vsel %vm4225_vm3, %v4227_v55, %v4223_v34 }
0x23bb   :  { %v4229_v26 = vmul.f32 %v4228_v15, %v4197_v25 }
0x23bd   :  { %v4232_v27 = vadd.f32 %v4230_v37, %v4229_v26 }
0x23bf   :  { %4596 = vmatmul.msk.f32.gmra.mxu1 %vm78_vm0, %v4232_v27 }
0x23de   :  { %v4337_v28 = vpop.xlane.xlu2 %4336 }
0x23df   :  { %v4341_v61 = vmul.f32 %v4337_v28, %v5023_v24 }
0x23e1   :  { %4835 = vrsqrt.f32 %v4341_v61  ;;  %vm4350_vm7 = vcmp.eq.f32.partialorder %v4341_v61, inf  ;;  %v4353_v32 = vand.u32 2147483648, %v4341_v61  ;;  %vm4352_vm8 = vcmp.eq.f32.partialorder %v4341_v61, 0.0 }
0x23e7   :  { %v4836_v20 = vpop.eup %4835 }
0x23e8   :  { %v4344_v30 = vmul.f32 %v4836_v20, %v4341_v61 }
0x23ea   :  { %v4345_v29 = vmul.f32 %v4836_v20, %v4344_v30 }
0x23ec   :  { %v4346_v48 = vmul.f32 0.5, %v4345_v29 }
0x23ee   :  { %v4347_v16 = vsub.f32 1.5, %v4346_v48 }
0x23f0   :  { %v4348_v51 = vmul.f32 %v4836_v20, %v4347_v16 }
0x23f2   :  { %v4349_v45 = vmul.f32 %v4348_v51, %v4341_v61 }
0x23f4   :  { %v4351_v35 = vsel %vm4350_vm7, %v4341_v61, %v4349_v45 }
0x23f5   :  { %v4354_v4 = vsel %vm4352_vm8, %v4353_v32, %v4351_v35 }
0x23f6   :  { %v4372_v7 = vadd.f32 1e-06, %v4354_v4 }
0x23f8   :  { %4837 = vrcp.f32 %v4372_v7  ;;  %v4385_v52 = vand.u32 2147483648, %v4372_v7  ;;  %v4383_v53 = vand.u32 2147483647, %v4372_v7  ;;  %vm4379_vm1 = vweird.f32 %v4372_v7 }
0x23fa   :  { %v4386_v42 = vor.u32 1.1754944e-38, %v4385_v52  ;;  %vm4384_vm5 = vcmp.eq.f32.partialorder %v4383_v53, 8.507059e+37 }
0x23fe   :  { %v4838_v37 = vpop.eup %4837 }
0x23ff   :  { %v4375_v14 = vmul.f32 %v4838_v37, %v4372_v7  ;;  %vm4380_vm11 = vweird.f32 %v4838_v37 }
0x2400   :  { %vm4381_vm12 = vmor %vm4379_vm1, %vm4380_vm11 }
0x2401   :  { %v4376_v50 = vsub.f32 1.0, %v4375_v14 }
0x2403   :  { %v4377_v23 = vmul.f32 %v4838_v37, %v4376_v50 }
0x2405   :  { %v4378_v13 = vadd.f32 %v4838_v37, %v4377_v23 }
0x2407   :  { %v4382_v33 = vsel %vm4381_vm12, %v4838_v37, %v4378_v13 }
0x2408   :  { %v4387_v44 = vsel %vm4384_vm5, %v4386_v42, %v4382_v33 }
0x2409   :  { %v4388_v22 = vmul.f32 %v4387_v44, %v4370_v60 }
0x240b   :  { %v4407_v19 = vadd.f32 %v4654_v47, %v4388_v22 }
0x240d   :  { %4409 = vst.msk [vmem:[#allocation2] sm:$0xff] %vm78_vm0, %v4407_v19 }
0x243c   :  { %v4269_v54 = vpop.f32.mrf.mxu1 }
0x243d   :  { %v4270_v36 = vadd.f32 %v6063_v3, %v4269_v54 }
0x243f   :  { %v4273_v5 = vmax.f32 %v4270_v36, 0.0 }
0x2441   :  { %4606 = vmatmul.msk.f32.gmra.mxu3 %vm2167_vm6, %v4273_v5 }
0x24c4   :  { %v4309_v49 = vpop.f32.mrf.mxu3 }
0x24c5   :  { %v4313_v17 = vadd.f32 %v4309_v49, %v6072_v40 }
0x24c7   :  { %v4320_v43 = vadd.f32 %v6079_v2, %v4313_v17 }
0x24c9   :  { %v4326_v41 = vsel %vm78_vm0, %v4320_v43, 0.0 }
0x24ca   :  { %4327 = vadd.xlane.f32.xlu1 %v4326_v41 }
0x253d   :  { %v4328_v1 = vpop.xlane.xlu1 %4327 }
0x253e   :  { %v4330_v0 = vmul.f32 %v4328_v1, %v4994_v8 }
0x2540   :  { %v4332_v18 = vsub.f32 %v4320_v43, %v4330_v0 }
0x2542   :  { %v4334_v46 = vmul.f32 %v4332_v18, %v4332_v18  ;;  %v4371_v15 = vmul.f32 %v4653_v31, %v4332_v18 }
0x2544   :  { %v4338_v59 = vsel %vm78_vm0, %v4334_v46, 0.0 }
0x2545   :  { %4339 = vadd.xlane.f32.xlu0 %v4338_v59 }
0x25b8   :  { %v4340_v3 = vpop.xlane.xlu0 %4339 }
0x25b9   :  { %v4342_v21 = vmul.f32 %v4340_v3, %v5023_v24 }
0x25bb   :  { %4839 = vrsqrt.f32 %v4342_v21  ;;  %vm4362_vm6 = vcmp.eq.f32.partialorder %v4342_v21, inf  ;;  %v4365_v57 = vand.u32 2147483648, %v4342_v21  ;;  %vm4364_vm13 = vcmp.eq.f32.partialorder %v4342_v21, 0.0 }
0x25c1   :  { %v4840_v38 = vpop.eup %4839 }
0x25c2   :  { %v4356_v39 = vmul.f32 %v4840_v38, %v4342_v21 }
0x25c4   :  { %v4357_v40 = vmul.f32 %v4840_v38, %v4356_v39 }
0x25c6   :  { %v4358_v63 = vmul.f32 0.5, %v4357_v40 }
0x25c8   :  { %v4359_v2 = vsub.f32 1.5, %v4358_v63 }
0x25ca   :  { %v4360_v6 = vmul.f32 %v4840_v38, %v4359_v2 }
0x25cc   :  { %v4361_v58 = vmul.f32 %v4360_v6, %v4342_v21 }
0x25ce   :  { %v4363_v56 = vsel %vm4362_vm6, %v4342_v21, %v4361_v58 }
0x25cf   :  { %v4366_v8 = vsel %vm4364_vm13, %v4365_v57, %v4363_v56 }
0x25d0   :  { %v4373_v10 = vadd.f32 1e-06, %v4366_v8 }
0x25d2   :  { %4841 = vrcp.f32 %v4373_v10  ;;  %v4400_v12 = vand.u32 2147483648, %v4373_v10  ;;  %v4398_v55 = vand.u32 2147483647, %v4373_v10  ;;  %vm4394_vm9 = vweird.f32 %v4373_v10 }
0x25d4   :  { %v4401_v34 = vor.u32 1.1754944e-38, %v4400_v12  ;;  %vm4399_vm10 = vcmp.eq.f32.partialorder %v4398_v55, 8.507059e+37 }
0x25d8   :  { %v4842_v11 = vpop.eup %4841 }
0x25d9   :  { %v4390_v9 = vmul.f32 %v4842_v11, %v4373_v10  ;;  %vm4395_vm14 = vweird.f32 %v4842_v11 }
0x25da   :  { %vm4396_vm4 = vmor %vm4394_vm9, %vm4395_vm14 }
0x25db   :  { %v4391_v62 = vsub.f32 1.0, %v4390_v9 }
0x25dd   :  { %v4392_v24 = vmul.f32 %v4842_v11, %v4391_v62 }
0x25df   :  { %v4393_v25 = vadd.f32 %v4842_v11, %v4392_v24 }
0x25e1   :  { %v4397_v26 = vsel %vm4396_vm4, %v4842_v11, %v4393_v25 }
0x25e2   :  { %v4402_v27 = vsel %vm4399_vm10, %v4401_v34, %v4397_v26 }
0x25e3   :  { %v4403_v28 = vmul.f32 %v4402_v27, %v4371_v15 }
0x25e5   :  { %v4408_v61 = vadd.f32 %v4654_v47, %v4403_v28 }
0x25e7   :  { %4411 = vst.msk [vmem:[#allocation2 + $0x8] sm:$0xff] %vm78_vm0, %v4408_v61 }
0x25e8   :  { %4424 = dma.vmem_to_hbm [thread:$0]  %s4417_s15, 256, %s4419_s8, [#allocation3], %s4900_s18, %s4900_s18, %s4901_s9  }
0x25e9   :  { %4883 = dma.done.wait [#allocation3], 256  }
0x25ea   :  { %4884 = vsyncadd [#allocation3], 4294967040 }
0x25eb   :  { %4429 = vsyncpa [#allocation3], 1 }

</bundles_post_ra>
